<compile_context>
chip_gen: v6e
topology: v6e:2x2x1
jax: 0.10.0
libtpu: 0.0.40
codegen_flags: <defaults>
</compile_context>

<pallas_src>
import functools

import jax
import jax.numpy as jnp
from jax.experimental import pallas as pl
from jax.experimental.pallas import tpu as pltpu

LEAKY_SLOPE = 0.01  # nn.LeakyReLU default
_VMEM_LIMIT = 48 * 1024 * 1024  # leaves headroom on v7x (64 MiB physical VMEM)


# ----------------------------- Pallas kernels ------------------------------


def _conv_gemm_kernel(x_ref, w_ref, b_ref, o_ref):
    # One M-tile of: o = x @ w + b   (bf16 operands, f32 MXU accumulate)
    acc = jnp.dot(x_ref[...], w_ref[...], preferred_element_type=jnp.float32)
    o_ref[...] = acc + b_ref[...]


def conv_gemm(patches_bf16, w_bf16, b_f32, tm_max=1024):
    """Tiled GEMM+bias over the rows (M = N*OH*OW) of the im2col patches."""
    M, K = patches_bf16.shape
    Kw, C = w_bf16.shape
    assert K == Kw
    tm = M if M <= tm_max else tm_max  # tm_max is a multiple of 8
    return pl.pallas_call(
        _conv_gemm_kernel,
        out_shape=jax.ShapeDtypeStruct((M, C), jnp.float32),
        grid=(pl.cdiv(M, tm),),
        in_specs=[
            pl.BlockSpec((tm, K), lambda i: (i, 0)),   # stream patch rows
            pl.BlockSpec((Kw, C), lambda i: (0, 0)),   # weight resident
            pl.BlockSpec((1, C), lambda i: (0, 0)),    # bias resident
        ],
        out_specs=pl.BlockSpec((tm, C), lambda i: (i, 0)),
        compiler_params=pltpu.CompilerParams(
            dimension_semantics=("parallel",),
            vmem_limit_bytes=_VMEM_LIMIT,
        ),
    )(patches_bf16, w_bf16, b_f32.reshape(1, -1))


def _pool_kernel(x_ref, o_ref, *, op):
    # x_ref: [tr, 2, PW, 2, C] -> the 2x2 window elements of tr pooled rows.
    v = x_ref[...]
    a = v[:, 0, :, 0, :]
    b = v[:, 0, :, 1, :]
    c = v[:, 1, :, 0, :]
    d = v[:, 1, :, 1, :]
    if op == "max":
        o_ref[...] = jnp.maximum(jnp.maximum(a, b), jnp.maximum(c, d))
    else:  # avg, count_include_pad=True -> always divide by 4
        o_ref[...] = (a + b + c + d) * 0.25


def pool2x2(x, op, tr_max=64):
    """2x2 stride-2 pooling of an NHWC activation (H, W already even).

    The [N, 2*PH, 2*PW, C] -> [N*PH, 2, PW, 2, C] reshape is memory-order
    preserving (no HBM copy); the kernel streams row-tiles and reduces the
    window in VMEM (no [4, M, C] stack materialized in HBM).
    """
    N, H2, W2, C = x.shape
    PH, PW = H2 // 2, W2 // 2
    R = N * PH
    xr = x.reshape(R, 2, PW, 2, C)
    tr = R if R <= tr_max else tr_max
    out = pl.pallas_call(
        functools.partial(_pool_kernel, op=op),
        out_shape=jax.ShapeDtypeStruct((R, PW, C), jnp.float32),
        grid=(pl.cdiv(R, tr),),
        in_specs=[pl.BlockSpec((tr, 2, PW, 2, C), lambda i: (i, 0, 0, 0, 0))],
        out_specs=pl.BlockSpec((tr, PW, C), lambda i: (i, 0, 0)),
        compiler_params=pltpu.CompilerParams(
            dimension_semantics=("parallel",),
            vmem_limit_bytes=_VMEM_LIMIT,
        ),
    )(xr)
    return out.reshape(N, PH, PW, C)


def _head_kernel(x_ref, w1_ref, b1_ref, w2_ref, b2_ref, w3_ref, b3_ref,
                 o_ref, acc_ref):
    # K-tiled: leaky_relu -> dense1 (accumulated) ; finalize: leaky -> dense2 -> dense3
    k = pl.program_id(0)

    @pl.when(k == 0)
    def _():
        acc_ref[...] = jnp.zeros_like(acc_ref)

    x = x_ref[...]
    x = jnp.where(x >= 0, x, LEAKY_SLOPE * x).astype(jnp.bfloat16)
    acc_ref[...] += jnp.dot(x, w1_ref[...], preferred_element_type=jnp.float32)

    @pl.when(k == pl.num_programs(0) - 1)
    def _():
        h1 = acc_ref[...] + b1_ref[...]
        h1 = jnp.where(h1 >= 0, h1, LEAKY_SLOPE * h1).astype(jnp.bfloat16)
        h2 = jnp.dot(h1, w2_ref[...], preferred_element_type=jnp.float32) + b2_ref[...]
        o_ref[...] = (
            jnp.dot(h2.astype(jnp.bfloat16), w3_ref[...],
                    preferred_element_type=jnp.float32)
            + b3_ref[...]
        )


def _pick_head_tk(F, tk_max=16384):
    """Largest multiple of 128 that divides F and fits the tile budget."""
    if F <= tk_max:
        return F
    for t in range(tk_max - (tk_max % 128), 127, -128):
        if F % t == 0:
            return t
    return F  # fallback: single block


def dense_head(x, w1, b1, w2, b2, w3, b3, tk_max=16384):
    N, F = x.shape
    H1, H2, O = w1.shape[1], w2.shape[1], w3.shape[1]
    tk = _pick_head_tk(F, tk_max)
    grid = (F // tk,)
    return pl.pallas_call(
        _head_kernel,
        out_shape=jax.ShapeDtypeStruct((N, O), jnp.float32),
        grid=grid,
        in_specs=[
            pl.BlockSpec((N, tk), lambda k: (0, k)),     # stream activation slab
            pl.BlockSpec((tk, H1), lambda k: (k, 0)),    # stream wd1 K-tiles
            pl.BlockSpec((1, H1), lambda k: (0, 0)),     # resident across K loop
            pl.BlockSpec((H1, H2), lambda k: (0, 0)),
            pl.BlockSpec((1, H2), lambda k: (0, 0)),
            pl.BlockSpec((H2, O), lambda k: (0, 0)),
            pl.BlockSpec((1, O), lambda k: (0, 0)),
        ],
        out_specs=pl.BlockSpec((N, O), lambda k: (0, 0)),
        scratch_shapes=[pltpu.VMEM((N, H1), jnp.float32)],
        compiler_params=pltpu.CompilerParams(
            dimension_semantics=("arbitrary",),
            vmem_limit_bytes=_VMEM_LIMIT,
        ),
    )(x, w1, b1.reshape(1, -1), w2, b2.reshape(1, -1), w3, b3.reshape(1, -1))


# ------------------------------- JAX glue -----------------------------------


def im2col(x, k):
    """[N, H, W, C] -> bf16 patches [N*OH*OW, k*k*C], (kh, kw, c)-ordered."""
    x = x.astype(jnp.bfloat16)
    N, H, W, C = x.shape
    OH, OW = H - k + 1, W - k + 1
    cols = []
    for kh in range(k):
        for kw in range(k):
            cols.append(x[:, kh:kh + OH, kw:kw + OW, :])
    return jnp.concatenate(cols, axis=-1).reshape(N * OH * OW, k * k * C)


def probies_forward(x_nchw, p):
    N, _, H, W = x_nchw.shape
    x = jnp.transpose(x_nchw, (0, 2, 3, 1))  # NCHW -> NHWC

    # conv1: 1 -> 32, k=3, valid
    oh1, ow1 = H - 2, W - 2
    y1 = conv_gemm(im2col(x, 3), p["w1col"], p["b1"]).reshape(N, oh1, ow1, 32)

    # maxpool 2x2, stride 2 (floor mode -> crop to even extent)
    ph, pw = oh1 // 2, ow1 // 2
    y2 = pool2x2(y1[:, :2 * ph, :2 * pw, :], "max")

    # conv2: 32 -> 64, k=3, valid
    oh2, ow2 = ph - 2, pw - 2
    y3 = conv_gemm(im2col(y2, 3), p["w2col"], p["b2"]).reshape(N, oh2, ow2, 64)

    # avgpool k=2, stride=2, padding=1 (count_include_pad=True -> divisor 4)
    ah, aw = oh2 // 2 + 1, ow2 // 2 + 1
    z = jnp.pad(y3, ((0, 0), (1, 2 * ah - oh2 - 1), (1, 2 * aw - ow2 - 1), (0, 0)))
    y4 = pool2x2(z, "avg")

    # flatten (NHWC order; dense1 weight columns were permuted from NCHW order)
    xf = y4.reshape(N, ah * aw * 64)

    # leaky_relu -> dense1 -> leaky_relu -> dense2 -> dense3 (fused, K-tiled)
    return dense_head(xf, p["wd1"], p["bd1"], p["wd2"], p["bd2"], p["wd3"], p["bd3"])


# --------------------------- parameter construction -------------------------


def make_params(key, H, W):
    oh1, ow1 = H - 2, W - 2
    ph, pw = oh1 // 2, ow1 // 2
    oh2, ow2 = ph - 2, pw - 2
    ah, aw = oh2 // 2 + 1, ow2 // 2 + 1
    in_features = 64 * ah * aw  # 576 for 16x16 input (350464 in the 298x298 net)

    ks = jax.random.split(key, 10)
    s = 0.05
    # torch-layout parameters (f32 master copies)
    w1 = s * jax.random.normal(ks[0], (32, 1, 3, 3), jnp.float32)
    b1 = s * jax.random.normal(ks[1], (32,), jnp.float32)
    w2 = s * jax.random.normal(ks[2], (64, 32, 3, 3), jnp.float32)
    b2 = s * jax.random.normal(ks[3], (64,), jnp.float32)
    wd1 = s * jax.random.normal(ks[4], (128, in_features), jnp.float32)
    bd1 = s * jax.random.normal(ks[5], (128,), jnp.float32)
    wd2 = s * jax.random.normal(ks[6], (2048, 128), jnp.float32)
    bd2 = s * jax.random.normal(ks[7], (2048,), jnp.float32)
    wd3 = s * jax.random.normal(ks[8], (5, 2048), jnp.float32)
    bd3 = s * jax.random.normal(ks[9], (5,), jnp.float32)

    # conv weights [O, C, KH, KW] -> im2col form [(kh, kw, c), O]
    w1col = jnp.transpose(w1, (2, 3, 1, 0)).reshape(9 * 1, 32)
    w2col = jnp.transpose(w2, (2, 3, 1, 0)).reshape(9 * 32, 64)

    # permute dense1 columns: torch flattens NCHW (c,h,w); we flatten NHWC (h,w,c)
    wd1_hwc = (
        wd1.reshape(128, 64, ah, aw).transpose(0, 2, 3, 1).reshape(128, in_features)
    )

    bf16 = jnp.bfloat16
    return {
        # streamed MXU operands in bf16 (f32 accumulation in-kernel)
        "w1col": w1col.astype(bf16), "b1": b1,
        "w2col": w2col.astype(bf16), "b2": b2,
        "wd1": wd1_hwc.T.astype(bf16), "bd1": bd1,
        "wd2": wd2.T.astype(bf16), "bd2": bd2,
        "wd3": wd3.T.astype(bf16), "bd3": bd3,
    }


if __name__ == "__main__":
    key = jax.random.PRNGKey(0)
    kx, kp = jax.random.split(key)

    N, H, W = 2, 16, 16
    x = jax.random.normal(kx, (N, 1, H, W), jnp.float32)  # NCHW, like PyTorch
    params = make_params(kp, H, W)

    fwd = jax.jit(probies_forward)
    out = jax.block_until_ready(fwd(x, params))
    assert out.shape == (N, 5) and out.dtype == jnp.float32
    print("KERNEL_OK")
</pallas_src>

<mosaic_0001>
module attributes {stable_mosaic.version = 11 : i64} {
  func.func @_conv_gemm_kernel(%arg0: i32, %arg1: memref<392x9xbf16, #tpu.memory_space<vmem>>, %arg2: memref<9x32xbf16, #tpu.memory_space<vmem>>, %arg3: memref<1x32xf32, #tpu.memory_space<vmem>>, %arg4: memref<392x32xf32, #tpu.memory_space<vmem>>) attributes {dimension_semantics = [#tpu.dimension_semantics<parallel>], iteration_bounds = array<i64: 1>, scalar_prefetch = 0 : i64, scratch_operands = 0 : i64, tpu.core_type = #tpu.core_type<tc>, window_params = [{transform_indices = @transform_0, window_bounds = array<i64: 392, 9>}, {pipeline_mode = #tpu.pipeline_mode<synchronous>, transform_indices = @transform_1, window_bounds = array<i64: 9, 32>}, {pipeline_mode = #tpu.pipeline_mode<synchronous>, transform_indices = @transform_2, window_bounds = array<i64: 1, 32>}, {transform_indices = @transform_3, window_bounds = array<i64: 392, 32>}]} {
    %c0 = arith.constant 0 : index
    %c0_0 = arith.constant 0 : index
    %0 = vector.load %arg1[%c0, %c0_0] : memref<392x9xbf16, #tpu.memory_space<vmem>>, vector<392x9xbf16>
    %c0_1 = arith.constant 0 : index
    %c0_2 = arith.constant 0 : index
    %1 = vector.load %arg2[%c0_1, %c0_2] : memref<9x32xbf16, #tpu.memory_space<vmem>>, vector<9x32xbf16>
    %cst = arith.constant dense<0.000000e+00> : vector<392x32xf32>
    %2 = tpu.matmul %0, %1, %cst {dimension_numbers = #tpu.dot_dimension_numbers<[1], [0], [0], [1], [0, 0, 1, 1], [], []>} : vector<392x9xbf16>, vector<9x32xbf16>, vector<392x32xf32> -> vector<392x32xf32>
    %c0_3 = arith.constant 0 : index
    %c0_4 = arith.constant 0 : index
    %3 = vector.load %arg3[%c0_3, %c0_4] : memref<1x32xf32, #tpu.memory_space<vmem>>, vector<1x32xf32>
    %4 = vector.broadcast %3 : vector<1x32xf32> to vector<392x32xf32>
    %5 = arith.addf %2, %4 : vector<392x32xf32>
    %c0_5 = arith.constant 0 : index
    %c0_6 = arith.constant 0 : index
    %6 = vector.load %arg4[%c0_5, %c0_6] : memref<392x32xf32, #tpu.memory_space<vmem>>, vector<392x32xf32>
    tpu.vector_store %arg4[%c0_5, %c0_6], %5 {strides = array<i32>} : memref<392x32xf32, #tpu.memory_space<vmem>>, vector<392x32xf32>,
    return
  }
  func.func @transform_0(%arg0: i32) -> (i32, i32) {
    %c0_i32 = arith.constant 0 : i32
    %c0_i32_0 = arith.constant 0 : i32
    return %arg0, %c0_i32 : i32, i32
  }
  func.func @transform_1(%arg0: i32) -> (i32, i32) {
    %c0_i32 = arith.constant 0 : i32
    %c0_i32_0 = arith.constant 0 : i32
    %c0_i32_1 = arith.constant 0 : i32
    return %c0_i32, %c0_i32_0 : i32, i32
  }
  func.func @transform_2(%arg0: i32) -> (i32, i32) {
    %c0_i32 = arith.constant 0 : i32
    %c0_i32_0 = arith.constant 0 : i32
    %c0_i32_1 = arith.constant 0 : i32
    return %c0_i32, %c0_i32_0 : i32, i32
  }
  func.func @transform_3(%arg0: i32) -> (i32, i32) {
    %c0_i32 = arith.constant 0 : i32
    %c0_i32_0 = arith.constant 0 : i32
    return %arg0, %c0_i32 : i32, i32
  }
}

module attributes {stable_mosaic.version = 11 : i64} {
  func.func @_pool_kernel(%arg0: i32, %arg1: memref<14x2x7x2x32xf32, #tpu.memory_space<vmem>>, %arg2: memref<14x7x32xf32, #tpu.memory_space<vmem>>) attributes {dimension_semantics = [#tpu.dimension_semantics<parallel>], iteration_bounds = array<i64: 1>, scalar_prefetch = 0 : i64, scratch_operands = 0 : i64, tpu.core_type = #tpu.core_type<tc>, window_params = [{transform_indices = @transform_0, window_bounds = array<i64: 14, 2, 7, 2, 32>}, {transform_indices = @transform_1, window_bounds = array<i64: 14, 7, 32>}]} {
    %c0 = arith.constant 0 : index
    %c0_0 = arith.constant 0 : index
    %c0_1 = arith.constant 0 : index
    %c0_2 = arith.constant 0 : index
    %c0_3 = arith.constant 0 : index
    %0 = vector.load %arg1[%c0, %c0_0, %c0_1, %c0_2, %c0_3] : memref<14x2x7x2x32xf32, #tpu.memory_space<vmem>>, vector<14x2x7x2x32xf32>
    %1 = vector.extract_strided_slice %0 {offsets = [0, 0, 0, 0, 0], sizes = [14, 1, 7, 1, 32], strides = [1, 1, 1, 1, 1]} : vector<14x2x7x2x32xf32> to vector<14x1x7x1x32xf32>
    %2 = vector.shape_cast %1 : vector<14x1x7x1x32xf32> to vector<14x7x32xf32>
    %3 = vector.extract_strided_slice %0 {offsets = [0, 0, 0, 1, 0], sizes = [14, 1, 7, 1, 32], strides = [1, 1, 1, 1, 1]} : vector<14x2x7x2x32xf32> to vector<14x1x7x1x32xf32>
    %4 = vector.shape_cast %3 : vector<14x1x7x1x32xf32> to vector<14x7x32xf32>
    %5 = vector.extract_strided_slice %0 {offsets = [0, 1, 0, 0, 0], sizes = [14, 1, 7, 1, 32], strides = [1, 1, 1, 1, 1]} : vector<14x2x7x2x32xf32> to vector<14x1x7x1x32xf32>
    %6 = vector.shape_cast %5 : vector<14x1x7x1x32xf32> to vector<14x7x32xf32>
    %7 = vector.extract_strided_slice %0 {offsets = [0, 1, 0, 1, 0], sizes = [14, 1, 7, 1, 32], strides = [1, 1, 1, 1, 1]} : vector<14x2x7x2x32xf32> to vector<14x1x7x1x32xf32>
    %8 = vector.shape_cast %7 : vector<14x1x7x1x32xf32> to vector<14x7x32xf32>
    %9 = arith.maximumf %2, %4 : vector<14x7x32xf32>
    %10 = arith.maximumf %6, %8 : vector<14x7x32xf32>
    %11 = arith.maximumf %9, %10 : vector<14x7x32xf32>
    %c0_4 = arith.constant 0 : index
    %c0_5 = arith.constant 0 : index
    %c0_6 = arith.constant 0 : index
    %12 = vector.load %arg2[%c0_4, %c0_5, %c0_6] : memref<14x7x32xf32, #tpu.memory_space<vmem>>, vector<14x7x32xf32>
    tpu.vector_store %arg2[%c0_4, %c0_5, %c0_6], %11 {strides = array<i32>} : memref<14x7x32xf32, #tpu.memory_space<vmem>>, vector<14x7x32xf32>,
    return
  }
  func.func @transform_0(%arg0: i32) -> (i32, i32, i32, i32, i32) {
    %c0_i32 = arith.constant 0 : i32
    %c0_i32_0 = arith.constant 0 : i32
    %c0_i32_1 = arith.constant 0 : i32
    %c0_i32_2 = arith.constant 0 : i32
    %c0_i32_3 = arith.constant 0 : i32
    return %arg0, %c0_i32, %c0_i32_0, %c0_i32_1, %c0_i32_2 : i32, i32, i32, i32, i32
  }
  func.func @transform_1(%arg0: i32) -> (i32, i32, i32) {
    %c0_i32 = arith.constant 0 : i32
    %c0_i32_0 = arith.constant 0 : i32
    %c0_i32_1 = arith.constant 0 : i32
    return %arg0, %c0_i32, %c0_i32_0 : i32, i32, i32
  }
}

module attributes {stable_mosaic.version = 11 : i64} {
  func.func @_conv_gemm_kernel(%arg0: i32, %arg1: memref<50x288xbf16, #tpu.memory_space<vmem>>, %arg2: memref<288x64xbf16, #tpu.memory_space<vmem>>, %arg3: memref<1x64xf32, #tpu.memory_space<vmem>>, %arg4: memref<50x64xf32, #tpu.memory_space<vmem>>) attributes {dimension_semantics = [#tpu.dimension_semantics<parallel>], iteration_bounds = array<i64: 1>, scalar_prefetch = 0 : i64, scratch_operands = 0 : i64, tpu.core_type = #tpu.core_type<tc>, window_params = [{transform_indices = @transform_0, window_bounds = array<i64: 50, 288>}, {pipeline_mode = #tpu.pipeline_mode<synchronous>, transform_indices = @transform_1, window_bounds = array<i64: 288, 64>}, {pipeline_mode = #tpu.pipeline_mode<synchronous>, transform_indices = @transform_2, window_bounds = array<i64: 1, 64>}, {transform_indices = @transform_3, window_bounds = array<i64: 50, 64>}]} {
    %c0 = arith.constant 0 : index
    %c0_0 = arith.constant 0 : index
    %0 = vector.load %arg1[%c0, %c0_0] : memref<50x288xbf16, #tpu.memory_space<vmem>>, vector<50x288xbf16>
    %c0_1 = arith.constant 0 : index
    %c0_2 = arith.constant 0 : index
    %1 = vector.load %arg2[%c0_1, %c0_2] : memref<288x64xbf16, #tpu.memory_space<vmem>>, vector<288x64xbf16>
    %cst = arith.constant dense<0.000000e+00> : vector<50x64xf32>
    %2 = tpu.matmul %0, %1, %cst {dimension_numbers = #tpu.dot_dimension_numbers<[1], [0], [0], [1], [0, 0, 1, 1], [], []>} : vector<50x288xbf16>, vector<288x64xbf16>, vector<50x64xf32> -> vector<50x64xf32>
    %c0_3 = arith.constant 0 : index
    %c0_4 = arith.constant 0 : index
    %3 = vector.load %arg3[%c0_3, %c0_4] : memref<1x64xf32, #tpu.memory_space<vmem>>, vector<1x64xf32>
    %4 = vector.broadcast %3 : vector<1x64xf32> to vector<50x64xf32>
    %5 = arith.addf %2, %4 : vector<50x64xf32>
    %c0_5 = arith.constant 0 : index
    %c0_6 = arith.constant 0 : index
    %6 = vector.load %arg4[%c0_5, %c0_6] : memref<50x64xf32, #tpu.memory_space<vmem>>, vector<50x64xf32>
    tpu.vector_store %arg4[%c0_5, %c0_6], %5 {strides = array<i32>} : memref<50x64xf32, #tpu.memory_space<vmem>>, vector<50x64xf32>,
    return
  }
  func.func @transform_0(%arg0: i32) -> (i32, i32) {
    %c0_i32 = arith.constant 0 : i32
    %c0_i32_0 = arith.constant 0 : i32
    return %arg0, %c0_i32 : i32, i32
  }
  func.func @transform_1(%arg0: i32) -> (i32, i32) {
    %c0_i32 = arith.constant 0 : i32
    %c0_i32_0 = arith.constant 0 : i32
    %c0_i32_1 = arith.constant 0 : i32
    return %c0_i32, %c0_i32_0 : i32, i32
  }
  func.func @transform_2(%arg0: i32) -> (i32, i32) {
    %c0_i32 = arith.constant 0 : i32
    %c0_i32_0 = arith.constant 0 : i32
    %c0_i32_1 = arith.constant 0 : i32
    return %c0_i32, %c0_i32_0 : i32, i32
  }
  func.func @transform_3(%arg0: i32) -> (i32, i32) {
    %c0_i32 = arith.constant 0 : i32
    %c0_i32_0 = arith.constant 0 : i32
    return %arg0, %c0_i32 : i32, i32
  }
}

module attributes {stable_mosaic.version = 11 : i64} {
  func.func @_pool_kernel(%arg0: i32, %arg1: memref<6x2x3x2x64xf32, #tpu.memory_space<vmem>>, %arg2: memref<6x3x64xf32, #tpu.memory_space<vmem>>) attributes {dimension_semantics = [#tpu.dimension_semantics<parallel>], iteration_bounds = array<i64: 1>, scalar_prefetch = 0 : i64, scratch_operands = 0 : i64, tpu.core_type = #tpu.core_type<tc>, window_params = [{transform_indices = @transform_0, window_bounds = array<i64: 6, 2, 3, 2, 64>}, {transform_indices = @transform_1, window_bounds = array<i64: 6, 3, 64>}]} {
    %c0 = arith.constant 0 : index
    %c0_0 = arith.constant 0 : index
    %c0_1 = arith.constant 0 : index
    %c0_2 = arith.constant 0 : index
    %c0_3 = arith.constant 0 : index
    %0 = vector.load %arg1[%c0, %c0_0, %c0_1, %c0_2, %c0_3] : memref<6x2x3x2x64xf32, #tpu.memory_space<vmem>>, vector<6x2x3x2x64xf32>
    %1 = vector.extract_strided_slice %0 {offsets = [0, 0, 0, 0, 0], sizes = [6, 1, 3, 1, 64], strides = [1, 1, 1, 1, 1]} : vector<6x2x3x2x64xf32> to vector<6x1x3x1x64xf32>
    %2 = vector.shape_cast %1 : vector<6x1x3x1x64xf32> to vector<6x3x64xf32>
    %3 = vector.extract_strided_slice %0 {offsets = [0, 0, 0, 1, 0], sizes = [6, 1, 3, 1, 64], strides = [1, 1, 1, 1, 1]} : vector<6x2x3x2x64xf32> to vector<6x1x3x1x64xf32>
    %4 = vector.shape_cast %3 : vector<6x1x3x1x64xf32> to vector<6x3x64xf32>
    %5 = vector.extract_strided_slice %0 {offsets = [0, 1, 0, 0, 0], sizes = [6, 1, 3, 1, 64], strides = [1, 1, 1, 1, 1]} : vector<6x2x3x2x64xf32> to vector<6x1x3x1x64xf32>
    %6 = vector.shape_cast %5 : vector<6x1x3x1x64xf32> to vector<6x3x64xf32>
    %7 = vector.extract_strided_slice %0 {offsets = [0, 1, 0, 1, 0], sizes = [6, 1, 3, 1, 64], strides = [1, 1, 1, 1, 1]} : vector<6x2x3x2x64xf32> to vector<6x1x3x1x64xf32>
    %8 = vector.shape_cast %7 : vector<6x1x3x1x64xf32> to vector<6x3x64xf32>
    %9 = arith.addf %2, %4 : vector<6x3x64xf32>
    %10 = arith.addf %9, %6 : vector<6x3x64xf32>
    %11 = arith.addf %10, %8 : vector<6x3x64xf32>
    %cst = arith.constant 2.500000e-01 : f32
    %12 = vector.broadcast %cst : f32 to vector<6x3x64xf32>
    %13 = arith.mulf %11, %12 : vector<6x3x64xf32>
    %c0_4 = arith.constant 0 : index
    %c0_5 = arith.constant 0 : index
    %c0_6 = arith.constant 0 : index
    %14 = vector.load %arg2[%c0_4, %c0_5, %c0_6] : memref<6x3x64xf32, #tpu.memory_space<vmem>>, vector<6x3x64xf32>
    tpu.vector_store %arg2[%c0_4, %c0_5, %c0_6], %13 {strides = array<i32>} : memref<6x3x64xf32, #tpu.memory_space<vmem>>, vector<6x3x64xf32>,
    return
  }
  func.func @transform_0(%arg0: i32) -> (i32, i32, i32, i32, i32) {
    %c0_i32 = arith.constant 0 : i32
    %c0_i32_0 = arith.constant 0 : i32
    %c0_i32_1 = arith.constant 0 : i32
    %c0_i32_2 = arith.constant 0 : i32
    %c0_i32_3 = arith.constant 0 : i32
    return %arg0, %c0_i32, %c0_i32_0, %c0_i32_1, %c0_i32_2 : i32, i32, i32, i32, i32
  }
  func.func @transform_1(%arg0: i32) -> (i32, i32, i32) {
    %c0_i32 = arith.constant 0 : i32
    %c0_i32_0 = arith.constant 0 : i32
    %c0_i32_1 = arith.constant 0 : i32
    return %arg0, %c0_i32, %c0_i32_0 : i32, i32, i32
  }
}

module attributes {stable_mosaic.version = 11 : i64} {
  func.func @_head_kernel(%arg0: i32, %arg1: memref<2x576xf32, #tpu.memory_space<vmem>>, %arg2: memref<576x128xbf16, #tpu.memory_space<vmem>>, %arg3: memref<1x128xf32, #tpu.memory_space<vmem>>, %arg4: memref<128x2048xbf16, #tpu.memory_space<vmem>>, %arg5: memref<1x2048xf32, #tpu.memory_space<vmem>>, %arg6: memref<2048x5xbf16, #tpu.memory_space<vmem>>, %arg7: memref<1x5xf32, #tpu.memory_space<vmem>>, %arg8: memref<2x5xf32, #tpu.memory_space<vmem>>, %arg9: memref<2x128xf32, #tpu.memory_space<vmem>>) attributes {dimension_semantics = [#tpu.dimension_semantics<arbitrary>], iteration_bounds = array<i64: 1>, scalar_prefetch = 0 : i64, scratch_operands = 1 : i64, tpu.core_type = #tpu.core_type<tc>, window_params = [{transform_indices = @transform_0, window_bounds = array<i64: 2, 576>}, {transform_indices = @transform_1, window_bounds = array<i64: 576, 128>}, {pipeline_mode = #tpu.pipeline_mode<synchronous>, transform_indices = @transform_2, window_bounds = array<i64: 1, 128>}, {pipeline_mode = #tpu.pipeline_mode<synchronous>, transform_indices = @transform_3, window_bounds = array<i64: 128, 2048>}, {pipeline_mode = #tpu.pipeline_mode<synchronous>, transform_indices = @transform_4, window_bounds = array<i64: 1, 2048>}, {pipeline_mode = #tpu.pipeline_mode<synchronous>, transform_indices = @transform_5, window_bounds = array<i64: 2048, 5>}, {pipeline_mode = #tpu.pipeline_mode<synchronous>, transform_indices = @transform_6, window_bounds = array<i64: 1, 5>}, {pipeline_mode = #tpu.pipeline_mode<synchronous>, transform_indices = @transform_7, window_bounds = array<i64: 2, 5>}]} {
    %c0_i32 = arith.constant 0 : i32
    %0 = arith.cmpi eq, %arg0, %c0_i32 : i32
    %1 = arith.extui %0 : i1 to i32
    %c0_i32_0 = arith.constant 0 : i32
    %2 = arith.cmpi ne, %1, %c0_i32_0 : i32
    scf.if %2 {
      %cst_12 = arith.constant 0.000000e+00 : f32
      %18 = vector.broadcast %cst_12 : f32 to vector<2x128xf32>
      %c0_13 = arith.constant 0 : index
      %c0_14 = arith.constant 0 : index
      %19 = vector.load %arg9[%c0_13, %c0_14] : memref<2x128xf32, #tpu.memory_space<vmem>>, vector<2x128xf32>
      tpu.vector_store %arg9[%c0_13, %c0_14], %18 {strides = array<i32>} : memref<2x128xf32, #tpu.memory_space<vmem>>, vector<2x128xf32>,
    } else {
    }
    %c0 = arith.constant 0 : index
    %c0_1 = arith.constant 0 : index
    %3 = vector.load %arg1[%c0, %c0_1] : memref<2x576xf32, #tpu.memory_space<vmem>>, vector<2x576xf32>
    %cst = arith.constant 0.000000e+00 : f32
    %4 = vector.broadcast %cst : f32 to vector<2x576xf32>
    %5 = arith.cmpf oge, %3, %4 : vector<2x576xf32>
    %cst_2 = arith.constant 0.00999999977 : f32
    %6 = vector.broadcast %cst_2 : f32 to vector<2x576xf32>
    %7 = arith.mulf %6, %3 : vector<2x576xf32>
    %8 = arith.select %5, %3, %7 : vector<2x576xi1>, vector<2x576xf32>
    %9 = arith.truncf %8 : vector<2x576xf32> to vector<2x576xbf16>
    %c0_3 = arith.constant 0 : index
    %c0_4 = arith.constant 0 : index
    %10 = vector.load %arg9[%c0_3, %c0_4] : memref<2x128xf32, #tpu.memory_space<vmem>>, vector<2x128xf32>
    %c0_5 = arith.constant 0 : index
    %c0_6 = arith.constant 0 : index
    %11 = vector.load %arg2[%c0_5, %c0_6] : memref<576x128xbf16, #tpu.memory_space<vmem>>, vector<576x128xbf16>
    %cst_7 = arith.constant dense<0.000000e+00> : vector<2x128xf32>
    %12 = tpu.matmul %9, %11, %cst_7 {dimension_numbers = #tpu.dot_dimension_numbers<[1], [0], [0], [1], [0, 0, 1, 1], [], []>} : vector<2x576xbf16>, vector<576x128xbf16>, vector<2x128xf32> -> vector<2x128xf32>
    %13 = arith.addf %10, %12 : vector<2x128xf32>
    %c0_8 = arith.constant 0 : index
    %c0_9 = arith.constant 0 : index
    %14 = vector.load %arg9[%c0_8, %c0_9] : memref<2x128xf32, #tpu.memory_space<vmem>>, vector<2x128xf32>
    tpu.vector_store %arg9[%c0_8, %c0_9], %13 {strides = array<i32>} : memref<2x128xf32, #tpu.memory_space<vmem>>, vector<2x128xf32>,
    %c0_i32_10 = arith.constant 0 : i32
    %15 = arith.cmpi eq, %arg0, %c0_i32_10 : i32
    %16 = arith.extui %15 : i1 to i32
    %c0_i32_11 = arith.constant 0 : i32
    %17 = arith.cmpi ne, %16, %c0_i32_11 : i32
    scf.if %17 {
      %c0_12 = arith.constant 0 : index
      %c0_13 = arith.constant 0 : index
      %18 = vector.load %arg9[%c0_12, %c0_13] : memref<2x128xf32, #tpu.memory_space<vmem>>, vector<2x128xf32>
      %c0_14 = arith.constant 0 : index
      %c0_15 = arith.constant 0 : index
      %19 = vector.load %arg3[%c0_14, %c0_15] : memref<1x128xf32, #tpu.memory_space<vmem>>, vector<1x128xf32>
      %20 = vector.broadcast %19 : vector<1x128xf32> to vector<2x128xf32>
      %21 = arith.addf %18, %20 : vector<2x128xf32>
      %cst_16 = arith.constant 0.000000e+00 : f32
      %22 = vector.broadcast %cst_16 : f32 to vector<2x128xf32>
      %23 = arith.cmpf oge, %21, %22 : vector<2x128xf32>
      %cst_17 = arith.constant 0.00999999977 : f32
      %24 = vector.broadcast %cst_17 : f32 to vector<2x128xf32>
      %25 = arith.mulf %24, %21 : vector<2x128xf32>
      %26 = arith.select %23, %21, %25 : vector<2x128xi1>, vector<2x128xf32>
      %27 = arith.truncf %26 : vector<2x128xf32> to vector<2x128xbf16>
      %c0_18 = arith.constant 0 : index
      %c0_19 = arith.constant 0 : index
      %28 = vector.load %arg4[%c0_18, %c0_19] : memref<128x2048xbf16, #tpu.memory_space<vmem>>, vector<128x2048xbf16>
      %cst_20 = arith.constant dense<0.000000e+00> : vector<2x2048xf32>
      %29 = tpu.matmul %27, %28, %cst_20 {dimension_numbers = #tpu.dot_dimension_numbers<[1], [0], [0], [1], [0, 0, 1, 1], [], []>} : vector<2x128xbf16>, vector<128x2048xbf16>, vector<2x2048xf32> -> vector<2x2048xf32>
      %c0_21 = arith.constant 0 : index
      %c0_22 = arith.constant 0 : index
      %30 = vector.load %arg5[%c0_21, %c0_22] : memref<1x2048xf32, #tpu.memory_space<vmem>>, vector<1x2048xf32>
      %31 = vector.broadcast %30 : vector<1x2048xf32> to vector<2x2048xf32>
      %32 = arith.addf %29, %31 : vector<2x2048xf32>
      %33 = arith.truncf %32 : vector<2x2048xf32> to vector<2x2048xbf16>
      %c0_23 = arith.constant 0 : index
      %c0_24 = arith.constant 0 : index
      %34 = vector.load %arg6[%c0_23, %c0_24] : memref<2048x5xbf16, #tpu.memory_space<vmem>>, vector<2048x5xbf16>
      %cst_25 = arith.constant dense<0.000000e+00> : vector<2x5xf32>
      %35 = tpu.matmul %33, %34, %cst_25 {dimension_numbers = #tpu.dot_dimension_numbers<[1], [0], [0], [1], [0, 0, 1, 1], [], []>} : vector<2x2048xbf16>, vector<2048x5xbf16>, vector<2x5xf32> -> vector<2x5xf32>
      %c0_26 = arith.constant 0 : index
      %c0_27 = arith.constant 0 : index
      %36 = vector.load %arg7[%c0_26, %c0_27] : memref<1x5xf32, #tpu.memory_space<vmem>>, vector<1x5xf32>
      %37 = vector.broadcast %36 : vector<1x5xf32> to vector<2x5xf32>
      %38 = arith.addf %35, %37 : vector<2x5xf32>
      %c0_28 = arith.constant 0 : index
      %c0_29 = arith.constant 0 : index
      %39 = vector.load %arg8[%c0_28, %c0_29] : memref<2x5xf32, #tpu.memory_space<vmem>>, vector<2x5xf32>
      tpu.vector_store %arg8[%c0_28, %c0_29], %38 {strides = array<i32>} : memref<2x5xf32, #tpu.memory_space<vmem>>, vector<2x5xf32>,
    } else {
    }
    return
  }
  func.func @transform_0(%arg0: i32) -> (i32, i32) {
    %c0_i32 = arith.constant 0 : i32
    %c0_i32_0 = arith.constant 0 : i32
    return %c0_i32, %arg0 : i32, i32
  }
  func.func @transform_1(%arg0: i32) -> (i32, i32) {
    %c0_i32 = arith.constant 0 : i32
    %c0_i32_0 = arith.constant 0 : i32
    return %arg0, %c0_i32 : i32, i32
  }
  func.func @transform_2(%arg0: i32) -> (i32, i32) {
    %c0_i32 = arith.constant 0 : i32
    %c0_i32_0 = arith.constant 0 : i32
    %c0_i32_1 = arith.constant 0 : i32
    return %c0_i32, %c0_i32_0 : i32, i32
  }
  func.func @transform_3(%arg0: i32) -> (i32, i32) {
    %c0_i32 = arith.constant 0 : i32
    %c0_i32_0 = arith.constant 0 : i32
    %c0_i32_1 = arith.constant 0 : i32
    return %c0_i32, %c0_i32_0 : i32, i32
  }
  func.func @transform_4(%arg0: i32) -> (i32, i32) {
    %c0_i32 = arith.constant 0 : i32
    %c0_i32_0 = arith.constant 0 : i32
    %c0_i32_1 = arith.constant 0 : i32
    return %c0_i32, %c0_i32_0 : i32, i32
  }
  func.func @transform_5(%arg0: i32) -> (i32, i32) {
    %c0_i32 = arith.constant 0 : i32
    %c0_i32_0 = arith.constant 0 : i32
    %c0_i32_1 = arith.constant 0 : i32
    return %c0_i32, %c0_i32_0 : i32, i32
  }
  func.func @transform_6(%arg0: i32) -> (i32, i32) {
    %c0_i32 = arith.constant 0 : i32
    %c0_i32_0 = arith.constant 0 : i32
    %c0_i32_1 = arith.constant 0 : i32
    return %c0_i32, %c0_i32_0 : i32, i32
  }
  func.func @transform_7(%arg0: i32) -> (i32, i32) {
    %c0_i32 = arith.constant 0 : i32
    %c0_i32_0 = arith.constant 0 : i32
    %c0_i32_1 = arith.constant 0 : i32
    return %c0_i32, %c0_i32_0 : i32, i32
  }
}

</mosaic_0001>

<bundles_post_ra>
// kernel: probies_forward.5
= control target key start
LH: loop header
LB: loop body
LE: loop exit
PB: predicated region body
PF: predicated region fallthrough
CT: control target
= control target key end

     0   :  { %vm277_vm0 = vcmask 1043456   ;;  %vm278_vm1 = vcmask 1044480   ;;  %v781_v0 = vmov 0.0   ;;  %v782_v2 = vmov 65535   ;;  %s1209_s1 = inlined_call_operand.vmem [shape: bf16[9,32], index: 1, kind: input, shape index: {}]   ;;  %s1210_s0 = inlined_call_operand.vmem [shape: bf16[392,9], index: 0, kind: input, shape index: {}]   ;;  %s1211_s2 = inlined_call_operand.vmem [shape: f32[1,32], index: 2, kind: input, shape index: {}]   ;;  %s1212_s3 = inlined_call_operand.vmem [shape: f32[392,32], index: 3, kind: output, shape index: {}]  }
   0x1   :  { %648 = vmatprep.subr.bf16.mxu0 %v781_v0  ;;  %v755_v1 = vld [vmem:[%s1209_s1] sm:$0x1f]   ;;  %750 = vmatprep.subr.bf16.mxu1 %v781_v0  ;;  %v279_v3 = vsel %vm277_vm0, 4294967295, %v782_v2  ;;  %vm783_vm2 = vmmov 0   ;;  %v757_v7 = vld [vmem:[%s1210_s0 + $0x68] sm:$0xff]   ;;  %vm201_vm3 = vcmask 72704  }
   0x2   :  { %v280_v4 = vsel %vm278_vm1, %v279_v3, 0  ;;  %650 = vmatprep.mubr.msk.bf16.mxu0 %vm783_vm2, %v781_v0  ;;  %v756_v5 = vld [vmem:[%s1210_s0] sm:$0xff]   ;;  %702 = vmatprep.mubr.msk.bf16.mxu1 %vm783_vm2, %v781_v0  ;;  %v758_v8 = vld [vmem:[%s1210_s0 + $0x8] sm:$0xff]   ;;  %v759_v9 = vld [vmem:[%s1210_s0 + $0x70] sm:$0xff]   ;;  %vm516_vm4 = vcmask 261120  }
   0x3   :  { %v282_v6 = vand.u32 %v755_v1, %v280_v4  ;;  %v760_v10 = vld [vmem:[%s1210_s0 + $0x10] sm:$0xff]   ;;  %v761_v11 = vld [vmem:[%s1210_s0 + $0x78] sm:$0xff]   ;;  %v763_v13 = vld [vmem:[%s1210_s0 + $0x80] sm:$0xff]  }
   0x4   :  { %v762_v12 = vld [vmem:[%s1210_s0 + $0x18] sm:$0xff]   ;;  %v764_v14 = vld [vmem:[%s1210_s0 + $0x20] sm:$0xff]   ;;  %v765_v15 = vld [vmem:[%s1210_s0 + $0x88] sm:$0xff]  }
   0x5   :  { %649 = vmatpush3.bf16.msra.mxu0 %v282_v6  ;;  %751 = vmatpush3.bf16.msra.mxu1 %v282_v6  ;;  %v766_v16 = vld [vmem:[%s1210_s0 + $0x28] sm:$0xff]   ;;  %v767_v17 = vld [vmem:[%s1210_s0 + $0x90] sm:$0xff]   ;;  %v769_v19 = vld [vmem:[%s1210_s0 + $0x98] sm:$0xff]  }
   0x6   :  { %v768_v18 = vld [vmem:[%s1210_s0 + $0x30] sm:$0xff]   ;;  %v770_v20 = vld [vmem:[%s1210_s0 + $0x38] sm:$0xff]   ;;  %v771_v21 = vld [vmem:[%s1210_s0 + $0xa0] sm:$0xff]  }
   0x7   :  { %v772_v22 = vld [vmem:[%s1210_s0 + $0x40] sm:$0xff]   ;;  %v773_v23 = vld [vmem:[%s1210_s0 + $0xa8] sm:$0xff]   ;;  %v775_v25 = vld [vmem:[%s1210_s0 + $0xb0] sm:$0xff]  }
   0x8   :  { %651 = vmatmul.mubr.msk.bf16.vlgmr.msra.gmra.mxu0 %vm201_vm3, %v756_v5  ;;  %703 = vmatmul.mubr.msk.bf16.vlgmr.msra.gmra.mxu1 %vm201_vm3, %v757_v7  ;;  %v774_v24 = vld [vmem:[%s1210_s0 + $0x48] sm:$0xff]   ;;  %v776_v26 = vld [vmem:[%s1210_s0 + $0x50] sm:$0xff]   ;;  %v777_v27 = vld [vmem:[%s1210_s0 + $0xb8] sm:$0xff]  }
   0x9   :  { %654 = vmatprep.mubr.msk.bf16.mxu0 %vm783_vm2, %v781_v0  ;;  %706 = vmatprep.mubr.msk.bf16.mxu1 %vm783_vm2, %v781_v0  ;;  %v778_v28 = vld [vmem:[%s1210_s0 + $0x58] sm:$0xff]   ;;  %v779_v29 = vld [vmem:[%s1210_s0 + $0xc0] ss:$0 sps:$4 sm:$0xff]  }
   0xa   :  { %v780_v30 = vld [vmem:[%s1210_s0 + $0x60] sm:$0xff]  }
   0xb   :  { %v962_v31 = vld [vmem:[%s1211_s2] ss:$0 sm:$0xff] }
  0x10   :  { %655 = vmatmul.mubr.msk.bf16.gmra.mxu0 %vm201_vm3, %v758_v8  ;;  %707 = vmatmul.mubr.msk.bf16.gmra.mxu1 %vm201_vm3, %v759_v9 }
  0x11   :  { %658 = vmatprep.mubr.msk.bf16.mxu0 %vm783_vm2, %v781_v0  ;;  %710 = vmatprep.mubr.msk.bf16.mxu1 %vm783_vm2, %v781_v0 }
  0x18   :  { %659 = vmatmul.mubr.msk.bf16.gmra.mxu0 %vm201_vm3, %v760_v10  ;;  %711 = vmatmul.mubr.msk.bf16.gmra.mxu1 %vm201_vm3, %v761_v11 }
  0x19   :  { %662 = vmatprep.mubr.msk.bf16.mxu0 %vm783_vm2, %v781_v0  ;;  %714 = vmatprep.mubr.msk.bf16.mxu1 %vm783_vm2, %v781_v0 }
  0x20   :  { %663 = vmatmul.mubr.msk.bf16.gmra.mxu0 %vm201_vm3, %v762_v12  ;;  %715 = vmatmul.mubr.msk.bf16.gmra.mxu1 %vm201_vm3, %v763_v13 }
  0x21   :  { %666 = vmatprep.mubr.msk.bf16.mxu0 %vm783_vm2, %v781_v0  ;;  %718 = vmatprep.mubr.msk.bf16.mxu1 %vm783_vm2, %v781_v0 }
  0x28   :  { %667 = vmatmul.mubr.msk.bf16.gmra.mxu0 %vm201_vm3, %v764_v14  ;;  %719 = vmatmul.mubr.msk.bf16.gmra.mxu1 %vm201_vm3, %v765_v15 }
  0x29   :  { %670 = vmatprep.mubr.msk.bf16.mxu0 %vm783_vm2, %v781_v0  ;;  %722 = vmatprep.mubr.msk.bf16.mxu1 %vm783_vm2, %v781_v0 }
  0x30   :  { %671 = vmatmul.mubr.msk.bf16.gmra.mxu0 %vm201_vm3, %v766_v16  ;;  %723 = vmatmul.mubr.msk.bf16.gmra.mxu1 %vm201_vm3, %v767_v17 }
  0x31   :  { %674 = vmatprep.mubr.msk.bf16.mxu0 %vm783_vm2, %v781_v0  ;;  %726 = vmatprep.mubr.msk.bf16.mxu1 %vm783_vm2, %v781_v0 }
  0x38   :  { %675 = vmatmul.mubr.msk.bf16.gmra.mxu0 %vm201_vm3, %v768_v18  ;;  %727 = vmatmul.mubr.msk.bf16.gmra.mxu1 %vm201_vm3, %v769_v19 }
  0x39   :  { %678 = vmatprep.mubr.msk.bf16.mxu0 %vm783_vm2, %v781_v0  ;;  %730 = vmatprep.mubr.msk.bf16.mxu1 %vm783_vm2, %v781_v0 }
  0x40   :  { %679 = vmatmul.mubr.msk.bf16.gmra.mxu0 %vm201_vm3, %v770_v20  ;;  %731 = vmatmul.mubr.msk.bf16.gmra.mxu1 %vm201_vm3, %v771_v21 }
  0x41   :  { %682 = vmatprep.mubr.msk.bf16.mxu0 %vm783_vm2, %v781_v0  ;;  %734 = vmatprep.mubr.msk.bf16.mxu1 %vm783_vm2, %v781_v0 }
  0x48   :  { %683 = vmatmul.mubr.msk.bf16.gmra.mxu0 %vm201_vm3, %v772_v22  ;;  %735 = vmatmul.mubr.msk.bf16.gmra.mxu1 %vm201_vm3, %v773_v23 }
  0x49   :  { %686 = vmatprep.mubr.msk.bf16.mxu0 %vm783_vm2, %v781_v0  ;;  %738 = vmatprep.mubr.msk.bf16.mxu1 %vm783_vm2, %v781_v0 }
  0x50   :  { %687 = vmatmul.mubr.msk.bf16.gmra.mxu0 %vm201_vm3, %v774_v24  ;;  %739 = vmatmul.mubr.msk.bf16.gmra.mxu1 %vm201_vm3, %v775_v25 }
  0x51   :  { %690 = vmatprep.mubr.msk.bf16.mxu0 %vm783_vm2, %v781_v0  ;;  %742 = vmatprep.mubr.msk.bf16.mxu1 %vm783_vm2, %v781_v0 }
  0x58   :  { %691 = vmatmul.mubr.msk.bf16.gmra.mxu0 %vm201_vm3, %v776_v26  ;;  %743 = vmatmul.mubr.msk.bf16.gmra.mxu1 %vm201_vm3, %v777_v27 }
  0x59   :  { %694 = vmatprep.mubr.msk.bf16.mxu0 %vm783_vm2, %v781_v0  ;;  %746 = vmatprep.mubr.msk.bf16.mxu1 %vm783_vm2, %v781_v0 }
  0x60   :  { %695 = vmatmul.mubr.msk.bf16.gmra.mxu0 %vm201_vm3, %v778_v28  ;;  %747 = vmatmul.mubr.msk.bf16.gmra.mxu1 %vm201_vm3, %v779_v29 }
  0x61   :  { %698 = vmatprep.mubr.msk.bf16.mxu0 %vm783_vm2, %v781_v0 }
  0x68   :  { %699 = vmatmul.mubr.msk.bf16.gmra.mxu0 %vm201_vm3, %v780_v30 }
  0xc8   :  { %v318_v32 = vpop.f32.mrf.mxu0  ;;  %v422_v33 = vpop.f32.mrf.mxu1 }
  0xc9   :  { %v319_v34 = vadd.f32 %v962_v31, %v318_v32  ;;  %v423_v35 = vadd.f32 %v962_v31, %v422_v33 }
  0xca   :  { %v652_v36 = vpop.f32.mrf.mxu0  ;;  %v704_v37 = vpop.f32.mrf.mxu1 }
  0xcb   :  { %517 = vst.msk [vmem:[%s1212_s3] sm:$0xff] %vm516_vm4, %v319_v34  ;;  %543 = vst.msk [vmem:[%s1212_s3 + $0xd0] sm:$0xff] %vm516_vm4, %v423_v35 }
  0xcc   :  { %v321_v38 = vpop.f32.mrf.mxu0  ;;  %v425_v39 = vpop.f32.mrf.mxu1 }
  0xcd   :  { %v322_v40 = vadd.f32 %v962_v31, %v321_v38  ;;  %v426_v41 = vadd.f32 %v962_v31, %v425_v39 }
  0xce   :  { %v653_v42 = vpop.f32.mrf.mxu0  ;;  %v705_v43 = vpop.f32.mrf.mxu1 }
  0xcf   :  { %518 = vst.msk [vmem:[%s1212_s3 + $0x8] sm:$0xff] %vm516_vm4, %v322_v40  ;;  %544 = vst.msk [vmem:[%s1212_s3 + $0xd8] sm:$0xff] %vm516_vm4, %v426_v41 }
  0xd0   :  { %v326_v44 = vpop.f32.mrf.mxu0  ;;  %v430_v45 = vpop.f32.mrf.mxu1 }
  0xd1   :  { %v327_v46 = vadd.f32 %v962_v31, %v326_v44  ;;  %v431_v47 = vadd.f32 %v962_v31, %v430_v45 }
  0xd2   :  { %v656_v48 = vpop.f32.mrf.mxu0  ;;  %v708_v49 = vpop.f32.mrf.mxu1 }
  0xd3   :  { %519 = vst.msk [vmem:[%s1212_s3 + $0x10] sm:$0xff] %vm516_vm4, %v327_v46  ;;  %545 = vst.msk [vmem:[%s1212_s3 + $0xe0] sm:$0xff] %vm516_vm4, %v431_v47 }
  0xd4   :  { %v329_v50 = vpop.f32.mrf.mxu0  ;;  %v433_v51 = vpop.f32.mrf.mxu1 }
  0xd5   :  { %v330_v52 = vadd.f32 %v962_v31, %v329_v50  ;;  %v434_v53 = vadd.f32 %v962_v31, %v433_v51 }
  0xd6   :  { %v657_v54 = vpop.f32.mrf.mxu0  ;;  %v709_v55 = vpop.f32.mrf.mxu1 }
  0xd7   :  { %520 = vst.msk [vmem:[%s1212_s3 + $0x18] sm:$0xff] %vm516_vm4, %v330_v52  ;;  %546 = vst.msk [vmem:[%s1212_s3 + $0xe8] sm:$0xff] %vm516_vm4, %v434_v53 }
  0xd8   :  { %v334_v56 = vpop.f32.mrf.mxu0  ;;  %v438_v57 = vpop.f32.mrf.mxu1 }
  0xd9   :  { %v335_v58 = vadd.f32 %v962_v31, %v334_v56  ;;  %v439_v59 = vadd.f32 %v962_v31, %v438_v57 }
  0xda   :  { %v660_v60 = vpop.f32.mrf.mxu0  ;;  %v712_v61 = vpop.f32.mrf.mxu1 }
  0xdb   :  { %521 = vst.msk [vmem:[%s1212_s3 + $0x20] sm:$0xff] %vm516_vm4, %v335_v58  ;;  %547 = vst.msk [vmem:[%s1212_s3 + $0xf0] sm:$0xff] %vm516_vm4, %v439_v59 }
  0xdc   :  { %v337_v62 = vpop.f32.mrf.mxu0  ;;  %v441_v63 = vpop.f32.mrf.mxu1 }
  0xdd   :  { %v338_v0 = vadd.f32 %v962_v31, %v337_v62  ;;  %v442_v1 = vadd.f32 %v962_v31, %v441_v63 }
  0xde   :  { %v661_v2 = vpop.f32.mrf.mxu0  ;;  %v713_v3 = vpop.f32.mrf.mxu1 }
  0xdf   :  { %522 = vst.msk [vmem:[%s1212_s3 + $0x28] sm:$0xff] %vm516_vm4, %v338_v0  ;;  %548 = vst.msk [vmem:[%s1212_s3 + $0xf8] sm:$0xff] %vm516_vm4, %v442_v1 }
  0xe0   :  { %v342_v4 = vpop.f32.mrf.mxu0  ;;  %v446_v5 = vpop.f32.mrf.mxu1 }
  0xe1   :  { %v343_v6 = vadd.f32 %v962_v31, %v342_v4  ;;  %v447_v7 = vadd.f32 %v962_v31, %v446_v5 }
  0xe2   :  { %v664_v8 = vpop.f32.mrf.mxu0  ;;  %v716_v9 = vpop.f32.mrf.mxu1 }
  0xe3   :  { %523 = vst.msk [vmem:[%s1212_s3 + $0x30] sm:$0xff] %vm516_vm4, %v343_v6  ;;  %549 = vst.msk [vmem:[%s1212_s3 + $0x100] sm:$0xff] %vm516_vm4, %v447_v7 }
  0xe4   :  { %v345_v10 = vpop.f32.mrf.mxu0  ;;  %v449_v11 = vpop.f32.mrf.mxu1 }
  0xe5   :  { %v346_v12 = vadd.f32 %v962_v31, %v345_v10  ;;  %v450_v13 = vadd.f32 %v962_v31, %v449_v11 }
  0xe6   :  { %v665_v14 = vpop.f32.mrf.mxu0  ;;  %v717_v15 = vpop.f32.mrf.mxu1 }
  0xe7   :  { %524 = vst.msk [vmem:[%s1212_s3 + $0x38] sm:$0xff] %vm516_vm4, %v346_v12  ;;  %550 = vst.msk [vmem:[%s1212_s3 + $0x108] sm:$0xff] %vm516_vm4, %v450_v13 }
  0xe8   :  { %v350_v16 = vpop.f32.mrf.mxu0  ;;  %v454_v17 = vpop.f32.mrf.mxu1 }
  0xe9   :  { %v351_v18 = vadd.f32 %v962_v31, %v350_v16  ;;  %v455_v19 = vadd.f32 %v962_v31, %v454_v17 }
  0xea   :  { %v668_v20 = vpop.f32.mrf.mxu0  ;;  %v720_v21 = vpop.f32.mrf.mxu1 }
  0xeb   :  { %525 = vst.msk [vmem:[%s1212_s3 + $0x40] sm:$0xff] %vm516_vm4, %v351_v18  ;;  %551 = vst.msk [vmem:[%s1212_s3 + $0x110] sm:$0xff] %vm516_vm4, %v455_v19 }
  0xec   :  { %v353_v22 = vpop.f32.mrf.mxu0  ;;  %v457_v23 = vpop.f32.mrf.mxu1 }
  0xed   :  { %v354_v24 = vadd.f32 %v962_v31, %v353_v22  ;;  %v458_v25 = vadd.f32 %v962_v31, %v457_v23 }
  0xee   :  { %v669_v26 = vpop.f32.mrf.mxu0  ;;  %v721_v27 = vpop.f32.mrf.mxu1 }
  0xef   :  { %526 = vst.msk [vmem:[%s1212_s3 + $0x48] sm:$0xff] %vm516_vm4, %v354_v24  ;;  %552 = vst.msk [vmem:[%s1212_s3 + $0x118] sm:$0xff] %vm516_vm4, %v458_v25 }
  0xf0   :  { %v358_v28 = vpop.f32.mrf.mxu0  ;;  %v462_v29 = vpop.f32.mrf.mxu1 }
  0xf1   :  { %v359_v30 = vadd.f32 %v962_v31, %v358_v28  ;;  %v463_v32 = vadd.f32 %v962_v31, %v462_v29 }
  0xf2   :  { %v672_v33 = vpop.f32.mrf.mxu0  ;;  %v724_v34 = vpop.f32.mrf.mxu1 }
  0xf3   :  { %527 = vst.msk [vmem:[%s1212_s3 + $0x50] sm:$0xff] %vm516_vm4, %v359_v30  ;;  %553 = vst.msk [vmem:[%s1212_s3 + $0x120] sm:$0xff] %vm516_vm4, %v463_v32 }
  0xf4   :  { %v361_v35 = vpop.f32.mrf.mxu0  ;;  %v465_v36 = vpop.f32.mrf.mxu1 }
  0xf5   :  { %v362_v37 = vadd.f32 %v962_v31, %v361_v35  ;;  %v466_v38 = vadd.f32 %v962_v31, %v465_v36 }
  0xf6   :  { %v673_v39 = vpop.f32.mrf.mxu0  ;;  %v725_v40 = vpop.f32.mrf.mxu1 }
  0xf7   :  { %528 = vst.msk [vmem:[%s1212_s3 + $0x58] sm:$0xff] %vm516_vm4, %v362_v37  ;;  %554 = vst.msk [vmem:[%s1212_s3 + $0x128] sm:$0xff] %vm516_vm4, %v466_v38 }
  0xf8   :  { %v366_v41 = vpop.f32.mrf.mxu0  ;;  %v470_v42 = vpop.f32.mrf.mxu1 }
  0xf9   :  { %v367_v43 = vadd.f32 %v962_v31, %v366_v41  ;;  %v471_v44 = vadd.f32 %v962_v31, %v470_v42 }
  0xfa   :  { %v676_v45 = vpop.f32.mrf.mxu0  ;;  %v728_v46 = vpop.f32.mrf.mxu1 }
  0xfb   :  { %529 = vst.msk [vmem:[%s1212_s3 + $0x60] sm:$0xff] %vm516_vm4, %v367_v43  ;;  %555 = vst.msk [vmem:[%s1212_s3 + $0x130] sm:$0xff] %vm516_vm4, %v471_v44 }
  0xfc   :  { %v369_v47 = vpop.f32.mrf.mxu0  ;;  %v473_v48 = vpop.f32.mrf.mxu1 }
  0xfd   :  { %v370_v49 = vadd.f32 %v962_v31, %v369_v47  ;;  %v474_v50 = vadd.f32 %v962_v31, %v473_v48 }
  0xfe   :  { %v677_v51 = vpop.f32.mrf.mxu0  ;;  %v729_v52 = vpop.f32.mrf.mxu1 }
  0xff   :  { %530 = vst.msk [vmem:[%s1212_s3 + $0x68] sm:$0xff] %vm516_vm4, %v370_v49  ;;  %556 = vst.msk [vmem:[%s1212_s3 + $0x138] sm:$0xff] %vm516_vm4, %v474_v50 }
 0x100   :  { %v374_v53 = vpop.f32.mrf.mxu0  ;;  %v478_v54 = vpop.f32.mrf.mxu1 }
 0x101   :  { %v375_v55 = vadd.f32 %v962_v31, %v374_v53  ;;  %v479_v56 = vadd.f32 %v962_v31, %v478_v54 }
 0x102   :  { %v680_v57 = vpop.f32.mrf.mxu0  ;;  %v732_v58 = vpop.f32.mrf.mxu1 }
 0x103   :  { %531 = vst.msk [vmem:[%s1212_s3 + $0x70] sm:$0xff] %vm516_vm4, %v375_v55  ;;  %557 = vst.msk [vmem:[%s1212_s3 + $0x140] sm:$0xff] %vm516_vm4, %v479_v56 }
 0x104   :  { %v377_v59 = vpop.f32.mrf.mxu0  ;;  %v481_v60 = vpop.f32.mrf.mxu1 }
 0x105   :  { %v378_v61 = vadd.f32 %v962_v31, %v377_v59  ;;  %v482_v62 = vadd.f32 %v962_v31, %v481_v60 }
 0x106   :  { %v681_v63 = vpop.f32.mrf.mxu0  ;;  %v733_v0 = vpop.f32.mrf.mxu1 }
 0x107   :  { %532 = vst.msk [vmem:[%s1212_s3 + $0x78] sm:$0xff] %vm516_vm4, %v378_v61  ;;  %558 = vst.msk [vmem:[%s1212_s3 + $0x148] sm:$0xff] %vm516_vm4, %v482_v62 }
 0x108   :  { %v382_v1 = vpop.f32.mrf.mxu0  ;;  %v486_v2 = vpop.f32.mrf.mxu1 }
 0x109   :  { %v383_v3 = vadd.f32 %v962_v31, %v382_v1  ;;  %v487_v4 = vadd.f32 %v962_v31, %v486_v2 }
 0x10a   :  { %v684_v5 = vpop.f32.mrf.mxu0  ;;  %v736_v6 = vpop.f32.mrf.mxu1 }
 0x10b   :  { %533 = vst.msk [vmem:[%s1212_s3 + $0x80] sm:$0xff] %vm516_vm4, %v383_v3  ;;  %559 = vst.msk [vmem:[%s1212_s3 + $0x150] sm:$0xff] %vm516_vm4, %v487_v4 }
 0x10c   :  { %v385_v7 = vpop.f32.mrf.mxu0  ;;  %v489_v8 = vpop.f32.mrf.mxu1 }
 0x10d   :  { %v386_v9 = vadd.f32 %v962_v31, %v385_v7  ;;  %v490_v10 = vadd.f32 %v962_v31, %v489_v8 }
 0x10e   :  { %v685_v11 = vpop.f32.mrf.mxu0  ;;  %v737_v12 = vpop.f32.mrf.mxu1 }
 0x10f   :  { %534 = vst.msk [vmem:[%s1212_s3 + $0x88] sm:$0xff] %vm516_vm4, %v386_v9  ;;  %560 = vst.msk [vmem:[%s1212_s3 + $0x158] sm:$0xff] %vm516_vm4, %v490_v10 }
 0x110   :  { %v390_v13 = vpop.f32.mrf.mxu0  ;;  %v494_v14 = vpop.f32.mrf.mxu1 }
 0x111   :  { %v391_v15 = vadd.f32 %v962_v31, %v390_v13  ;;  %v495_v16 = vadd.f32 %v962_v31, %v494_v14 }
 0x112   :  { %v688_v17 = vpop.f32.mrf.mxu0  ;;  %v740_v18 = vpop.f32.mrf.mxu1 }
 0x113   :  { %535 = vst.msk [vmem:[%s1212_s3 + $0x90] sm:$0xff] %vm516_vm4, %v391_v15  ;;  %561 = vst.msk [vmem:[%s1212_s3 + $0x160] sm:$0xff] %vm516_vm4, %v495_v16 }
 0x114   :  { %v393_v19 = vpop.f32.mrf.mxu0  ;;  %v497_v20 = vpop.f32.mrf.mxu1 }
 0x115   :  { %v394_v21 = vadd.f32 %v962_v31, %v393_v19  ;;  %v498_v22 = vadd.f32 %v962_v31, %v497_v20 }
 0x116   :  { %v689_v23 = vpop.f32.mrf.mxu0  ;;  %v741_v24 = vpop.f32.mrf.mxu1 }
 0x117   :  { %536 = vst.msk [vmem:[%s1212_s3 + $0x98] sm:$0xff] %vm516_vm4, %v394_v21  ;;  %562 = vst.msk [vmem:[%s1212_s3 + $0x168] sm:$0xff] %vm516_vm4, %v498_v22 }
 0x118   :  { %v398_v25 = vpop.f32.mrf.mxu0  ;;  %v502_v26 = vpop.f32.mrf.mxu1 }
 0x119   :  { %v399_v27 = vadd.f32 %v962_v31, %v398_v25  ;;  %v503_v28 = vadd.f32 %v962_v31, %v502_v26 }
 0x11a   :  { %v692_v29 = vpop.f32.mrf.mxu0  ;;  %v744_v30 = vpop.f32.mrf.mxu1 }
 0x11b   :  { %537 = vst.msk [vmem:[%s1212_s3 + $0xa0] sm:$0xff] %vm516_vm4, %v399_v27  ;;  %563 = vst.msk [vmem:[%s1212_s3 + $0x170] sm:$0xff] %vm516_vm4, %v503_v28 }
 0x11c   :  { %v401_v32 = vpop.f32.mrf.mxu0  ;;  %v505_v33 = vpop.f32.mrf.mxu1 }
 0x11d   :  { %v402_v34 = vadd.f32 %v962_v31, %v401_v32  ;;  %v506_v35 = vadd.f32 %v962_v31, %v505_v33 }
 0x11e   :  { %v693_v36 = vpop.f32.mrf.mxu0  ;;  %v745_v37 = vpop.f32.mrf.mxu1 }
 0x11f   :  { %538 = vst.msk [vmem:[%s1212_s3 + $0xa8] sm:$0xff] %vm516_vm4, %v402_v34  ;;  %564 = vst.msk [vmem:[%s1212_s3 + $0x178] sm:$0xff] %vm516_vm4, %v506_v35 }
 0x120   :  { %v406_v38 = vpop.f32.mrf.mxu0  ;;  %v510_v39 = vpop.f32.mrf.mxu1 }
 0x121   :  { %v407_v40 = vadd.f32 %v962_v31, %v406_v38  ;;  %v511_v41 = vadd.f32 %v962_v31, %v510_v39 }
 0x122   :  { %v696_v42 = vpop.f32.mrf.mxu0  ;;  %v748_v43 = vpop.f32.mrf.mxu1 }
 0x123   :  { %539 = vst.msk [vmem:[%s1212_s3 + $0xb0] sm:$0xff] %vm516_vm4, %v407_v40  ;;  %565 = vst.msk [vmem:[%s1212_s3 + $0x180] sm:$0xff] %vm516_vm4, %v511_v41 }
 0x124   :  { %v409_v44 = vpop.f32.mrf.mxu0  ;;  %v513_v45 = vpop.f32.mrf.mxu1 }
 0x125   :  { %v410_v46 = vadd.f32 %v962_v31, %v409_v44 }
 0x126   :  { %v697_v47 = vpop.f32.mrf.mxu0  ;;  %v749_v48 = vpop.f32.mrf.mxu1 }
 0x127   :  { %540 = vst.msk [vmem:[%s1212_s3 + $0xb8] sm:$0xff] %vm516_vm4, %v410_v46 }
 0x128   :  { %v414_v49 = vpop.f32.mrf.mxu0 }
 0x129   :  { %v415_v50 = vadd.f32 %v962_v31, %v414_v49 }
 0x12a   :  { %v700_v51 = vpop.f32.mrf.mxu0 }
 0x12b   :  { %541 = vst.msk [vmem:[%s1212_s3 + $0xc0] sm:$0xff] %vm516_vm4, %v415_v50 }
 0x12c   :  { %v417_v52 = vpop.f32.mrf.mxu0 }
 0x12d   :  { %v418_v53 = vadd.f32 %v962_v31, %v417_v52 }
 0x12e   :  { %v701_v54 = vpop.f32.mrf.mxu0 }
 0x12f   :  { %542 = vst.msk [vmem:[%s1212_s3 + $0xc8] sm:$0xff] %vm516_vm4, %v418_v53 }

// kernel: probies_forward.6
= control target key start
LH: loop header
LB: loop body
LE: loop exit
PB: predicated region body
PF: predicated region fallthrough
CT: control target
= control target key end

     0   :  { %vm1185_vm0 = vcmask 1041409   ;;  %vm1188_vm1 = vcmask 1042434   ;;  %vm1191_vm2 = vcmask 1043459   ;;  %vm1194_vm3 = vcmask 1044484   ;;  %s2129_s0 = inlined_call_operand.vmem [shape: f32[14,2,7,2,32], index: 0, kind: input, shape index: {}]   ;;  %s2130_s1 = inlined_call_operand.vmem [shape: f32[14,7,32], index: 1, kind: output, shape index: {}]  }
   0x1   :  { %v8_v0 = vld [vmem:[%s2129_s0] sm:$0x3]  ;;  %v9_v1 = vld [vmem:[%s2129_s0 + $0x2] sm:$0x3]  ;;  %v10_v2 = vld [vmem:[%s2129_s0 + $0x4] sm:$0x3] }
   0x2   :  { %v11_v3 = vld [vmem:[%s2129_s0 + $0x6] sm:$0x3]  ;;  %v12_v4 = vld [vmem:[%s2129_s0 + $0x8] sm:$0x3]  ;;  %v13_v5 = vld [vmem:[%s2129_s0 + $0xa] sm:$0x3] }
   0x3   :  { %v14_v6 = vld [vmem:[%s2129_s0 + $0xc] sm:$0x3]  ;;  %v15_v7 = vld [vmem:[%s2129_s0 + $0xe] sm:$0x3]  ;;  %v16_v8 = vld [vmem:[%s2129_s0 + $0x10] sm:$0x3] }
   0x4   :  { %v17_v9 = vld [vmem:[%s2129_s0 + $0x12] sm:$0x3]  ;;  %v18_v10 = vld [vmem:[%s2129_s0 + $0x14] sm:$0x3]  ;;  %v302_v11 = vrot.slane %v8_v0, 1  ;;  %v303_v12 = vrot.slane %v9_v1, 1 }
   0x5   :  { %v19_v13 = vld [vmem:[%s2129_s0 + $0x16] sm:$0x3]  ;;  %v304_v14 = vrot.slane %v10_v2, 1  ;;  %v305_v15 = vrot.slane %v11_v3, 1  ;;  %v306_v16 = vrot.slane %v12_v4, 1  ;;  %v307_v17 = vrot.slane %v13_v5, 1 }
   0x6   :  { %v20_v18 = vld [vmem:[%s2129_s0 + $0x18] sm:$0x3]  ;;  %v21_v19 = vld [vmem:[%s2129_s0 + $0x1a] sm:$0x3]  ;;  %v308_v20 = vrot.slane %v14_v6, 1  ;;  %v498_v21 = vmax.f32 %v8_v0, %v302_v11  ;;  %v499_v22 = vmax.f32 %v9_v1, %v303_v12  ;;  %v694_v23 = vrot.slane %v15_v7, 1 }
   0x7   :  { %v500_v24 = vmax.f32 %v10_v2, %v304_v14  ;;  %v501_v25 = vmax.f32 %v11_v3, %v305_v15  ;;  %v502_v26 = vmax.f32 %v12_v4, %v306_v16  ;;  %v503_v27 = vmax.f32 %v13_v5, %v307_v17  ;;  %v22_v43 = vld [vmem:[%s2129_s0 + $0x1c] sm:$0x3]  ;;  %v23_v44 = vld [vmem:[%s2129_s0 + $0x1e] sm:$0x3]  ;;  %v24_v48 = vld [vmem:[%s2129_s0 + $0x20] sm:$0x3] }
   0x8   :  { %v504_v28 = vmax.f32 %v14_v6, %v308_v20  ;;  %v695_v29 = vrot.slane %v16_v8, 1  ;;  %v696_v30 = vrot.slane %v17_v9, 1  ;;  %v697_v31 = vrot.slane %v18_v10, 1  ;;  %v25_v49 = vld [vmem:[%s2129_s0 + $0x22] sm:$0x3] }
   0x9   :  { %v698_v32 = vrot.slane %v19_v13, 1  ;;  %v699_v33 = vrot.slane %v20_v18, 1  ;;  %v700_v34 = vrot.slane %v21_v19, 1  ;;  %v890_v35 = vmax.f32 %v15_v7, %v694_v23  ;;  %v26_v53 = vld [vmem:[%s2129_s0 + $0x24] sm:$0x3] }
   0xa   :  { %v891_v36 = vmax.f32 %v16_v8, %v695_v29  ;;  %v892_v37 = vmax.f32 %v17_v9, %v696_v30  ;;  %v893_v38 = vmax.f32 %v18_v10, %v697_v31  ;;  %vm1197_vm4 = vcmask 1045509   ;;  %v27_v54 = vld [vmem:[%s2129_s0 + $0x26] sm:$0x3]  ;;  %v28_v58 = vld [vmem:[%s2129_s0 + $0x28] sm:$0x3] }
   0xb   :  { %v894_v39 = vmax.f32 %v19_v13, %v698_v32  ;;  %v895_v40 = vmax.f32 %v20_v18, %v699_v33  ;;  %v896_v41 = vmax.f32 %v21_v19, %v700_v34  ;;  %v988_v42 = vmax.f32 %v498_v21, %v890_v35  ;;  %v29_v1 = vld [vmem:[%s2129_s0 + $0x2a] sm:$0x3]  ;;  %v30_v6 = vld [vmem:[%s2129_s0 + $0x2c] sm:$0x3]  ;;  %v31_v7 = vld [vmem:[%s2129_s0 + $0x2e] sm:$0x3] }
   0xc   :  { %v989_v45 = vmax.f32 %v499_v22, %v891_v36  ;;  %v990_v46 = vmax.f32 %v500_v24, %v892_v37  ;;  %v991_v47 = vmax.f32 %v501_v25, %v893_v38  ;;  %vm1200_vm5 = vcmask 1046534   ;;  %v32_v12 = vld [vmem:[%s2129_s0 + $0x30] sm:$0x3]  ;;  %v33_v13 = vld [vmem:[%s2129_s0 + $0x32] sm:$0x3] }
   0xd   :  { %v992_v50 = vmax.f32 %v502_v26, %v894_v39  ;;  %v993_v51 = vmax.f32 %v503_v27, %v895_v40  ;;  %v994_v52 = vmax.f32 %v504_v28, %v896_v41  ;;  %vm1372_vm6 = vcmask 260096   ;;  %v34_v14 = vld [vmem:[%s2129_s0 + $0x34] sm:$0x3]  ;;  %v35_v19 = vld [vmem:[%s2129_s0 + $0x36] sm:$0x3] }
   0xe   :  { %v1184_v55 = vrot.slane %v989_v45, 7  ;;  %v1187_v56 = vrot.slane %v990_v46, 6  ;;  %v1190_v57 = vrot.slane %v991_v47, 5  ;;  %v309_v59 = vrot.slane %v22_v43, 1  ;;  %v36_v27 = vld [vmem:[%s2129_s0 + $0x38] sm:$0x3] }
   0xf   :  { %v1193_v60 = vrot.slane %v992_v50, 4  ;;  %v1196_v61 = vrot.slane %v993_v51, 3  ;;  %v1199_v62 = vrot.slane %v994_v52, 2  ;;  %v310_v63 = vrot.slane %v23_v44, 1  ;;  %v37_v36 = vld [vmem:[%s2129_s0 + $0x3a] sm:$0x3] }
  0x10   :  { %v1186_v0 = vsel %vm1185_vm0, %v1184_v55, %v988_v42  ;;  %v311_v2 = vrot.slane %v24_v48, 1  ;;  %v312_v3 = vrot.slane %v25_v49, 1  ;;  %v313_v4 = vrot.slane %v26_v53, 1  ;;  %v38_v40 = vld [vmem:[%s2129_s0 + $0x3c] sm:$0x3] }
  0x11   :  { %v1189_v5 = vsel %vm1188_vm1, %v1187_v56, %v1186_v0  ;;  %v314_v8 = vrot.slane %v27_v54, 1  ;;  %v315_v9 = vrot.slane %v28_v58, 1  ;;  %v505_v10 = vmax.f32 %v22_v43, %v309_v59  ;;  %v39_v46 = vld [vmem:[%s2129_s0 + $0x3e] sm:$0x3]  ;;  %v40_v50 = vld [vmem:[%s2129_s0 + $0x40] sm:$0x3] }
  0x12   :  { %v1192_v11 = vsel %vm1191_vm2, %v1190_v57, %v1189_v5  ;;  %v506_v15 = vmax.f32 %v23_v44, %v310_v63  ;;  %v507_v16 = vmax.f32 %v24_v48, %v311_v2  ;;  %v508_v17 = vmax.f32 %v25_v49, %v312_v3  ;;  %v41_v51 = vld [vmem:[%s2129_s0 + $0x42] sm:$0x3]  ;;  %v42_v56 = vld [vmem:[%s2129_s0 + $0x44] sm:$0x3]  ;;  %v45_v5 = vld [vmem:[%s2129_s0 + $0x4a] sm:$0x3] }
  0x13   :  { %v1195_v18 = vsel %vm1194_vm3, %v1193_v60, %v1192_v11  ;;  %v509_v20 = vmax.f32 %v26_v53, %v313_v4  ;;  %v510_v21 = vmax.f32 %v27_v54, %v314_v8  ;;  %v511_v22 = vmax.f32 %v28_v58, %v315_v9  ;;  %v47_v11 = vld [vmem:[%s2129_s0 + $0x4e] sm:$0x3] }
  0x14   :  { %v1198_v23 = vsel %vm1197_vm4, %v1196_v61, %v1195_v18  ;;  %v701_v24 = vrot.slane %v29_v1, 1  ;;  %v702_v25 = vrot.slane %v30_v6, 1  ;;  %v703_v26 = vrot.slane %v31_v7, 1  ;;  %v43_v61 = vld [vmem:[%s2129_s0 + $0x46] sm:$0x3] }
  0x15   :  { %v1201_v28 = vsel %vm1200_vm5, %v1199_v62, %v1198_v23  ;;  %v704_v29 = vrot.slane %v32_v12, 1  ;;  %v705_v30 = vrot.slane %v33_v13, 1  ;;  %v706_v31 = vrot.slane %v34_v14, 1 }
  0x16   :  { %1373 = vst.msk [vmem:[%s2130_s1] sm:$0x7f] %vm1372_vm6, %v1201_v28  ;;  %v707_v32 = vrot.slane %v35_v19, 1  ;;  %v897_v33 = vmax.f32 %v29_v1, %v701_v24  ;;  %v898_v34 = vmax.f32 %v30_v6, %v702_v25  ;;  %v899_v35 = vmax.f32 %v31_v7, %v703_v26  ;;  %v44_v1 = vld [vmem:[%s2129_s0 + $0x48] sm:$0x3] }
  0x17   :  { %v900_v37 = vmax.f32 %v32_v12, %v704_v29  ;;  %v901_v38 = vmax.f32 %v33_v13, %v705_v30  ;;  %v902_v39 = vmax.f32 %v34_v14, %v706_v31  ;;  %v316_v41 = vrot.slane %v36_v27, 1  ;;  %v46_v6 = vld [vmem:[%s2129_s0 + $0x4c] sm:$0x3]  ;;  %v48_v12 = vld [vmem:[%s2129_s0 + $0x50] sm:$0x3] }
  0x18   :  { %v903_v42 = vmax.f32 %v35_v19, %v707_v32  ;;  %v995_v43 = vmax.f32 %v505_v10, %v897_v33  ;;  %v996_v44 = vmax.f32 %v506_v15, %v898_v34  ;;  %v997_v45 = vmax.f32 %v507_v16, %v899_v35  ;;  %v49_v13 = vld [vmem:[%s2129_s0 + $0x52] sm:$0x3]  ;;  %v50_v25 = vld [vmem:[%s2129_s0 + $0x54] sm:$0x3]  ;;  %v51_v34 = vld [vmem:[%s2129_s0 + $0x56] sm:$0x3] }
  0x19   :  { %v998_v47 = vmax.f32 %v508_v17, %v900_v37  ;;  %v999_v48 = vmax.f32 %v509_v20, %v901_v38  ;;  %v1000_v49 = vmax.f32 %v510_v21, %v902_v39  ;;  %v317_v52 = vrot.slane %v37_v36, 1  ;;  %v52_v38 = vld [vmem:[%s2129_s0 + $0x58] sm:$0x3] }
  0x1a   :  { %v1001_v53 = vmax.f32 %v511_v22, %v903_v42  ;;  %v1202_v54 = vrot.slane %v996_v44, 7  ;;  %v1204_v55 = vrot.slane %v997_v45, 6  ;;  %v318_v57 = vrot.slane %v38_v40, 1  ;;  %v53_v44 = vld [vmem:[%s2129_s0 + $0x5a] sm:$0x3] }
  0x1b   :  { %v1206_v58 = vrot.slane %v998_v47, 5  ;;  %v1208_v59 = vrot.slane %v999_v48, 4  ;;  %v1210_v60 = vrot.slane %v1000_v49, 3  ;;  %v319_v62 = vrot.slane %v39_v46, 1  ;;  %v54_v45 = vld [vmem:[%s2129_s0 + $0x5c] sm:$0x3] }
  0x1c   :  { %v1203_v63 = vsel %vm1185_vm0, %v1202_v54, %v995_v43  ;;  %v1212_v0 = vrot.slane %v1001_v53, 2  ;;  %v320_v2 = vrot.slane %v40_v50, 1  ;;  %v321_v3 = vrot.slane %v41_v51, 1  ;;  %v55_v49 = vld [vmem:[%s2129_s0 + $0x5e] sm:$0x3] }
  0x1d   :  { %v1205_v4 = vsel %vm1188_vm1, %v1204_v55, %v1203_v63  ;;  %v322_v7 = vrot.slane %v42_v56, 1  ;;  %v512_v8 = vmax.f32 %v36_v27, %v316_v41  ;;  %v513_v9 = vmax.f32 %v37_v36, %v317_v52 }
  0x1e   :  { %v1207_v10 = vsel %vm1191_vm2, %v1206_v58, %v1205_v4  ;;  %v514_v14 = vmax.f32 %v38_v40, %v318_v57  ;;  %v515_v15 = vmax.f32 %v39_v46, %v319_v62  ;;  %v516_v16 = vmax.f32 %v40_v50, %v320_v2  ;;  %v56_v50 = vld [vmem:[%s2129_s0 + $0x60] sm:$0x3]  ;;  %v58_v62 = vld [vmem:[%s2129_s0 + $0x64] sm:$0x3]  ;;  %v60_v4 = vld [vmem:[%s2129_s0 + $0x68] sm:$0x3] }
  0x1f   :  { %v1209_v17 = vsel %vm1194_vm3, %v1208_v59, %v1207_v10  ;;  %v517_v18 = vmax.f32 %v41_v51, %v321_v3  ;;  %v518_v19 = vmax.f32 %v42_v56, %v322_v7  ;;  %v708_v20 = vrot.slane %v43_v61, 1  ;;  %v57_v59 = vld [vmem:[%s2129_s0 + $0x62] sm:$0x3]  ;;  %v59_v3 = vld [vmem:[%s2129_s0 + $0x66] sm:$0x3] }
  0x20   :  { %v1211_v21 = vsel %vm1197_vm4, %v1210_v60, %v1209_v17  ;;  %v709_v22 = vrot.slane %v44_v1, 1  ;;  %v710_v23 = vrot.slane %v45_v5, 1  ;;  %v711_v24 = vrot.slane %v46_v6, 1  ;;  %v62_v10 = vld [vmem:[%s2129_s0 + $0x6c] sm:$0x3] }
  0x21   :  { %v1213_v26 = vsel %vm1200_vm5, %v1212_v0, %v1211_v21  ;;  %v712_v27 = vrot.slane %v47_v11, 1  ;;  %v713_v28 = vrot.slane %v48_v12, 1  ;;  %v714_v29 = vrot.slane %v49_v13, 1 }
  0x22   :  { %1374 = vst.msk [vmem:[%s2130_s1 + $0x8] sm:$0x7f] %vm1372_vm6, %v1213_v26  ;;  %v904_v30 = vmax.f32 %v43_v61, %v708_v20  ;;  %v905_v31 = vmax.f32 %v44_v1, %v709_v22  ;;  %v906_v32 = vmax.f32 %v45_v5, %v710_v23  ;;  %v907_v33 = vmax.f32 %v46_v6, %v711_v24  ;;  %v61_v5 = vld [vmem:[%s2129_s0 + $0x6a] sm:$0x3]  ;;  %v64_v23 = vld [vmem:[%s2129_s0 + $0x70] sm:$0x3] }
  0x23   :  { %v908_v35 = vmax.f32 %v47_v11, %v712_v27  ;;  %v909_v36 = vmax.f32 %v48_v12, %v713_v28  ;;  %v910_v37 = vmax.f32 %v49_v13, %v714_v29  ;;  %v323_v39 = vrot.slane %v50_v25, 1  ;;  %v63_v11 = vld [vmem:[%s2129_s0 + $0x6e] sm:$0x3] }
  0x24   :  { %v1002_v40 = vmax.f32 %v512_v8, %v904_v30  ;;  %v1003_v41 = vmax.f32 %v513_v9, %v905_v31  ;;  %v1004_v42 = vmax.f32 %v514_v14, %v906_v32  ;;  %v1005_v43 = vmax.f32 %v515_v15, %v907_v33  ;;  %v65_v32 = vld [vmem:[%s2129_s0 + $0x72] sm:$0x3]  ;;  %v66_v33 = vld [vmem:[%s2129_s0 + $0x74] sm:$0x3] }
  0x25   :  { %v1006_v46 = vmax.f32 %v516_v16, %v908_v35  ;;  %v1007_v47 = vmax.f32 %v517_v18, %v909_v36  ;;  %v1008_v48 = vmax.f32 %v518_v19, %v910_v37  ;;  %v324_v51 = vrot.slane %v51_v34, 1 }
  0x26   :  { %v1214_v52 = vrot.slane %v1003_v41, 7  ;;  %v1216_v53 = vrot.slane %v1004_v42, 6  ;;  %v1218_v54 = vrot.slane %v1005_v43, 5  ;;  %v325_v55 = vrot.slane %v52_v38, 1  ;;  %v67_v42 = vld [vmem:[%s2129_s0 + $0x76] sm:$0x3] }
  0x27   :  { %v1220_v56 = vrot.slane %v1006_v46, 4  ;;  %v1222_v57 = vrot.slane %v1007_v47, 3  ;;  %v1224_v58 = vrot.slane %v1008_v48, 2  ;;  %v326_v60 = vrot.slane %v53_v44, 1  ;;  %v68_v43 = vld [vmem:[%s2129_s0 + $0x78] sm:$0x3] }
  0x28   :  { %v1215_v61 = vsel %vm1185_vm0, %v1214_v52, %v1002_v40  ;;  %v327_v63 = vrot.slane %v54_v45, 1  ;;  %v328_v0 = vrot.slane %v55_v49, 1  ;;  %v329_v1 = vrot.slane %v56_v50, 1  ;;  %v69_v46 = vld [vmem:[%s2129_s0 + $0x7a] sm:$0x3] }
  0x29   :  { %v1217_v2 = vsel %vm1188_vm1, %v1216_v53, %v1215_v61  ;;  %v519_v6 = vmax.f32 %v50_v25, %v323_v39  ;;  %v520_v7 = vmax.f32 %v51_v34, %v324_v51  ;;  %v521_v8 = vmax.f32 %v52_v38, %v325_v55  ;;  %v70_v47 = vld [vmem:[%s2129_s0 + $0x7c] sm:$0x3]  ;;  %v73_v61 = vld [vmem:[%s2129_s0 + $0x82] sm:$0x3] }
  0x2a   :  { %v1219_v9 = vsel %vm1191_vm2, %v1218_v54, %v1217_v2  ;;  %v522_v12 = vmax.f32 %v53_v44, %v326_v60  ;;  %v523_v13 = vmax.f32 %v54_v45, %v327_v63  ;;  %v524_v14 = vmax.f32 %v55_v49, %v328_v0  ;;  %v72_v60 = vld [vmem:[%s2129_s0 + $0x80] sm:$0x3]  ;;  %v74_v2 = vld [vmem:[%s2129_s0 + $0x84] sm:$0x3] }
  0x2b   :  { %v1221_v15 = vsel %vm1194_vm3, %v1220_v56, %v1219_v9  ;;  %v525_v16 = vmax.f32 %v56_v50, %v329_v1  ;;  %v715_v17 = vrot.slane %v57_v59, 1  ;;  %v716_v18 = vrot.slane %v58_v62, 1  ;;  %v71_v56 = vld [vmem:[%s2129_s0 + $0x7e] sm:$0x3]  ;;  %v77_v9 = vld [vmem:[%s2129_s0 + $0x8a] sm:$0x3] }
  0x2c   :  { %v1223_v19 = vsel %vm1197_vm4, %v1222_v57, %v1221_v15  ;;  %v717_v20 = vrot.slane %v59_v3, 1  ;;  %v718_v21 = vrot.slane %v60_v4, 1  ;;  %v719_v22 = vrot.slane %v61_v5, 1 }
  0x2d   :  { %v1225_v24 = vsel %vm1200_vm5, %v1224_v58, %v1223_v19  ;;  %v720_v25 = vrot.slane %v62_v10, 1  ;;  %v721_v26 = vrot.slane %v63_v11, 1  ;;  %v911_v27 = vmax.f32 %v57_v59, %v715_v17 }
  0x2e   :  { %1375 = vst.msk [vmem:[%s2130_s1 + $0x10] sm:$0x7f] %vm1372_vm6, %v1225_v24  ;;  %v912_v28 = vmax.f32 %v58_v62, %v716_v18  ;;  %v913_v29 = vmax.f32 %v59_v3, %v717_v20  ;;  %v914_v30 = vmax.f32 %v60_v4, %v718_v21  ;;  %v915_v31 = vmax.f32 %v61_v5, %v719_v22  ;;  %v75_v3 = vld [vmem:[%s2129_s0 + $0x86] sm:$0x3]  ;;  %v76_v4 = vld [vmem:[%s2129_s0 + $0x88] sm:$0x3] }
  0x2f   :  { %v916_v34 = vmax.f32 %v62_v10, %v720_v25  ;;  %v917_v35 = vmax.f32 %v63_v11, %v721_v26  ;;  %v1009_v36 = vmax.f32 %v519_v6, %v911_v27  ;;  %v330_v37 = vrot.slane %v64_v23, 1  ;;  %v78_v21 = vld [vmem:[%s2129_s0 + $0x8c] sm:$0x3] }
  0x30   :  { %v1010_v38 = vmax.f32 %v520_v7, %v912_v28  ;;  %v1011_v39 = vmax.f32 %v521_v8, %v913_v29  ;;  %v1012_v40 = vmax.f32 %v522_v12, %v914_v30  ;;  %v1013_v41 = vmax.f32 %v523_v13, %v915_v31  ;;  %v79_v30 = vld [vmem:[%s2129_s0 + $0x8e] sm:$0x3]  ;;  %v80_v31 = vld [vmem:[%s2129_s0 + $0x90] sm:$0x3] }
  0x31   :  { %v1014_v44 = vmax.f32 %v524_v14, %v916_v34  ;;  %v1015_v45 = vmax.f32 %v525_v16, %v917_v35  ;;  %v331_v48 = vrot.slane %v65_v32, 1  ;;  %v332_v49 = vrot.slane %v66_v33, 1 }
  0x32   :  { %v1226_v50 = vrot.slane %v1010_v38, 7  ;;  %v1228_v51 = vrot.slane %v1011_v39, 6  ;;  %v1230_v52 = vrot.slane %v1012_v40, 5  ;;  %v1232_v53 = vrot.slane %v1013_v41, 4  ;;  %v81_v40 = vld [vmem:[%s2129_s0 + $0x92] sm:$0x3] }
  0x33   :  { %v1234_v54 = vrot.slane %v1014_v44, 3  ;;  %v1236_v55 = vrot.slane %v1015_v45, 2  ;;  %v333_v57 = vrot.slane %v67_v42, 1  ;;  %v334_v58 = vrot.slane %v68_v43, 1  ;;  %v82_v41 = vld [vmem:[%s2129_s0 + $0x94] sm:$0x3] }
  0x34   :  { %v1227_v59 = vsel %vm1185_vm0, %v1226_v50, %v1009_v36  ;;  %v335_v62 = vrot.slane %v69_v46, 1  ;;  %v336_v63 = vrot.slane %v70_v47, 1  ;;  %v526_v0 = vmax.f32 %v64_v23, %v330_v37  ;;  %v84_v45 = vld [vmem:[%s2129_s0 + $0x98] sm:$0x3] }
  0x35   :  { %v1229_v1 = vsel %vm1188_vm1, %v1228_v51, %v1227_v59  ;;  %v527_v5 = vmax.f32 %v65_v32, %v331_v48  ;;  %v528_v6 = vmax.f32 %v66_v33, %v332_v49  ;;  %v529_v7 = vmax.f32 %v67_v42, %v333_v57  ;;  %v83_v42 = vld [vmem:[%s2129_s0 + $0x96] sm:$0x3]  ;;  %v87_v59 = vld [vmem:[%s2129_s0 + $0x9e] sm:$0x3] }
  0x36   :  { %v1231_v8 = vsel %vm1191_vm2, %v1230_v52, %v1229_v1  ;;  %v530_v10 = vmax.f32 %v68_v43, %v334_v58  ;;  %v531_v11 = vmax.f32 %v69_v46, %v335_v62  ;;  %v532_v12 = vmax.f32 %v70_v47, %v336_v63  ;;  %v86_v58 = vld [vmem:[%s2129_s0 + $0x9c] sm:$0x3]  ;;  %v89_v1 = vld [vmem:[%s2129_s0 + $0xa2] sm:$0x3] }
  0x37   :  { %v1233_v13 = vsel %vm1194_vm3, %v1232_v53, %v1231_v8  ;;  %v722_v14 = vrot.slane %v71_v56, 1  ;;  %v723_v15 = vrot.slane %v72_v60, 1  ;;  %v724_v16 = vrot.slane %v73_v61, 1 }
  0x38   :  { %v1235_v17 = vsel %vm1197_vm4, %v1234_v54, %v1233_v13  ;;  %v725_v18 = vrot.slane %v74_v2, 1  ;;  %v726_v19 = vrot.slane %v75_v3, 1  ;;  %v727_v20 = vrot.slane %v76_v4, 1  ;;  %v85_v54 = vld [vmem:[%s2129_s0 + $0x9a] sm:$0x3] }
  0x39   :  { %v1237_v22 = vsel %vm1200_vm5, %v1236_v55, %v1235_v17  ;;  %v728_v23 = vrot.slane %v77_v9, 1  ;;  %v918_v24 = vmax.f32 %v71_v56, %v722_v14  ;;  %v919_v25 = vmax.f32 %v72_v60, %v723_v15  ;;  %v92_v15 = vld [vmem:[%s2129_s0 + $0xa8] sm:$0x3] }
  0x3a   :  { %1376 = vst.msk [vmem:[%s2130_s1 + $0x18] sm:$0x7f] %vm1372_vm6, %v1237_v22  ;;  %v920_v26 = vmax.f32 %v73_v61, %v724_v16  ;;  %v921_v27 = vmax.f32 %v74_v2, %v725_v18  ;;  %v922_v28 = vmax.f32 %v75_v3, %v726_v19  ;;  %v923_v29 = vmax.f32 %v76_v4, %v727_v20  ;;  %v90_v2 = vld [vmem:[%s2129_s0 + $0xa4] sm:$0x3] }
  0x3b   :  { %v924_v32 = vmax.f32 %v77_v9, %v728_v23  ;;  %v1016_v33 = vmax.f32 %v526_v0, %v918_v24  ;;  %v1017_v34 = vmax.f32 %v527_v5, %v919_v25  ;;  %v337_v35 = vrot.slane %v78_v21, 1  ;;  %v88_v0 = vld [vmem:[%s2129_s0 + $0xa0] sm:$0x3]  ;;  %v93_v24 = vld [vmem:[%s2129_s0 + $0xaa] sm:$0x3] }
  0x3c   :  { %v1018_v36 = vmax.f32 %v528_v6, %v920_v26  ;;  %v1019_v37 = vmax.f32 %v529_v7, %v921_v27  ;;  %v1020_v38 = vmax.f32 %v530_v10, %v922_v28  ;;  %v1021_v39 = vmax.f32 %v531_v11, %v923_v29  ;;  %v91_v7 = vld [vmem:[%s2129_s0 + $0xa6] sm:$0x3]  ;;  %v94_v28 = vld [vmem:[%s2129_s0 + $0xac] sm:$0x3] }
  0x3d   :  { %v1022_v43 = vmax.f32 %v532_v12, %v924_v32  ;;  %v1238_v44 = vrot.slane %v1017_v34, 7  ;;  %v338_v46 = vrot.slane %v79_v30, 1  ;;  %v339_v47 = vrot.slane %v80_v31, 1  ;;  %v95_v34 = vld [vmem:[%s2129_s0 + $0xae] sm:$0x3] }
  0x3e   :  { %v1240_v48 = vrot.slane %v1018_v36, 6  ;;  %v1242_v49 = vrot.slane %v1019_v37, 5  ;;  %v1244_v50 = vrot.slane %v1020_v38, 4  ;;  %v1246_v51 = vrot.slane %v1021_v39, 3  ;;  %v96_v38 = vld [vmem:[%s2129_s0 + $0xb0] sm:$0x3] }
  0x3f   :  { %v1239_v52 = vsel %vm1185_vm0, %v1238_v44, %v1016_v33  ;;  %v1248_v53 = vrot.slane %v1022_v43, 2  ;;  %v340_v55 = vrot.slane %v81_v40, 1  ;;  %v341_v56 = vrot.slane %v82_v41, 1  ;;  %v97_v39 = vld [vmem:[%s2129_s0 + $0xb2] sm:$0x3] }
  0x40   :  { %v1241_v57 = vsel %vm1188_vm1, %v1240_v48, %v1239_v52  ;;  %v342_v60 = vrot.slane %v83_v42, 1  ;;  %v343_v61 = vrot.slane %v84_v45, 1  ;;  %v533_v62 = vmax.f32 %v78_v21, %v337_v35  ;;  %v98_v44 = vld [vmem:[%s2129_s0 + $0xb4] sm:$0x3] }
  0x41   :  { %v1243_v63 = vsel %vm1191_vm2, %v1242_v49, %v1241_v57  ;;  %v534_v3 = vmax.f32 %v79_v30, %v338_v46  ;;  %v535_v4 = vmax.f32 %v80_v31, %v339_v47  ;;  %v536_v5 = vmax.f32 %v81_v40, %v340_v55  ;;  %v99_v49 = vld [vmem:[%s2129_s0 + $0xb6] sm:$0x3]  ;;  %v101_v57 = vld [vmem:[%s2129_s0 + $0xba] sm:$0x3] }
  0x42   :  { %v1245_v6 = vsel %vm1194_vm3, %v1244_v50, %v1243_v63  ;;  %v537_v8 = vmax.f32 %v82_v41, %v341_v56  ;;  %v538_v9 = vmax.f32 %v83_v42, %v342_v60  ;;  %v539_v10 = vmax.f32 %v84_v45, %v343_v61  ;;  %v103_v63 = vld [vmem:[%s2129_s0 + $0xbe] sm:$0x3] }
  0x43   :  { %v1247_v11 = vsel %vm1197_vm4, %v1246_v51, %v1245_v6  ;;  %v729_v12 = vrot.slane %v85_v54, 1  ;;  %v730_v13 = vrot.slane %v86_v58, 1  ;;  %v731_v14 = vrot.slane %v87_v59, 1 }
  0x44   :  { %v1249_v16 = vsel %vm1200_vm5, %v1248_v53, %v1247_v11  ;;  %v732_v17 = vrot.slane %v88_v0, 1  ;;  %v733_v18 = vrot.slane %v89_v1, 1  ;;  %v734_v19 = vrot.slane %v90_v2, 1  ;;  %v100_v53 = vld [vmem:[%s2129_s0 + $0xb8] sm:$0x3] }
  0x45   :  { %1377 = vst.msk [vmem:[%s2130_s1 + $0x20] sm:$0x7f] %vm1372_vm6, %v1249_v16  ;;  %v735_v20 = vrot.slane %v91_v7, 1  ;;  %v925_v21 = vmax.f32 %v85_v54, %v729_v12  ;;  %v926_v22 = vmax.f32 %v86_v58, %v730_v13  ;;  %v927_v23 = vmax.f32 %v87_v59, %v731_v14  ;;  %v102_v58 = vld [vmem:[%s2129_s0 + $0xbc] sm:$0x3] }
  0x46   :  { %v928_v25 = vmax.f32 %v88_v0, %v732_v17  ;;  %v929_v26 = vmax.f32 %v89_v1, %v733_v18  ;;  %v930_v27 = vmax.f32 %v90_v2, %v734_v19  ;;  %v344_v29 = vrot.slane %v92_v15, 1  ;;  %v104_v0 = vld [vmem:[%s2129_s0 + $0xc0] sm:$0x3]  ;;  %v105_v1 = vld [vmem:[%s2129_s0 + $0xc2] sm:$0x3] }
  0x47   :  { %v931_v30 = vmax.f32 %v91_v7, %v735_v20  ;;  %v1023_v31 = vmax.f32 %v533_v62, %v925_v21  ;;  %v1024_v32 = vmax.f32 %v534_v3, %v926_v22  ;;  %v1025_v33 = vmax.f32 %v535_v4, %v927_v23  ;;  %v106_v13 = vld [vmem:[%s2129_s0 + $0xc4] sm:$0x3]  ;;  %v107_v22 = vld [vmem:[%s2129_s0 + $0xc6] sm:$0x3] }
  0x48   :  { %v1026_v35 = vmax.f32 %v536_v5, %v928_v25  ;;  %v1027_v36 = vmax.f32 %v537_v8, %v929_v26  ;;  %v1028_v37 = vmax.f32 %v538_v9, %v930_v27  ;;  %v345_v40 = vrot.slane %v93_v24, 1  ;;  %v108_v26 = vld [vmem:[%s2129_s0 + $0xc8] sm:$0x3] }
  0x49   :  { %v1029_v41 = vmax.f32 %v539_v10, %v931_v30  ;;  %v1250_v42 = vrot.slane %v1024_v32, 7  ;;  %v1252_v43 = vrot.slane %v1025_v33, 6  ;;  %v346_v45 = vrot.slane %v94_v28, 1  ;;  %v109_v32 = vld [vmem:[%s2129_s0 + $0xca] sm:$0x3] }
  0x4a   :  { %v1254_v46 = vrot.slane %v1026_v35, 5  ;;  %v1256_v47 = vrot.slane %v1027_v36, 4  ;;  %v1258_v48 = vrot.slane %v1028_v37, 3  ;;  %v347_v50 = vrot.slane %v95_v34, 1  ;;  %v110_v33 = vld [vmem:[%s2129_s0 + $0xcc] sm:$0x3] }
  0x4b   :  { %v1251_v51 = vsel %vm1185_vm0, %v1250_v42, %v1023_v31  ;;  %v1260_v52 = vrot.slane %v1029_v41, 2  ;;  %v348_v54 = vrot.slane %v96_v38, 1  ;;  %v349_v55 = vrot.slane %v97_v39, 1  ;;  %v111_v37 = vld [vmem:[%s2129_s0 + $0xce] sm:$0x3] }
  0x4c   :  { %v1253_v56 = vsel %vm1188_vm1, %v1252_v43, %v1251_v51  ;;  %v350_v59 = vrot.slane %v98_v44, 1  ;;  %v540_v60 = vmax.f32 %v92_v15, %v344_v29  ;;  %v541_v61 = vmax.f32 %v93_v24, %v345_v40 }
  0x4d   :  { %v1255_v62 = vsel %vm1191_vm2, %v1254_v46, %v1253_v56  ;;  %v542_v2 = vmax.f32 %v94_v28, %v346_v45  ;;  %v543_v3 = vmax.f32 %v95_v34, %v347_v50  ;;  %v544_v4 = vmax.f32 %v96_v38, %v348_v54  ;;  %v112_v38 = vld [vmem:[%s2129_s0 + $0xd0] sm:$0x3]  ;;  %v114_v50 = vld [vmem:[%s2129_s0 + $0xd4] sm:$0x3]  ;;  %v116_v56 = vld [vmem:[%s2129_s0 + $0xd8] sm:$0x3] }
  0x4e   :  { %v1257_v5 = vsel %vm1194_vm3, %v1256_v47, %v1255_v62  ;;  %v545_v6 = vmax.f32 %v97_v39, %v349_v55  ;;  %v546_v7 = vmax.f32 %v98_v44, %v350_v59  ;;  %v736_v8 = vrot.slane %v99_v49, 1  ;;  %v113_v47 = vld [vmem:[%s2129_s0 + $0xd2] sm:$0x3]  ;;  %v115_v55 = vld [vmem:[%s2129_s0 + $0xd6] sm:$0x3] }
  0x4f   :  { %v1259_v9 = vsel %vm1197_vm4, %v1258_v48, %v1257_v5  ;;  %v737_v10 = vrot.slane %v100_v53, 1  ;;  %v738_v11 = vrot.slane %v101_v57, 1  ;;  %v739_v12 = vrot.slane %v102_v58, 1  ;;  %v118_v62 = vld [vmem:[%s2129_s0 + $0xdc] sm:$0x3] }
  0x50   :  { %v1261_v14 = vsel %vm1200_vm5, %v1260_v52, %v1259_v9  ;;  %v740_v15 = vrot.slane %v103_v63, 1  ;;  %v741_v16 = vrot.slane %v104_v0, 1  ;;  %v742_v17 = vrot.slane %v105_v1, 1 }
  0x51   :  { %1378 = vst.msk [vmem:[%s2130_s1 + $0x28] sm:$0x7f] %vm1372_vm6, %v1261_v14  ;;  %v932_v18 = vmax.f32 %v99_v49, %v736_v8  ;;  %v933_v19 = vmax.f32 %v100_v53, %v737_v10  ;;  %v934_v20 = vmax.f32 %v101_v57, %v738_v11  ;;  %v935_v21 = vmax.f32 %v102_v58, %v739_v12  ;;  %v117_v57 = vld [vmem:[%s2129_s0 + $0xda] sm:$0x3]  ;;  %v120_v11 = vld [vmem:[%s2129_s0 + $0xe0] sm:$0x3] }
  0x52   :  { %v936_v23 = vmax.f32 %v103_v63, %v740_v15  ;;  %v937_v24 = vmax.f32 %v104_v0, %v741_v16  ;;  %v938_v25 = vmax.f32 %v105_v1, %v742_v17  ;;  %v351_v27 = vrot.slane %v106_v13, 1  ;;  %v119_v63 = vld [vmem:[%s2129_s0 + $0xde] sm:$0x3] }
  0x53   :  { %v1030_v28 = vmax.f32 %v540_v60, %v932_v18  ;;  %v1031_v29 = vmax.f32 %v541_v61, %v933_v19  ;;  %v1032_v30 = vmax.f32 %v542_v2, %v934_v20  ;;  %v1033_v31 = vmax.f32 %v543_v3, %v935_v21  ;;  %v121_v20 = vld [vmem:[%s2129_s0 + $0xe2] sm:$0x3]  ;;  %v122_v21 = vld [vmem:[%s2129_s0 + $0xe4] sm:$0x3] }
  0x54   :  { %v1034_v34 = vmax.f32 %v544_v4, %v936_v23  ;;  %v1035_v35 = vmax.f32 %v545_v6, %v937_v24  ;;  %v1036_v36 = vmax.f32 %v546_v7, %v938_v25  ;;  %v352_v39 = vrot.slane %v107_v22, 1 }
  0x55   :  { %v1262_v40 = vrot.slane %v1031_v29, 7  ;;  %v1264_v41 = vrot.slane %v1032_v30, 6  ;;  %v1266_v42 = vrot.slane %v1033_v31, 5  ;;  %v353_v43 = vrot.slane %v108_v26, 1  ;;  %v123_v30 = vld [vmem:[%s2129_s0 + $0xe6] sm:$0x3] }
  0x56   :  { %v1268_v44 = vrot.slane %v1034_v34, 4  ;;  %v1270_v45 = vrot.slane %v1035_v35, 3  ;;  %v1272_v46 = vrot.slane %v1036_v36, 2  ;;  %v354_v48 = vrot.slane %v109_v32, 1  ;;  %v124_v31 = vld [vmem:[%s2129_s0 + $0xe8] sm:$0x3] }
  0x57   :  { %v1263_v49 = vsel %vm1185_vm0, %v1262_v40, %v1030_v28  ;;  %v355_v51 = vrot.slane %v110_v33, 1  ;;  %v356_v52 = vrot.slane %v111_v37, 1  ;;  %v357_v53 = vrot.slane %v112_v38, 1  ;;  %v125_v34 = vld [vmem:[%s2129_s0 + $0xea] sm:$0x3] }
  0x58   :  { %v1265_v54 = vsel %vm1188_vm1, %v1264_v41, %v1263_v49  ;;  %v547_v58 = vmax.f32 %v106_v13, %v351_v27  ;;  %v548_v59 = vmax.f32 %v107_v22, %v352_v39  ;;  %v549_v60 = vmax.f32 %v108_v26, %v353_v43  ;;  %v126_v35 = vld [vmem:[%s2129_s0 + $0xec] sm:$0x3]  ;;  %v129_v49 = vld [vmem:[%s2129_s0 + $0xf2] sm:$0x3] }
  0x59   :  { %v1267_v61 = vsel %vm1191_vm2, %v1266_v42, %v1265_v54  ;;  %v550_v0 = vmax.f32 %v109_v32, %v354_v48  ;;  %v551_v1 = vmax.f32 %v110_v33, %v355_v51  ;;  %v552_v2 = vmax.f32 %v111_v37, %v356_v52  ;;  %v128_v48 = vld [vmem:[%s2129_s0 + $0xf0] sm:$0x3]  ;;  %v130_v54 = vld [vmem:[%s2129_s0 + $0xf4] sm:$0x3] }
  0x5a   :  { %v1269_v3 = vsel %vm1194_vm3, %v1268_v44, %v1267_v61  ;;  %v553_v4 = vmax.f32 %v112_v38, %v357_v53  ;;  %v743_v5 = vrot.slane %v113_v47, 1  ;;  %v744_v6 = vrot.slane %v114_v50, 1  ;;  %v127_v44 = vld [vmem:[%s2129_s0 + $0xee] sm:$0x3]  ;;  %v133_v61 = vld [vmem:[%s2129_s0 + $0xfa] sm:$0x3] }
  0x5b   :  { %v1271_v7 = vsel %vm1197_vm4, %v1270_v45, %v1269_v3  ;;  %v745_v8 = vrot.slane %v115_v55, 1  ;;  %v746_v9 = vrot.slane %v116_v56, 1  ;;  %v747_v10 = vrot.slane %v117_v57, 1 }
  0x5c   :  { %v1273_v12 = vsel %vm1200_vm5, %v1272_v46, %v1271_v7  ;;  %v748_v13 = vrot.slane %v118_v62, 1  ;;  %v749_v14 = vrot.slane %v119_v63, 1  ;;  %v939_v15 = vmax.f32 %v113_v47, %v743_v5 }
  0x5d   :  { %1379 = vst.msk [vmem:[%s2130_s1 + $0x30] sm:$0x7f] %vm1372_vm6, %v1273_v12  ;;  %v940_v16 = vmax.f32 %v114_v50, %v744_v6  ;;  %v941_v17 = vmax.f32 %v115_v55, %v745_v8  ;;  %v942_v18 = vmax.f32 %v116_v56, %v746_v9  ;;  %v943_v19 = vmax.f32 %v117_v57, %v747_v10  ;;  %v131_v55 = vld [vmem:[%s2129_s0 + $0xf6] sm:$0x3]  ;;  %v132_v56 = vld [vmem:[%s2129_s0 + $0xf8] sm:$0x3] }
  0x5e   :  { %v944_v22 = vmax.f32 %v118_v62, %v748_v13  ;;  %v945_v23 = vmax.f32 %v119_v63, %v749_v14  ;;  %v1037_v24 = vmax.f32 %v547_v58, %v939_v15  ;;  %v358_v25 = vrot.slane %v120_v11, 1  ;;  %v134_v9 = vld [vmem:[%s2129_s0 + $0xfc] sm:$0x3] }
  0x5f   :  { %v1038_v26 = vmax.f32 %v548_v59, %v940_v16  ;;  %v1039_v27 = vmax.f32 %v549_v60, %v941_v17  ;;  %v1040_v28 = vmax.f32 %v550_v0, %v942_v18  ;;  %v1041_v29 = vmax.f32 %v551_v1, %v943_v19  ;;  %v135_v18 = vld [vmem:[%s2129_s0 + $0xfe] sm:$0x3]  ;;  %v136_v19 = vld [vmem:[%s2129_s0 + $0x100] sm:$0x3] }
  0x60   :  { %v1042_v32 = vmax.f32 %v552_v2, %v944_v22  ;;  %v1043_v33 = vmax.f32 %v553_v4, %v945_v23  ;;  %v359_v36 = vrot.slane %v121_v20, 1  ;;  %v360_v37 = vrot.slane %v122_v21, 1 }
  0x61   :  { %v1274_v38 = vrot.slane %v1038_v26, 7  ;;  %v1276_v39 = vrot.slane %v1039_v27, 6  ;;  %v1278_v40 = vrot.slane %v1040_v28, 5  ;;  %v1280_v41 = vrot.slane %v1041_v29, 4  ;;  %v137_v28 = vld [vmem:[%s2129_s0 + $0x102] sm:$0x3] }
  0x62   :  { %v1282_v42 = vrot.slane %v1042_v32, 3  ;;  %v1284_v43 = vrot.slane %v1043_v33, 2  ;;  %v361_v45 = vrot.slane %v123_v30, 1  ;;  %v362_v46 = vrot.slane %v124_v31, 1  ;;  %v138_v29 = vld [vmem:[%s2129_s0 + $0x104] sm:$0x3] }
  0x63   :  { %v1275_v47 = vsel %vm1185_vm0, %v1274_v38, %v1037_v24  ;;  %v363_v50 = vrot.slane %v125_v34, 1  ;;  %v364_v51 = vrot.slane %v126_v35, 1  ;;  %v554_v52 = vmax.f32 %v120_v11, %v358_v25  ;;  %v140_v33 = vld [vmem:[%s2129_s0 + $0x108] sm:$0x3] }
  0x64   :  { %v1277_v53 = vsel %vm1188_vm1, %v1276_v39, %v1275_v47  ;;  %v555_v57 = vmax.f32 %v121_v20, %v359_v36  ;;  %v556_v58 = vmax.f32 %v122_v21, %v360_v37  ;;  %v557_v59 = vmax.f32 %v123_v30, %v361_v45  ;;  %v139_v30 = vld [vmem:[%s2129_s0 + $0x106] sm:$0x3]  ;;  %v143_v47 = vld [vmem:[%s2129_s0 + $0x10e] sm:$0x3] }
  0x65   :  { %v1279_v60 = vsel %vm1191_vm2, %v1278_v40, %v1277_v53  ;;  %v558_v62 = vmax.f32 %v124_v31, %v362_v46  ;;  %v559_v63 = vmax.f32 %v125_v34, %v363_v50  ;;  %v560_v0 = vmax.f32 %v126_v35, %v364_v51  ;;  %v142_v46 = vld [vmem:[%s2129_s0 + $0x10c] sm:$0x3]  ;;  %v145_v53 = vld [vmem:[%s2129_s0 + $0x112] sm:$0x3] }
  0x66   :  { %v1281_v1 = vsel %vm1194_vm3, %v1280_v41, %v1279_v60  ;;  %v750_v2 = vrot.slane %v127_v44, 1  ;;  %v751_v3 = vrot.slane %v128_v48, 1  ;;  %v752_v4 = vrot.slane %v129_v49, 1 }
  0x67   :  { %v1283_v5 = vsel %vm1197_vm4, %v1282_v42, %v1281_v1  ;;  %v753_v6 = vrot.slane %v130_v54, 1  ;;  %v754_v7 = vrot.slane %v131_v55, 1  ;;  %v755_v8 = vrot.slane %v132_v56, 1  ;;  %v141_v42 = vld [vmem:[%s2129_s0 + $0x10a] sm:$0x3] }
  0x68   :  { %v1285_v10 = vsel %vm1200_vm5, %v1284_v43, %v1283_v5  ;;  %v756_v11 = vrot.slane %v133_v61, 1  ;;  %v946_v12 = vmax.f32 %v127_v44, %v750_v2  ;;  %v947_v13 = vmax.f32 %v128_v48, %v751_v3  ;;  %v148_v3 = vld [vmem:[%s2129_s0 + $0x118] sm:$0x3] }
  0x69   :  { %1380 = vst.msk [vmem:[%s2130_s1 + $0x38] sm:$0x7f] %vm1372_vm6, %v1285_v10  ;;  %v948_v14 = vmax.f32 %v129_v49, %v752_v4  ;;  %v949_v15 = vmax.f32 %v130_v54, %v753_v6  ;;  %v950_v16 = vmax.f32 %v131_v55, %v754_v7  ;;  %v951_v17 = vmax.f32 %v132_v56, %v755_v8  ;;  %v146_v54 = vld [vmem:[%s2129_s0 + $0x114] sm:$0x3] }
  0x6a   :  { %v952_v20 = vmax.f32 %v133_v61, %v756_v11  ;;  %v1044_v21 = vmax.f32 %v554_v52, %v946_v12  ;;  %v1045_v22 = vmax.f32 %v555_v57, %v947_v13  ;;  %v365_v23 = vrot.slane %v134_v9, 1  ;;  %v144_v52 = vld [vmem:[%s2129_s0 + $0x110] sm:$0x3]  ;;  %v149_v12 = vld [vmem:[%s2129_s0 + $0x11a] sm:$0x3] }
  0x6b   :  { %v1046_v24 = vmax.f32 %v556_v58, %v948_v14  ;;  %v1047_v25 = vmax.f32 %v557_v59, %v949_v15  ;;  %v1048_v26 = vmax.f32 %v558_v62, %v950_v16  ;;  %v1049_v27 = vmax.f32 %v559_v63, %v951_v17  ;;  %v147_v59 = vld [vmem:[%s2129_s0 + $0x116] sm:$0x3]  ;;  %v150_v16 = vld [vmem:[%s2129_s0 + $0x11c] sm:$0x3] }
  0x6c   :  { %v1050_v31 = vmax.f32 %v560_v0, %v952_v20  ;;  %v1286_v32 = vrot.slane %v1045_v22, 7  ;;  %v366_v34 = vrot.slane %v135_v18, 1  ;;  %v367_v35 = vrot.slane %v136_v19, 1  ;;  %v151_v22 = vld [vmem:[%s2129_s0 + $0x11e] sm:$0x3] }
  0x6d   :  { %v1288_v36 = vrot.slane %v1046_v24, 6  ;;  %v1290_v37 = vrot.slane %v1047_v25, 5  ;;  %v1292_v38 = vrot.slane %v1048_v26, 4  ;;  %v1294_v39 = vrot.slane %v1049_v27, 3  ;;  %v152_v26 = vld [vmem:[%s2129_s0 + $0x120] sm:$0x3] }
  0x6e   :  { %v1287_v40 = vsel %vm1185_vm0, %v1286_v32, %v1044_v21  ;;  %v1296_v41 = vrot.slane %v1050_v31, 2  ;;  %v368_v43 = vrot.slane %v137_v28, 1  ;;  %v369_v44 = vrot.slane %v138_v29, 1  ;;  %v153_v27 = vld [vmem:[%s2129_s0 + $0x122] sm:$0x3] }
  0x6f   :  { %v1289_v45 = vsel %vm1188_vm1, %v1288_v36, %v1287_v40  ;;  %v370_v48 = vrot.slane %v139_v30, 1  ;;  %v371_v49 = vrot.slane %v140_v33, 1  ;;  %v561_v50 = vmax.f32 %v134_v9, %v365_v23  ;;  %v154_v32 = vld [vmem:[%s2129_s0 + $0x124] sm:$0x3] }
  0x70   :  { %v1291_v51 = vsel %vm1191_vm2, %v1290_v37, %v1289_v45  ;;  %v562_v55 = vmax.f32 %v135_v18, %v366_v34  ;;  %v563_v56 = vmax.f32 %v136_v19, %v367_v35  ;;  %v564_v57 = vmax.f32 %v137_v28, %v368_v43  ;;  %v155_v37 = vld [vmem:[%s2129_s0 + $0x126] sm:$0x3]  ;;  %v157_v45 = vld [vmem:[%s2129_s0 + $0x12a] sm:$0x3] }
  0x71   :  { %v1293_v58 = vsel %vm1194_vm3, %v1292_v38, %v1291_v51  ;;  %v565_v60 = vmax.f32 %v138_v29, %v369_v44  ;;  %v566_v61 = vmax.f32 %v139_v30, %v370_v48  ;;  %v567_v62 = vmax.f32 %v140_v33, %v371_v49  ;;  %v159_v51 = vld [vmem:[%s2129_s0 + $0x12e] sm:$0x3] }
  0x72   :  { %v1295_v63 = vsel %vm1197_vm4, %v1294_v39, %v1293_v58  ;;  %v757_v0 = vrot.slane %v141_v42, 1  ;;  %v758_v1 = vrot.slane %v142_v46, 1  ;;  %v759_v2 = vrot.slane %v143_v47, 1 }
  0x73   :  { %v1297_v4 = vsel %vm1200_vm5, %v1296_v41, %v1295_v63  ;;  %v760_v5 = vrot.slane %v144_v52, 1  ;;  %v761_v6 = vrot.slane %v145_v53, 1  ;;  %v762_v7 = vrot.slane %v146_v54, 1  ;;  %v156_v41 = vld [vmem:[%s2129_s0 + $0x128] sm:$0x3] }
  0x74   :  { %1381 = vst.msk [vmem:[%s2130_s1 + $0x40] sm:$0x7f] %vm1372_vm6, %v1297_v4  ;;  %v763_v8 = vrot.slane %v147_v59, 1  ;;  %v953_v9 = vmax.f32 %v141_v42, %v757_v0  ;;  %v954_v10 = vmax.f32 %v142_v46, %v758_v1  ;;  %v955_v11 = vmax.f32 %v143_v47, %v759_v2  ;;  %v158_v46 = vld [vmem:[%s2129_s0 + $0x12c] sm:$0x3] }
  0x75   :  { %v956_v13 = vmax.f32 %v144_v52, %v760_v5  ;;  %v957_v14 = vmax.f32 %v145_v53, %v761_v6  ;;  %v958_v15 = vmax.f32 %v146_v54, %v762_v7  ;;  %v372_v17 = vrot.slane %v148_v3, 1  ;;  %v160_v52 = vld [vmem:[%s2129_s0 + $0x130] sm:$0x3]  ;;  %v161_v53 = vld [vmem:[%s2129_s0 + $0x132] sm:$0x3] }
  0x76   :  { %v959_v18 = vmax.f32 %v147_v59, %v763_v8  ;;  %v1051_v19 = vmax.f32 %v561_v50, %v953_v9  ;;  %v1052_v20 = vmax.f32 %v562_v55, %v954_v10  ;;  %v1053_v21 = vmax.f32 %v563_v56, %v955_v11  ;;  %v162_v1 = vld [vmem:[%s2129_s0 + $0x134] sm:$0x3]  ;;  %v163_v10 = vld [vmem:[%s2129_s0 + $0x136] sm:$0x3] }
  0x77   :  { %v1054_v23 = vmax.f32 %v564_v57, %v956_v13  ;;  %v1055_v24 = vmax.f32 %v565_v60, %v957_v14  ;;  %v1056_v25 = vmax.f32 %v566_v61, %v958_v15  ;;  %v373_v28 = vrot.slane %v149_v12, 1  ;;  %v164_v14 = vld [vmem:[%s2129_s0 + $0x138] sm:$0x3] }
  0x78   :  { %v1057_v29 = vmax.f32 %v567_v62, %v959_v18  ;;  %v1298_v30 = vrot.slane %v1052_v20, 7  ;;  %v1300_v31 = vrot.slane %v1053_v21, 6  ;;  %v374_v33 = vrot.slane %v150_v16, 1  ;;  %v165_v20 = vld [vmem:[%s2129_s0 + $0x13a] sm:$0x3] }
  0x79   :  { %v1302_v34 = vrot.slane %v1054_v23, 5  ;;  %v1304_v35 = vrot.slane %v1055_v24, 4  ;;  %v1306_v36 = vrot.slane %v1056_v25, 3  ;;  %v375_v38 = vrot.slane %v151_v22, 1  ;;  %v166_v21 = vld [vmem:[%s2129_s0 + $0x13c] sm:$0x3] }
  0x7a   :  { %v1299_v39 = vsel %vm1185_vm0, %v1298_v30, %v1051_v19  ;;  %v1308_v40 = vrot.slane %v1057_v29, 2  ;;  %v376_v42 = vrot.slane %v152_v26, 1  ;;  %v377_v43 = vrot.slane %v153_v27, 1  ;;  %v167_v25 = vld [vmem:[%s2129_s0 + $0x13e] sm:$0x3] }
  0x7b   :  { %v1301_v44 = vsel %vm1188_vm1, %v1300_v31, %v1299_v39  ;;  %v378_v47 = vrot.slane %v154_v32, 1  ;;  %v568_v48 = vmax.f32 %v148_v3, %v372_v17  ;;  %v569_v49 = vmax.f32 %v149_v12, %v373_v28 }
  0x7c   :  { %v1303_v50 = vsel %vm1191_vm2, %v1302_v34, %v1301_v44  ;;  %v570_v54 = vmax.f32 %v150_v16, %v374_v33  ;;  %v571_v55 = vmax.f32 %v151_v22, %v375_v38  ;;  %v572_v56 = vmax.f32 %v152_v26, %v376_v42  ;;  %v168_v26 = vld [vmem:[%s2129_s0 + $0x140] sm:$0x3]  ;;  %v170_v38 = vld [vmem:[%s2129_s0 + $0x144] sm:$0x3]  ;;  %v172_v44 = vld [vmem:[%s2129_s0 + $0x148] sm:$0x3] }
  0x7d   :  { %v1305_v57 = vsel %vm1194_vm3, %v1304_v35, %v1303_v50  ;;  %v573_v58 = vmax.f32 %v153_v27, %v377_v43  ;;  %v574_v59 = vmax.f32 %v154_v32, %v378_v47  ;;  %v764_v60 = vrot.slane %v155_v37, 1  ;;  %v169_v35 = vld [vmem:[%s2129_s0 + $0x142] sm:$0x3]  ;;  %v171_v43 = vld [vmem:[%s2129_s0 + $0x146] sm:$0x3] }
  0x7e   :  { %v1307_v61 = vsel %vm1197_vm4, %v1306_v36, %v1305_v57  ;;  %v765_v62 = vrot.slane %v156_v41, 1  ;;  %v766_v63 = vrot.slane %v157_v45, 1  ;;  %v767_v0 = vrot.slane %v158_v46, 1  ;;  %v174_v50 = vld [vmem:[%s2129_s0 + $0x14c] sm:$0x3] }
  0x7f   :  { %v1309_v2 = vsel %vm1200_vm5, %v1308_v40, %v1307_v61  ;;  %v768_v3 = vrot.slane %v159_v51, 1  ;;  %v769_v4 = vrot.slane %v160_v52, 1  ;;  %v770_v5 = vrot.slane %v161_v53, 1 }
  0x80   :  { %1382 = vst.msk [vmem:[%s2130_s1 + $0x48] sm:$0x7f] %vm1372_vm6, %v1309_v2  ;;  %v960_v6 = vmax.f32 %v155_v37, %v764_v60  ;;  %v961_v7 = vmax.f32 %v156_v41, %v765_v62  ;;  %v962_v8 = vmax.f32 %v157_v45, %v766_v63  ;;  %v963_v9 = vmax.f32 %v158_v46, %v767_v0  ;;  %v173_v45 = vld [vmem:[%s2129_s0 + $0x14a] sm:$0x3]  ;;  %v176_v63 = vld [vmem:[%s2129_s0 + $0x150] sm:$0x3] }
  0x81   :  { %v964_v11 = vmax.f32 %v159_v51, %v768_v3  ;;  %v965_v12 = vmax.f32 %v160_v52, %v769_v4  ;;  %v966_v13 = vmax.f32 %v161_v53, %v770_v5  ;;  %v379_v15 = vrot.slane %v162_v1, 1  ;;  %v175_v51 = vld [vmem:[%s2129_s0 + $0x14e] sm:$0x3] }
  0x82   :  { %v1058_v16 = vmax.f32 %v568_v48, %v960_v6  ;;  %v1059_v17 = vmax.f32 %v569_v49, %v961_v7  ;;  %v1060_v18 = vmax.f32 %v570_v54, %v962_v8  ;;  %v1061_v19 = vmax.f32 %v571_v55, %v963_v9  ;;  %v177_v8 = vld [vmem:[%s2129_s0 + $0x152] sm:$0x3]  ;;  %v178_v9 = vld [vmem:[%s2129_s0 + $0x154] sm:$0x3] }
  0x83   :  { %v1062_v22 = vmax.f32 %v572_v56, %v964_v11  ;;  %v1063_v23 = vmax.f32 %v573_v58, %v965_v12  ;;  %v1064_v24 = vmax.f32 %v574_v59, %v966_v13  ;;  %v380_v27 = vrot.slane %v163_v10, 1 }
  0x84   :  { %v1310_v28 = vrot.slane %v1059_v17, 7  ;;  %v1312_v29 = vrot.slane %v1060_v18, 6  ;;  %v1314_v30 = vrot.slane %v1061_v19, 5  ;;  %v381_v31 = vrot.slane %v164_v14, 1  ;;  %v179_v18 = vld [vmem:[%s2129_s0 + $0x156] sm:$0x3] }
  0x85   :  { %v1316_v32 = vrot.slane %v1062_v22, 4  ;;  %v1318_v33 = vrot.slane %v1063_v23, 3  ;;  %v1320_v34 = vrot.slane %v1064_v24, 2  ;;  %v382_v36 = vrot.slane %v165_v20, 1  ;;  %v180_v19 = vld [vmem:[%s2129_s0 + $0x158] sm:$0x3] }
  0x86   :  { %v1311_v37 = vsel %vm1185_vm0, %v1310_v28, %v1058_v16  ;;  %v383_v39 = vrot.slane %v166_v21, 1  ;;  %v384_v40 = vrot.slane %v167_v25, 1  ;;  %v385_v41 = vrot.slane %v168_v26, 1  ;;  %v181_v22 = vld [vmem:[%s2129_s0 + $0x15a] sm:$0x3] }
  0x87   :  { %v1313_v42 = vsel %vm1188_vm1, %v1312_v29, %v1311_v37  ;;  %v575_v46 = vmax.f32 %v162_v1, %v379_v15  ;;  %v576_v47 = vmax.f32 %v163_v10, %v380_v27  ;;  %v577_v48 = vmax.f32 %v164_v14, %v381_v31  ;;  %v182_v23 = vld [vmem:[%s2129_s0 + $0x15c] sm:$0x3]  ;;  %v185_v37 = vld [vmem:[%s2129_s0 + $0x162] sm:$0x3] }
  0x88   :  { %v1315_v49 = vsel %vm1191_vm2, %v1314_v30, %v1313_v42  ;;  %v578_v52 = vmax.f32 %v165_v20, %v382_v36  ;;  %v579_v53 = vmax.f32 %v166_v21, %v383_v39  ;;  %v580_v54 = vmax.f32 %v167_v25, %v384_v40  ;;  %v184_v36 = vld [vmem:[%s2129_s0 + $0x160] sm:$0x3]  ;;  %v186_v42 = vld [vmem:[%s2129_s0 + $0x164] sm:$0x3] }
  0x89   :  { %v1317_v55 = vsel %vm1194_vm3, %v1316_v32, %v1315_v49  ;;  %v581_v56 = vmax.f32 %v168_v26, %v385_v41  ;;  %v771_v57 = vrot.slane %v169_v35, 1  ;;  %v772_v58 = vrot.slane %v170_v38, 1  ;;  %v183_v32 = vld [vmem:[%s2129_s0 + $0x15e] sm:$0x3]  ;;  %v189_v49 = vld [vmem:[%s2129_s0 + $0x16a] sm:$0x3] }
  0x8a   :  { %v1319_v59 = vsel %vm1197_vm4, %v1318_v33, %v1317_v55  ;;  %v773_v60 = vrot.slane %v171_v43, 1  ;;  %v774_v61 = vrot.slane %v172_v44, 1  ;;  %v775_v62 = vrot.slane %v173_v45, 1 }
  0x8b   :  { %v1321_v0 = vsel %vm1200_vm5, %v1320_v34, %v1319_v59  ;;  %v776_v1 = vrot.slane %v174_v50, 1  ;;  %v777_v2 = vrot.slane %v175_v51, 1  ;;  %v967_v3 = vmax.f32 %v169_v35, %v771_v57 }
  0x8c   :  { %1383 = vst.msk [vmem:[%s2130_s1 + $0x50] sm:$0x7f] %vm1372_vm6, %v1321_v0  ;;  %v968_v4 = vmax.f32 %v170_v38, %v772_v58  ;;  %v969_v5 = vmax.f32 %v171_v43, %v773_v60  ;;  %v970_v6 = vmax.f32 %v172_v44, %v774_v61  ;;  %v971_v7 = vmax.f32 %v173_v45, %v775_v62  ;;  %v187_v43 = vld [vmem:[%s2129_s0 + $0x166] sm:$0x3]  ;;  %v188_v44 = vld [vmem:[%s2129_s0 + $0x168] sm:$0x3] }
  0x8d   :  { %v972_v10 = vmax.f32 %v174_v50, %v776_v1  ;;  %v973_v11 = vmax.f32 %v175_v51, %v777_v2  ;;  %v1065_v12 = vmax.f32 %v575_v46, %v967_v3  ;;  %v386_v13 = vrot.slane %v176_v63, 1  ;;  %v190_v61 = vld [vmem:[%s2129_s0 + $0x16c] sm:$0x3] }
  0x8e   :  { %v1066_v14 = vmax.f32 %v576_v47, %v968_v4  ;;  %v1067_v15 = vmax.f32 %v577_v48, %v969_v5  ;;  %v1068_v16 = vmax.f32 %v578_v52, %v970_v6  ;;  %v1069_v17 = vmax.f32 %v579_v53, %v971_v7  ;;  %v191_v6 = vld [vmem:[%s2129_s0 + $0x16e] sm:$0x3]  ;;  %v192_v7 = vld [vmem:[%s2129_s0 + $0x170] sm:$0x3] }
  0x8f   :  { %v1070_v20 = vmax.f32 %v580_v54, %v972_v10  ;;  %v1071_v21 = vmax.f32 %v581_v56, %v973_v11  ;;  %v387_v24 = vrot.slane %v177_v8, 1  ;;  %v388_v25 = vrot.slane %v178_v9, 1 }
  0x90   :  { %v1322_v26 = vrot.slane %v1066_v14, 7  ;;  %v1324_v27 = vrot.slane %v1067_v15, 6  ;;  %v1326_v28 = vrot.slane %v1068_v16, 5  ;;  %v1328_v29 = vrot.slane %v1069_v17, 4  ;;  %v193_v16 = vld [vmem:[%s2129_s0 + $0x172] sm:$0x3] }
  0x91   :  { %v1330_v30 = vrot.slane %v1070_v20, 3  ;;  %v1332_v31 = vrot.slane %v1071_v21, 2  ;;  %v389_v33 = vrot.slane %v179_v18, 1  ;;  %v390_v34 = vrot.slane %v180_v19, 1  ;;  %v194_v17 = vld [vmem:[%s2129_s0 + $0x174] sm:$0x3] }
  0x92   :  { %v1323_v35 = vsel %vm1185_vm0, %v1322_v26, %v1065_v12  ;;  %v391_v38 = vrot.slane %v181_v22, 1  ;;  %v392_v39 = vrot.slane %v182_v23, 1  ;;  %v582_v40 = vmax.f32 %v176_v63, %v386_v13  ;;  %v196_v21 = vld [vmem:[%s2129_s0 + $0x178] sm:$0x3] }
  0x93   :  { %v1325_v41 = vsel %vm1188_vm1, %v1324_v27, %v1323_v35  ;;  %v583_v45 = vmax.f32 %v177_v8, %v387_v24  ;;  %v584_v46 = vmax.f32 %v178_v9, %v388_v25  ;;  %v585_v47 = vmax.f32 %v179_v18, %v389_v33  ;;  %v195_v18 = vld [vmem:[%s2129_s0 + $0x176] sm:$0x3]  ;;  %v199_v35 = vld [vmem:[%s2129_s0 + $0x17e] sm:$0x3] }
  0x94   :  { %v1327_v48 = vsel %vm1191_vm2, %v1326_v28, %v1325_v41  ;;  %v586_v50 = vmax.f32 %v180_v19, %v390_v34  ;;  %v587_v51 = vmax.f32 %v181_v22, %v391_v38  ;;  %v588_v52 = vmax.f32 %v182_v23, %v392_v39  ;;  %v198_v34 = vld [vmem:[%s2129_s0 + $0x17c] sm:$0x3]  ;;  %v201_v41 = vld [vmem:[%s2129_s0 + $0x182] sm:$0x3] }
  0x95   :  { %v1329_v53 = vsel %vm1194_vm3, %v1328_v29, %v1327_v48  ;;  %v778_v54 = vrot.slane %v183_v32, 1  ;;  %v779_v55 = vrot.slane %v184_v36, 1  ;;  %v780_v56 = vrot.slane %v185_v37, 1 }
  0x96   :  { %v1331_v57 = vsel %vm1197_vm4, %v1330_v30, %v1329_v53  ;;  %v781_v58 = vrot.slane %v186_v42, 1  ;;  %v782_v59 = vrot.slane %v187_v43, 1  ;;  %v783_v60 = vrot.slane %v188_v44, 1  ;;  %v197_v30 = vld [vmem:[%s2129_s0 + $0x17a] sm:$0x3] }
  0x97   :  { %v1333_v62 = vsel %vm1200_vm5, %v1332_v31, %v1331_v57  ;;  %v784_v63 = vrot.slane %v189_v49, 1  ;;  %v974_v0 = vmax.f32 %v183_v32, %v778_v54  ;;  %v975_v1 = vmax.f32 %v184_v36, %v779_v55 }
  0x98   :  { %1384 = vst.msk [vmem:[%s2130_s1 + $0x58] sm:$0x7f] %vm1372_vm6, %v1333_v62  ;;  %v976_v2 = vmax.f32 %v185_v37, %v780_v56  ;;  %v977_v3 = vmax.f32 %v186_v42, %v781_v58  ;;  %v978_v4 = vmax.f32 %v187_v43, %v782_v59  ;;  %v979_v5 = vmax.f32 %v188_v44, %v783_v60  ;;  %v202_v42 = vld [vmem:[%s2129_s0 + $0x184] sm:$0x3] }
  0x99   :  { %v980_v8 = vmax.f32 %v189_v49, %v784_v63  ;;  %v1072_v9 = vmax.f32 %v582_v40, %v974_v0  ;;  %v1073_v10 = vmax.f32 %v583_v45, %v975_v1  ;;  %v393_v11 = vrot.slane %v190_v61, 1  ;;  %v200_v40 = vld [vmem:[%s2129_s0 + $0x180] sm:$0x3] }
  0x9a   :  { %v1074_v12 = vmax.f32 %v584_v46, %v976_v2  ;;  %v1075_v13 = vmax.f32 %v585_v47, %v977_v3  ;;  %v1076_v14 = vmax.f32 %v586_v50, %v978_v4  ;;  %v1077_v15 = vmax.f32 %v587_v51, %v979_v5  ;;  %v203_v47 = vld [vmem:[%s2129_s0 + $0x186] sm:$0x3] }
  0x9b   :  { %v1078_v19 = vmax.f32 %v588_v52, %v980_v8  ;;  %v1334_v20 = vrot.slane %v1073_v10, 7  ;;  %v394_v22 = vrot.slane %v191_v6, 1  ;;  %v395_v23 = vrot.slane %v192_v7, 1 }
  0x9c   :  { %v1336_v24 = vrot.slane %v1074_v12, 6  ;;  %v1338_v25 = vrot.slane %v1075_v13, 5  ;;  %v1340_v26 = vrot.slane %v1076_v14, 4  ;;  %v1342_v27 = vrot.slane %v1077_v15, 3 }
  0x9d   :  { %v1335_v28 = vsel %vm1185_vm0, %v1334_v20, %v1072_v9  ;;  %v1344_v29 = vrot.slane %v1078_v19, 2  ;;  %v396_v31 = vrot.slane %v193_v16, 1  ;;  %v397_v32 = vrot.slane %v194_v17, 1 }
  0x9e   :  { %v1337_v33 = vsel %vm1188_vm1, %v1336_v24, %v1335_v28  ;;  %v398_v36 = vrot.slane %v195_v18, 1  ;;  %v399_v37 = vrot.slane %v196_v21, 1  ;;  %v589_v38 = vmax.f32 %v190_v61, %v393_v11 }
  0x9f   :  { %v1339_v39 = vsel %vm1191_vm2, %v1338_v25, %v1337_v33  ;;  %v590_v43 = vmax.f32 %v191_v6, %v394_v22  ;;  %v591_v44 = vmax.f32 %v192_v7, %v395_v23  ;;  %v592_v45 = vmax.f32 %v193_v16, %v396_v31 }
  0xa0   :  { %v1341_v46 = vsel %vm1194_vm3, %v1340_v26, %v1339_v39  ;;  %v593_v48 = vmax.f32 %v194_v17, %v397_v32  ;;  %v594_v49 = vmax.f32 %v195_v18, %v398_v36  ;;  %v595_v50 = vmax.f32 %v196_v21, %v399_v37 }
  0xa1   :  { %v1343_v51 = vsel %vm1197_vm4, %v1342_v27, %v1341_v46  ;;  %v785_v52 = vrot.slane %v197_v30, 1  ;;  %v786_v53 = vrot.slane %v198_v34, 1  ;;  %v787_v54 = vrot.slane %v199_v35, 1 }
  0xa2   :  { %v1345_v55 = vsel %vm1200_vm5, %v1344_v29, %v1343_v51  ;;  %v788_v56 = vrot.slane %v200_v40, 1  ;;  %v789_v57 = vrot.slane %v201_v41, 1  ;;  %v790_v58 = vrot.slane %v202_v42, 1 }
  0xa3   :  { %1385 = vst.msk [vmem:[%s2130_s1 + $0x60] sm:$0x7f] %vm1372_vm6, %v1345_v55  ;;  %v791_v59 = vrot.slane %v203_v47, 1  ;;  %v981_v60 = vmax.f32 %v197_v30, %v785_v52  ;;  %v982_v61 = vmax.f32 %v198_v34, %v786_v53  ;;  %v983_v62 = vmax.f32 %v199_v35, %v787_v54 }
  0xa4   :  { %v984_v63 = vmax.f32 %v200_v40, %v788_v56  ;;  %v985_v0 = vmax.f32 %v201_v41, %v789_v57  ;;  %v986_v1 = vmax.f32 %v202_v42, %v790_v58 }
  0xa5   :  { %v987_v2 = vmax.f32 %v203_v47, %v791_v59  ;;  %v1079_v3 = vmax.f32 %v589_v38, %v981_v60  ;;  %v1080_v4 = vmax.f32 %v590_v43, %v982_v61  ;;  %v1081_v5 = vmax.f32 %v591_v44, %v983_v62 }
  0xa6   :  { %v1082_v6 = vmax.f32 %v592_v45, %v984_v63  ;;  %v1083_v7 = vmax.f32 %v593_v48, %v985_v0  ;;  %v1084_v8 = vmax.f32 %v594_v49, %v986_v1 }
  0xa7   :  { %v1085_v9 = vmax.f32 %v595_v50, %v987_v2  ;;  %v1346_v10 = vrot.slane %v1080_v4, 7  ;;  %v1348_v11 = vrot.slane %v1081_v5, 6 }
  0xa8   :  { %v1350_v12 = vrot.slane %v1082_v6, 5  ;;  %v1352_v13 = vrot.slane %v1083_v7, 4  ;;  %v1354_v15 = vrot.slane %v1084_v8, 3 }
  0xa9   :  { %v1347_v14 = vsel %vm1185_vm0, %v1346_v10, %v1079_v3  ;;  %v1356_v17 = vrot.slane %v1085_v9, 2 }
  0xaa   :  { %v1349_v16 = vsel %vm1188_vm1, %v1348_v11, %v1347_v14 }
  0xab   :  { %v1351_v18 = vsel %vm1191_vm2, %v1350_v12, %v1349_v16 }
  0xac   :  { %v1353_v19 = vsel %vm1194_vm3, %v1352_v13, %v1351_v18 }
  0xad   :  { %v1355_v20 = vsel %vm1197_vm4, %v1354_v15, %v1353_v19 }
  0xae   :  { %v1357_v21 = vsel %vm1200_vm5, %v1356_v17, %v1355_v20 }
  0xaf   :  { %1386 = vst.msk [vmem:[%s2130_s1 + $0x68] sm:$0x7f] %vm1372_vm6, %v1357_v21 }

// kernel: probies_forward.7
= control target key start
LH: loop header
LB: loop body
LE: loop exit
PB: predicated region body
PF: predicated region fallthrough
CT: control target
= control target key end

     0   :  { %vm235_vm0 = vcmask 261120   ;;  %vm376_vm1 = vcmask 523264   ;;  %vm383_vm2 = vcmask 517120   ;;  %s672_s1 = inlined_call_operand.vmem [shape: bf16[288,64], index: 1, kind: input, shape index: {}]   ;;  %s673_s0 = inlined_call_operand.vmem [shape: bf16[50,288], index: 0, kind: input, shape index: {}]   ;;  %s674_s2 = inlined_call_operand.vmem [shape: f32[1,64], index: 2, kind: input, shape index: {}]   ;;  %s675_s3 = inlined_call_operand.vmem [shape: f32[50,64], index: 3, kind: output, shape index: {}]  }
   0x1   :  { %v498_v0 = vld [vmem:[%s672_s1 + $0x78] sm:$0xff]   ;;  %v500_v2 = vld [vmem:[%s672_s1 + $0x70] sm:$0xff]   ;;  %v502_v4 = vld [vmem:[%s672_s1 + $0x68] sm:$0xff]  }
   0x2   :  { %v499_v1 = vld [vmem:[%s672_s1 + $0x38] sm:$0xff]   ;;  %424 = vmatprep.subr.bf16.mxu0 %v498_v0  ;;  %482 = vmatprep.subr.bf16.mxu1 %v498_v0  ;;  %v501_v3 = vld [vmem:[%s672_s1 + $0x30] sm:$0xff]   ;;  %v503_v5 = vld [vmem:[%s672_s1 + $0x28] sm:$0xff]  }
   0x3   :  { %425 = vmatpush3.bf16.msra.mxu0 %v499_v1  ;;  %490 = vmatpush3.bf16.msra.mxu1 %v499_v1  ;;  %v504_v6 = vld [vmem:[%s672_s1 + $0x60] sm:$0xff]   ;;  %v506_v8 = vld [vmem:[%s672_s1 + $0x58] sm:$0xff]   ;;  %v508_v10 = vld [vmem:[%s672_s1 + $0x50] sm:$0xff]  }
   0x4   :  { %426 = vmatprep.subr.bf16.mxu0 %v500_v2  ;;  %483 = vmatprep.subr.bf16.mxu1 %v500_v2  ;;  %v505_v7 = vld [vmem:[%s672_s1 + $0x20] sm:$0xff]   ;;  %v507_v9 = vld [vmem:[%s672_s1 + $0x18] sm:$0xff]   ;;  %v27_v12 = vld [vmem:[%s673_s0 + $0x48] sm:$0x11] }
   0x5   :  { %v516_v11 = vld [vmem:[%s673_s0 + $0x4] ss:$12 sps:$4 sm:$0xff]   ;;  %v400_v13 = vcombine.high %v27_v12, %v27_v12  ;;  %v510_v15 = vld [vmem:[%s672_s1 + $0x48] sm:$0xff]   ;;  %v399_v21 = vcombine.low %v27_v12, %v27_v12  ;;  %v526_v27 = vld [vmem:[%s673_s0 + $0x34] ss:$12 sps:$4 sm:$0xff]  }
   0x6   :  { %v509_v14 = vld [vmem:[%s672_s1 + $0x10] sm:$0xff]   ;;  %280 = vmatprep.mubr.bf16.mxu0 %v516_v11  ;;  %v511_v16 = vld [vmem:[%s672_s1 + $0x8] sm:$0xff]   ;;  %v512_v17 = vld [vmem:[%s672_s1 + $0x40] sm:$0xff]  }
   0x7   :  { %427 = vmatpush3.bf16.msra.mxu0 %v501_v3  ;;  %491 = vmatpush3.bf16.msra.mxu1 %v501_v3  ;;  %v513_v18 = vld [vmem:[%s672_s1] sm:$0xff]   ;;  %v519_v19 = vld [vmem:[%s672_s1 + $0x88] sm:$0xff]   ;;  %v529_v29 = vld [vmem:[%s673_s0 + $0x30] ss:$12 sps:$4 sm:$0xff]  }
   0x8   :  { %428 = vmatprep.subr.bf16.mxu0 %v502_v4  ;;  %484 = vmatprep.subr.bf16.mxu1 %v502_v4  ;;  %v514_v20 = vld [vmem:[%s673_s0] ss:$12 sps:$4 sm:$0xff]   ;;  %v521_v22 = vld [vmem:[%s673_s0 + $0x1c] ss:$12 sps:$4 sm:$0xff]   ;;  %v524_v25 = vld [vmem:[%s673_s0 + $0x18] ss:$12 sps:$4 sm:$0xff]  }
   0x9   :  { %304 = vmatprep.mubr.bf16.mxu1 %v400_v13  ;;  %v520_v23 = vld [vmem:[%s672_s1 + $0x80] sm:$0xff]   ;;  %v523_v24 = vld [vmem:[%s673_s0 + $0x8] ss:$12 sps:$4 sm:$0xff]   ;;  %v530_v30 = vld [vmem:[%s673_s0 + $0x50] ss:$0 sps:$4 sm:$0x11]  }
   0xa   :  { %v525_v26 = vld [vmem:[%s673_s0 + $0x20] ss:$12 sps:$4 sm:$0xff]   ;;  %v528_v28 = vld [vmem:[%s673_s0 + $0x38] ss:$12 sps:$4 sm:$0xff]  }
   0xb   :  { %429 = vmatpush3.bf16.msra.mxu0 %v503_v5  ;;  %492 = vmatpush3.bf16.msra.mxu1 %v503_v5  ;;  %v389_v40 = vld [vmem:[%s674_s2] ss:$0 sm:$0xff] }
   0xc   :  { %430 = vmatprep.subr.bf16.mxu0 %v504_v6  ;;  %485 = vmatprep.subr.bf16.mxu1 %v504_v6 }
   0xf   :  { %431 = vmatpush3.bf16.msra.mxu0 %v505_v7  ;;  %493 = vmatpush3.bf16.msra.mxu1 %v505_v7 }
  0x10   :  { %432 = vmatprep.subr.bf16.mxu0 %v506_v8  ;;  %486 = vmatprep.subr.bf16.mxu1 %v506_v8 }
  0x13   :  { %433 = vmatpush3.bf16.msra.mxu0 %v507_v9  ;;  %494 = vmatpush3.bf16.msra.mxu1 %v507_v9 }
  0x14   :  { %434 = vmatprep.subr.bf16.mxu0 %v508_v10  ;;  %487 = vmatprep.subr.bf16.mxu1 %v508_v10 }
  0x17   :  { %435 = vmatpush3.bf16.msra.mxu0 %v509_v14  ;;  %495 = vmatpush3.bf16.msra.mxu1 %v509_v14 }
  0x18   :  { %436 = vmatprep.subr.bf16.mxu0 %v510_v15  ;;  %488 = vmatprep.subr.bf16.mxu1 %v510_v15 }
  0x1b   :  { %437 = vmatpush3.bf16.msra.mxu0 %v511_v16  ;;  %496 = vmatpush3.bf16.msra.mxu1 %v511_v16 }
  0x1c   :  { %438 = vmatprep.subr.bf16.mxu0 %v512_v17  ;;  %489 = vmatprep.subr.bf16.mxu1 %v512_v17 }
  0x1f   :  { %439 = vmatpush3.bf16.msra.mxu0 %v513_v18  ;;  %497 = vmatpush3.bf16.msra.mxu1 %v513_v18 }
  0x20   :  { %470 = vmatprep.subr.bf16.mxu1 %v519_v19 }
  0x22   :  { %281 = vmatmul.mubr.bf16.vlgmr.msra.gmra.mxu0 %v514_v20  ;;  %305 = vmatmul.mubr.bf16.vlgmr.msra.gmra.mxu1 %v399_v21 }
  0x23   :  { %471 = vmatpush3.bf16.msra.mxu1 %v519_v19  ;;  %288 = vmatprep.mubr.bf16.mxu0 %v521_v22 }
  0x24   :  { %472 = vmatprep.subr.bf16.mxu1 %v520_v23  ;;  %474 = vmatprep.mubr.msk.bf16.mxu1 %vm235_vm0, %v523_v24 }
  0x27   :  { %473 = vmatpush3.bf16.msra.mxu1 %v520_v23 }
  0x2a   :  { %289 = vmatmul.mubr.bf16.gmra.mxu0 %v524_v25  ;;  %475 = vmatmul.mubr.msk.bf16.vlgmr.msra.gmra.mxu1 %vm235_vm0, %v525_v26 }
  0x2b   :  { %296 = vmatprep.mubr.bf16.mxu0 %v526_v27  ;;  %478 = vmatprep.mubr.msk.bf16.mxu1 %vm235_vm0, %v528_v28 }
  0x32   :  { %297 = vmatmul.mubr.bf16.gmra.mxu0 %v529_v29  ;;  %479 = vmatmul.mubr.msk.bf16.gmra.mxu1 %vm235_vm0, %v530_v30 }
  0xe2   :  { %v440_v31 = vpop.f32.mrf.mxu0  ;;  %v458_v32 = vpop.f32.mrf.mxu1 }
  0xe4   :  { %v441_v33 = vpop.f32.mrf.mxu0  ;;  %v459_v34 = vpop.f32.mrf.mxu1 }
  0xe5   :  { %v442_v37 = vadd.f32 %v441_v33, %v440_v31  ;;  %v460_v47 = vadd.f32 %v459_v34, %v458_v32 }
  0xe6   :  { %v443_v35 = vpop.f32.mrf.mxu0  ;;  %v461_v36 = vpop.f32.mrf.mxu1 }
  0xe7   :  { %v283_v44 = vadd.f32 %v442_v37, %v389_v40  ;;  %v307_v59 = vadd.f32 %v460_v47, %v389_v40 }
  0xe8   :  { %v444_v38 = vpop.f32.mrf.mxu0  ;;  %v462_v39 = vpop.f32.mrf.mxu1 }
  0xe9   :  { %v445_v43 = vadd.f32 %v444_v38, %v443_v35 }
  0xea   :  { %v446_v41 = vpop.f32.mrf.mxu0  ;;  %v476_v42 = vpop.f32.mrf.mxu1 }
  0xeb   :  { %v286_v53 = vadd.f32 %v445_v43, %v389_v40 }
  0xec   :  { %v447_v45 = vpop.f32.mrf.mxu0  ;;  %v346_v46 = vpop.f32.mrf.mxu1 }
  0xed   :  { %v448_v48 = vadd.f32 %v447_v45, %v446_v41  ;;  %v347_v49 = vadd.f32 %v346_v46, %v283_v44 }
  0xee   :  { %v449_v50 = vpop.f32.mrf.mxu0  ;;  %v477_v51 = vpop.f32.mrf.mxu1 }
  0xef   :  { %v291_v52 = vadd.f32 %v448_v48, %v389_v40  ;;  %377 = vst.msk [vmem:[%s675_s3] sm:$0xff] %vm376_vm1, %v347_v49 }
  0xf0   :  { %v450_v54 = vpop.f32.mrf.mxu0  ;;  %v349_v55 = vpop.f32.mrf.mxu1 }
  0xf1   :  { %v355_v56 = vadd.f32 %v476_v42, %v291_v52  ;;  %v451_v57 = vadd.f32 %v450_v54, %v449_v50  ;;  %v350_v58 = vadd.f32 %v349_v55, %v286_v53 }
  0xf2   :  { %v452_v60 = vpop.f32.mrf.mxu0  ;;  %v480_v61 = vpop.f32.mrf.mxu1 }
  0xf3   :  { %379 = vst.msk [vmem:[%s675_s3 + $0x10] sm:$0xff] %vm376_vm1, %v355_v56  ;;  %v294_v62 = vadd.f32 %v451_v57, %v389_v40  ;;  %378 = vst.msk [vmem:[%s675_s3 + $0x8] sm:$0xff] %vm376_vm1, %v350_v58  ;;  %v371_v63 = vadd.f32 %v480_v61, %v307_v59 }
  0xf4   :  { %v453_v0 = vpop.f32.mrf.mxu0  ;;  %v362_v1 = vpop.f32.mrf.mxu1 }
  0xf5   :  { %v358_v2 = vadd.f32 %v477_v51, %v294_v62  ;;  %384 = vst.msk [vmem:[%s675_s3 + $0x30] sm:$0x3] %vm383_vm2, %v371_v63  ;;  %v454_v3 = vadd.f32 %v453_v0, %v452_v60 }
  0xf6   :  { %v455_v4 = vpop.f32.mrf.mxu0  ;;  %v481_v5 = vpop.f32.mrf.mxu1 }
  0xf7   :  { %380 = vst.msk [vmem:[%s675_s3 + $0x18] sm:$0xff] %vm376_vm1, %v358_v2  ;;  %v299_v6 = vadd.f32 %v454_v3, %v389_v40 }
  0xf8   :  { %v456_v7 = vpop.f32.mrf.mxu0  ;;  %v365_v11 = vpop.f32.mrf.mxu1 }
  0xf9   :  { %v363_v8 = vadd.f32 %v362_v1, %v299_v6  ;;  %v457_v9 = vadd.f32 %v456_v7, %v455_v4 }
  0xfb   :  { %381 = vst.msk [vmem:[%s675_s3 + $0x20] sm:$0xff] %vm376_vm1, %v363_v8  ;;  %v302_v10 = vadd.f32 %v457_v9, %v389_v40 }
  0xfd   :  { %v366_v12 = vadd.f32 %v365_v11, %v302_v10 }
  0xff   :  { %382 = vst.msk [vmem:[%s675_s3 + $0x28] sm:$0xff] %vm376_vm1, %v366_v12 }

// kernel: probies_forward.8
= control target key start
LH: loop header
LB: loop body
LE: loop exit
PB: predicated region body
PF: predicated region fallthrough
CT: control target
= control target key end

     0   :  { %vm243_vm0 = vcmask 1041409   ;;  %vm246_vm1 = vcmask 1042434   ;;  %vm274_vm2 = vcmask 518144   ;;  %s439_s0 = inlined_call_operand.vmem [shape: f32[6,2,3,2,64], index: 0, kind: input, shape index: {}]   ;;  %s440_s1 = inlined_call_operand.vmem [shape: f32[6,3,64], index: 1, kind: output, shape index: {}]  }
   0x1   :  { %v8_v0 = vld [vmem:[%s439_s0] sm:$0x3]  ;;  %v9_v1 = vld [vmem:[%s439_s0 + $0x2] sm:$0x3]  ;;  %v10_v2 = vld [vmem:[%s439_s0 + $0x4] sm:$0x3] }
   0x2   :  { %v11_v3 = vld [vmem:[%s439_s0 + $0x6] sm:$0x3]  ;;  %v12_v4 = vld [vmem:[%s439_s0 + $0x8] sm:$0x3]  ;;  %v13_v5 = vld [vmem:[%s439_s0 + $0xa] sm:$0x3] }
   0x3   :  { %v62_v6 = vrot.slane %v8_v0, 1  ;;  %v63_v7 = vrot.slane %v9_v1, 1  ;;  %v64_v8 = vrot.slane %v10_v2, 1  ;;  %v152_v9 = vrot.slane %v11_v3, 1  ;;  %v14_v10 = vld [vmem:[%s439_s0 + $0xc] sm:$0x3] }
   0x4   :  { %v153_v11 = vrot.slane %v12_v4, 1  ;;  %v154_v12 = vrot.slane %v13_v5, 1  ;;  %v15_v13 = vld [vmem:[%s439_s0 + $0xe] sm:$0x3]  ;;  %v16_v14 = vld [vmem:[%s439_s0 + $0x10] sm:$0x3] }
   0x5   :  { %v98_v15 = vadd.f32 %v62_v6, %v8_v0  ;;  %v99_v16 = vadd.f32 %v63_v7, %v9_v1  ;;  %v100_v17 = vadd.f32 %v64_v8, %v10_v2  ;;  %v17_v18 = vld [vmem:[%s439_s0 + $0x12] sm:$0x3]  ;;  %v18_v19 = vld [vmem:[%s439_s0 + $0x14] sm:$0x3]  ;;  %v19_v20 = vld [vmem:[%s439_s0 + $0x16] sm:$0x3] }
   0x6   :  { %v65_v21 = vrot.slane %v14_v10, 1  ;;  %v66_v22 = vrot.slane %v15_v13, 1  ;;  %v67_v23 = vrot.slane %v16_v14, 1  ;;  %v155_v24 = vrot.slane %v17_v18, 1  ;;  %v20_v25 = vld [vmem:[%s439_s0 + $0x18] sm:$0x3] }
   0x7   :  { %v116_v26 = vadd.f32 %v98_v15, %v11_v3  ;;  %v117_v27 = vadd.f32 %v99_v16, %v12_v4  ;;  %v118_v28 = vadd.f32 %v100_v17, %v13_v5  ;;  %v156_v29 = vrot.slane %v18_v19, 1  ;;  %v21_v30 = vld [vmem:[%s439_s0 + $0x1a] sm:$0x3]  ;;  %v22_v35 = vld [vmem:[%s439_s0 + $0x1c] sm:$0x3] }
   0x8   :  { %v101_v31 = vadd.f32 %v65_v21, %v14_v10  ;;  %v102_v32 = vadd.f32 %v66_v22, %v15_v13  ;;  %v103_v33 = vadd.f32 %v67_v23, %v16_v14  ;;  %v157_v34 = vrot.slane %v19_v20, 1  ;;  %v23_v47 = vld [vmem:[%s439_s0 + $0x1e] sm:$0x3]  ;;  %v24_v52 = vld [vmem:[%s439_s0 + $0x20] sm:$0x3] }
   0x9   :  { %v188_v36 = vadd.f32 %v152_v9, %v116_v26  ;;  %v189_v37 = vadd.f32 %v153_v11, %v117_v27  ;;  %v190_v38 = vadd.f32 %v154_v12, %v118_v28  ;;  %v68_v39 = vrot.slane %v20_v25, 1  ;;  %v25_v53 = vld [vmem:[%s439_s0 + $0x22] sm:$0x3]  ;;  %v26_v59 = vld [vmem:[%s439_s0 + $0x24] sm:$0x3] }
   0xa   :  { %v119_v40 = vadd.f32 %v101_v31, %v17_v18  ;;  %v120_v41 = vadd.f32 %v102_v32, %v18_v19  ;;  %v121_v42 = vadd.f32 %v103_v33, %v19_v20  ;;  %v69_v43 = vrot.slane %v21_v30, 1  ;;  %v27_v0 = vld [vmem:[%s439_s0 + $0x26] sm:$0x3]  ;;  %v28_v5 = vld [vmem:[%s439_s0 + $0x28] sm:$0x3] }
   0xb   :  { %v206_v44 = vmul.f32 0.25, %v188_v36  ;;  %v207_v45 = vmul.f32 0.25, %v189_v37  ;;  %v208_v46 = vmul.f32 0.25, %v190_v38  ;;  %v70_v48 = vrot.slane %v22_v35, 1  ;;  %v29_v6 = vld [vmem:[%s439_s0 + $0x2a] sm:$0x3] }
   0xc   :  { %v191_v49 = vadd.f32 %v155_v24, %v119_v40  ;;  %v192_v50 = vadd.f32 %v156_v29, %v120_v41  ;;  %v193_v51 = vadd.f32 %v157_v34, %v121_v42  ;;  %v104_v54 = vadd.f32 %v68_v39, %v20_v25  ;;  %v30_v13 = vld [vmem:[%s439_s0 + $0x2c] sm:$0x3]  ;;  %v31_v18 = vld [vmem:[%s439_s0 + $0x2e] sm:$0x3]  ;;  %v32_v21 = vld [vmem:[%s439_s0 + $0x30] sm:$0x3] }
   0xd   :  { %v242_v55 = vrot.slane %v207_v45, 7  ;;  %v245_v56 = vrot.slane %v208_v46, 6  ;;  %v105_v57 = vadd.f32 %v69_v43, %v21_v30  ;;  %v106_v58 = vadd.f32 %v70_v48, %v22_v35  ;;  %v33_v26 = vld [vmem:[%s439_s0 + $0x32] sm:$0x3]  ;;  %v34_v31 = vld [vmem:[%s439_s0 + $0x34] sm:$0x3] }
   0xe   :  { %v209_v60 = vmul.f32 0.25, %v191_v49  ;;  %v210_v61 = vmul.f32 0.25, %v192_v50  ;;  %v211_v62 = vmul.f32 0.25, %v193_v51  ;;  %v122_v63 = vadd.f32 %v104_v54, %v23_v47  ;;  %v35_v39 = vld [vmem:[%s439_s0 + $0x36] sm:$0x3] }
   0xf   :  { %v244_v1 = vsel %vm243_vm0, %v242_v55, %v206_v44  ;;  %v123_v2 = vadd.f32 %v105_v57, %v24_v52  ;;  %v124_v3 = vadd.f32 %v106_v58, %v25_v53  ;;  %v158_v4 = vrot.slane %v23_v47, 1  ;;  %v36_v43 = vld [vmem:[%s439_s0 + $0x38] sm:$0x3]  ;;  %v37_v49 = vld [vmem:[%s439_s0 + $0x3a] sm:$0x3] }
  0x10   :  { %v247_v7 = vsel %vm246_vm1, %v245_v56, %v244_v1  ;;  %v248_v8 = vrot.slane %v210_v61, 7  ;;  %v250_v9 = vrot.slane %v211_v62, 6  ;;  %v159_v10 = vrot.slane %v24_v52, 1  ;;  %v38_v51 = vld [vmem:[%s439_s0 + $0x3c] sm:$0x3] }
  0x11   :  { %275 = vst.msk [vmem:[%s440_s1] sm:$0x7] %vm274_vm2, %v247_v7  ;;  %v160_v11 = vrot.slane %v25_v53, 1  ;;  %v194_v12 = vadd.f32 %v158_v4, %v122_v63  ;;  %v71_v14 = vrot.slane %v26_v59, 1  ;;  %v72_v15 = vrot.slane %v27_v0, 1 }
  0x12   :  { %v249_v16 = vsel %vm243_vm0, %v248_v8, %v209_v60  ;;  %v195_v17 = vadd.f32 %v159_v10, %v123_v2  ;;  %v73_v19 = vrot.slane %v28_v5, 1  ;;  %v161_v20 = vrot.slane %v29_v6, 1  ;;  %v39_v56 = vld [vmem:[%s439_s0 + $0x3e] sm:$0x3]  ;;  %v40_v61 = vld [vmem:[%s439_s0 + $0x40] sm:$0x3] }
  0x13   :  { %v251_v22 = vsel %vm246_vm1, %v250_v9, %v249_v16  ;;  %v196_v23 = vadd.f32 %v160_v11, %v124_v3  ;;  %v212_v24 = vmul.f32 0.25, %v194_v12  ;;  %v107_v25 = vadd.f32 %v71_v14, %v26_v59  ;;  %v41_v1 = vld [vmem:[%s439_s0 + $0x42] sm:$0x3]  ;;  %v42_v9 = vld [vmem:[%s439_s0 + $0x44] sm:$0x3] }
  0x14   :  { %276 = vst.msk [vmem:[%s440_s1 + $0x4] sm:$0x7] %vm274_vm2, %v251_v22  ;;  %v213_v27 = vmul.f32 0.25, %v195_v17  ;;  %v108_v28 = vadd.f32 %v72_v15, %v27_v0  ;;  %v109_v29 = vadd.f32 %v73_v19, %v28_v5  ;;  %v162_v30 = vrot.slane %v30_v13, 1  ;;  %v43_v10 = vld [vmem:[%s439_s0 + $0x46] sm:$0x3] }
  0x15   :  { %v214_v32 = vmul.f32 0.25, %v196_v23  ;;  %v125_v33 = vadd.f32 %v107_v25, %v29_v6  ;;  %v163_v34 = vrot.slane %v31_v18, 1  ;;  %v74_v35 = vrot.slane %v32_v21, 1 }
  0x16   :  { %v252_v36 = vrot.slane %v213_v27, 7  ;;  %v126_v37 = vadd.f32 %v108_v28, %v30_v13  ;;  %v127_v38 = vadd.f32 %v109_v29, %v31_v18  ;;  %v75_v40 = vrot.slane %v33_v26, 1 }
  0x17   :  { %v254_v41 = vrot.slane %v214_v32, 6  ;;  %v197_v42 = vadd.f32 %v161_v20, %v125_v33  ;;  %v76_v44 = vrot.slane %v34_v31, 1  ;;  %v110_v45 = vadd.f32 %v74_v35, %v32_v21 }
  0x18   :  { %v253_v46 = vsel %vm243_vm0, %v252_v36, %v212_v24  ;;  %v198_v47 = vadd.f32 %v162_v30, %v126_v37  ;;  %v199_v48 = vadd.f32 %v163_v34, %v127_v38  ;;  %v111_v50 = vadd.f32 %v75_v40, %v33_v26 }
  0x19   :  { %v255_v52 = vsel %vm246_vm1, %v254_v41, %v253_v46  ;;  %v215_v53 = vmul.f32 0.25, %v197_v42  ;;  %v112_v54 = vadd.f32 %v76_v44, %v34_v31  ;;  %v128_v55 = vadd.f32 %v110_v45, %v35_v39 }
  0x1a   :  { %277 = vst.msk [vmem:[%s440_s1 + $0x8] sm:$0x7] %vm274_vm2, %v255_v52  ;;  %v216_v57 = vmul.f32 0.25, %v198_v47  ;;  %v217_v58 = vmul.f32 0.25, %v199_v48  ;;  %v129_v59 = vadd.f32 %v111_v50, %v36_v43  ;;  %v164_v60 = vrot.slane %v35_v39, 1 }
  0x1b   :  { %v130_v62 = vadd.f32 %v112_v54, %v37_v49  ;;  %v165_v63 = vrot.slane %v36_v43, 1  ;;  %v166_v0 = vrot.slane %v37_v49, 1  ;;  %v77_v2 = vrot.slane %v38_v51, 1 }
  0x1c   :  { %v256_v3 = vrot.slane %v216_v57, 7  ;;  %v258_v4 = vrot.slane %v217_v58, 6  ;;  %v200_v5 = vadd.f32 %v164_v60, %v128_v55  ;;  %v78_v6 = vrot.slane %v39_v56, 1 }
  0x1d   :  { %v201_v7 = vadd.f32 %v165_v63, %v129_v59  ;;  %v202_v8 = vadd.f32 %v166_v0, %v130_v62  ;;  %v79_v11 = vrot.slane %v40_v61, 1  ;;  %v113_v12 = vadd.f32 %v77_v2, %v38_v51 }
  0x1e   :  { %v257_v13 = vsel %vm243_vm0, %v256_v3, %v215_v53  ;;  %v218_v14 = vmul.f32 0.25, %v200_v5  ;;  %v114_v15 = vadd.f32 %v78_v6, %v39_v56  ;;  %v167_v16 = vrot.slane %v41_v1, 1 }
  0x1f   :  { %v259_v17 = vsel %vm246_vm1, %v258_v4, %v257_v13  ;;  %v219_v18 = vmul.f32 0.25, %v201_v7  ;;  %v220_v19 = vmul.f32 0.25, %v202_v8  ;;  %v115_v20 = vadd.f32 %v79_v11, %v40_v61 }
  0x20   :  { %278 = vst.msk [vmem:[%s440_s1 + $0xc] sm:$0x7] %vm274_vm2, %v259_v17  ;;  %v131_v21 = vadd.f32 %v113_v12, %v41_v1  ;;  %v132_v22 = vadd.f32 %v114_v15, %v42_v9  ;;  %v168_v23 = vrot.slane %v42_v9, 1  ;;  %v169_v24 = vrot.slane %v43_v10, 1 }
  0x21   :  { %v260_v25 = vrot.slane %v219_v18, 7  ;;  %v262_v26 = vrot.slane %v220_v19, 6  ;;  %v133_v27 = vadd.f32 %v115_v20, %v43_v10 }
  0x22   :  { %v203_v28 = vadd.f32 %v167_v16, %v131_v21  ;;  %v204_v29 = vadd.f32 %v168_v23, %v132_v22 }
  0x23   :  { %v261_v30 = vsel %vm243_vm0, %v260_v25, %v218_v14  ;;  %v205_v31 = vadd.f32 %v169_v24, %v133_v27 }
  0x24   :  { %v263_v32 = vsel %vm246_vm1, %v262_v26, %v261_v30  ;;  %v221_v33 = vmul.f32 0.25, %v203_v28  ;;  %v222_v34 = vmul.f32 0.25, %v204_v29 }
  0x25   :  { %279 = vst.msk [vmem:[%s440_s1 + $0x10] sm:$0x7] %vm274_vm2, %v263_v32  ;;  %v223_v35 = vmul.f32 0.25, %v205_v31 }
  0x26   :  { %v264_v36 = vrot.slane %v222_v34, 7 }
  0x27   :  { %v266_v37 = vrot.slane %v223_v35, 6 }
  0x28   :  { %v265_v38 = vsel %vm243_vm0, %v264_v36, %v221_v33 }
  0x29   :  { %v267_v39 = vsel %vm246_vm1, %v266_v37, %v265_v38 }
  0x2a   :  { %280 = vst.msk [vmem:[%s440_s1 + $0x14] sm:$0x7] %vm274_vm2, %v267_v39 }

// kernel: probies_forward.9
= control target key start
LH: loop header
LB: loop body
LE: loop exit
PB: predicated region body
PF: predicated region fallthrough
CT: control target
= control target key end

     0   :  { %v3794_v2 = vmov 0.0   ;;  %v47_v31 = vlaneseq  ;;  %v3795_v38 = vmov 1983009808   ;;  %vm3796_vm2 = vmmov 0   ;;  %s4828_s0 = inlined_call_operand.vmem [shape: f32[2,576], index: 0, kind: input, shape index: {}]   ;;  %s4829_s1 = inlined_call_operand.vmem [shape: bf16[576,128], index: 1, kind: input, shape index: {}]   ;;  %s4830_s2 = inlined_call_operand.vmem [shape: f32[1,128], index: 2, kind: input, shape index: {}]   ;;  %s4831_s3 = inlined_call_operand.vmem [shape: bf16[128,2048], index: 3, kind: input, shape index: {}]   ;;  %s4832_s4 = inlined_call_operand.vmem [shape: f32[1,2048], index: 4, kind: input, shape index: {}]   ;;  %s4833_s5 = inlined_call_operand.vmem [shape: bf16[2048,5], index: 5, kind: input, shape index: {}]   ;;  %s4834_s6 = inlined_call_operand.vmem [shape: f32[1,5], index: 6, kind: input, shape index: {}]   ;;  %s4835_s7 = inlined_call_operand.hbm [shape: f32[2,5], index: 7, kind: output, shape index: {}]  }
   0x1   :  { %v3608_v0 = vld [vmem:[%s4829_s1 + $0x78] sm:$0xff]   ;;  %32 = vst [vmem:[#allocation2] sm:$0x3] %v3794_v2  ;;  %v3612_v5 = vld [vmem:[%s4829_s1 + $0x70] sm:$0xff]   ;;  %v3616_v9 = vld [vmem:[%s4829_s1 + $0x68] sm:$0xff]   ;;  %v45_v39 = vunpack.c.l.s4 %v3795_v38  ;;  %vm366_vm3 = vcmask 523264  }
   0x2   :  { %v3609_v1 = vld [vmem:[%s4829_s1 + $0xf8] sm:$0xff]   ;;  %3366 = vmatprep.subr.bf16.mxu0 %v3608_v0  ;;  %v3613_v6 = vld [vmem:[%s4829_s1 + $0xf0] sm:$0xff]   ;;  %v3617_v10 = vld [vmem:[%s4829_s1 + $0xe8] sm:$0xff]   ;;  %v3942_v37 = vshrl.u32 %v47_v31, 7 }
   0x3   :  { %v3610_v3 = vld [vmem:[%s4829_s1 + $0x38] sm:$0xff]   ;;  %3388 = vmatprep.subr.bf16.mxu1 %v3609_v1  ;;  %v3614_v7 = vld [vmem:[%s4829_s1 + $0x30] sm:$0xff]   ;;  %v3618_v11 = vld [vmem:[%s4829_s1 + $0x28] sm:$0xff]   ;;  %v46_v41 = vunpack.c.0.s8 %v45_v39 }
   0x4   :  { %v3611_v4 = vld [vmem:[%s4829_s1 + $0xb8] sm:$0xff]   ;;  %3367 = vmatpush3.bf16.msra.mxu0 %v3610_v3  ;;  %v3615_v8 = vld [vmem:[%s4829_s1 + $0xb0] sm:$0xff]   ;;  %v3619_v12 = vld [vmem:[%s4829_s1 + $0xa8] sm:$0xff]  }
   0x5   :  { %3389 = vmatpush3.bf16.msra.mxu1 %v3611_v4  ;;  %3368 = vmatprep.subr.bf16.mxu0 %v3612_v5  ;;  %v3620_v13 = vld [vmem:[%s4829_s1 + $0x60] sm:$0xff]   ;;  %v3624_v17 = vld [vmem:[%s4829_s1 + $0x58] sm:$0xff]   ;;  %v3628_v21 = vld [vmem:[%s4829_s1 + $0x50] sm:$0xff]   ;;  %v49_v44 = vsub.s32 %v46_v41, %v3942_v37 }
   0x6   :  { %3390 = vmatprep.subr.bf16.mxu1 %v3613_v6  ;;  %v3621_v14 = vld [vmem:[%s4829_s1 + $0xe0] sm:$0xff]   ;;  %v3625_v18 = vld [vmem:[%s4829_s1 + $0xd8] sm:$0xff]   ;;  %v3629_v22 = vld [vmem:[%s4829_s1 + $0xd0] sm:$0xff]  }
   0x7   :  { %v3622_v15 = vld [vmem:[%s4829_s1 + $0x20] sm:$0xff]   ;;  %v3626_v19 = vld [vmem:[%s4829_s1 + $0x18] sm:$0xff]   ;;  %v3630_v23 = vld [vmem:[%s4829_s1 + $0x10] sm:$0xff]  }
   0x8   :  { %3369 = vmatpush3.bf16.msra.mxu0 %v3614_v7  ;;  %v3623_v16 = vld [vmem:[%s4829_s1 + $0xa0] sm:$0xff]   ;;  %v3627_v20 = vld [vmem:[%s4829_s1 + $0x98] sm:$0xff]   ;;  %v3631_v24 = vld [vmem:[%s4829_s1 + $0x90] sm:$0xff]  }
   0x9   :  { %3391 = vmatpush3.bf16.msra.mxu1 %v3615_v8  ;;  %3370 = vmatprep.subr.bf16.mxu0 %v3616_v9  ;;  %v3632_v25 = vld [vmem:[%s4829_s1 + $0x48] sm:$0xff]   ;;  %v3636_v29 = vld [vmem:[%s4829_s1 + $0x40] sm:$0xff]   ;;  %v3640_v49 = vld [vmem:[%s4829_s1 + $0x118] sm:$0xff]  }
   0xa   :  { %3392 = vmatprep.subr.bf16.mxu1 %v3617_v10  ;;  %v3633_v26 = vld [vmem:[%s4829_s1 + $0xc8] sm:$0xff]   ;;  %v3637_v30 = vld [vmem:[%s4829_s1 + $0xc0] sm:$0xff]   ;;  %v3641_v54 = vld [vmem:[%s4829_s1 + $0x110] sm:$0xff]  }
   0xb   :  { %v3634_v27 = vld [vmem:[%s4829_s1 + $0x8] sm:$0xff]   ;;  %v3638_v32 = vld [vmem:[%s4829_s1] sm:$0xff]  }
   0xc   :  { %3371 = vmatpush3.bf16.msra.mxu0 %v3618_v11  ;;  %v3635_v28 = vld [vmem:[%s4829_s1 + $0x88] sm:$0xff]   ;;  %v3639_v33 = vld [vmem:[%s4829_s1 + $0x80] sm:$0xff]  }
   0xd   :  { %3393 = vmatpush3.bf16.msra.mxu1 %v3619_v12  ;;  %3372 = vmatprep.subr.bf16.mxu0 %v3620_v13  ;;  %v33_v34 = vld [vmem:[%s4828_s0] sm:$0xff]  ;;  %v34_v35 = vld [vmem:[%s4828_s0 + $0x8] sm:$0x3] }
   0xe   :  { %3394 = vmatprep.subr.bf16.mxu1 %v3621_v14  ;;  %vm35_vm0 = vcmp.ge.f32.partialorder %v33_v34, 0.0  ;;  %v37_v36 = vmul.f32 0.01, %v33_v34  ;;  %v38_v43 = vmul.f32 0.01, %v34_v35  ;;  %vm36_vm1 = vcmp.ge.f32.partialorder %v34_v35, 0.0 }
   0xf   :  { %v3642_v55 = vld [vmem:[%s4829_s1 + $0x108] sm:$0xff]   ;;  %v3643_v57 = vld [vmem:[%s4829_s1 + $0x100] sm:$0xff]  }
  0x10   :  { %3373 = vmatpush3.bf16.msra.mxu0 %v3622_v15  ;;  %v39_v40 = vsel %vm35_vm0, %v33_v34, %v37_v36  ;;  %v40_v56 = vsel %vm36_vm1, %v34_v35, %v38_v43  ;;  %v620_v60 = vld [vmem:[%s4831_s3 + $0x380] sm:$0xff]  ;;  %v621_v62 = vld [vmem:[%s4831_s3 + $0x388] sm:$0xff] }
  0x11   :  { %3395 = vmatpush3.bf16.msra.mxu1 %v3623_v16  ;;  %3374 = vmatprep.subr.bf16.mxu0 %v3624_v17  ;;  %v43_v42 = vcombine.high %v39_v40, %v39_v40  ;;  %v50_v45 = vrot.slane %v39_v40, %v49_v44  ;;  %v66_v58 = vrot.slane %v40_v56, %v49_v44  ;;  %v628_v61 = vld [vmem:[%s4831_s3 + $0x3c0] sm:$0xff]  ;;  %v629_v0 = vld [vmem:[%s4831_s3 + $0x3c8] sm:$0xff] }
  0x12   :  { %3396 = vmatprep.subr.bf16.mxu1 %v3625_v18  ;;  %v3222_v63 = vcombine.high %v620_v60, %v628_v61  ;;  %v3221_v1 = vcombine.low %v620_v60, %v628_v61  ;;  %v3224_v3 = vcombine.high %v621_v62, %v629_v0  ;;  %v604_v4 = vld [vmem:[%s4831_s3 + $0x300] sm:$0xff]  ;;  %v605_v6 = vld [vmem:[%s4831_s3 + $0x308] sm:$0xff] }
  0x13   :  { %v57_v46 = vrot.slane %v43_v42, %v49_v44  ;;  %v58_v47 = vcombine.high %v50_v45, %v50_v45  ;;  %v72_v50 = vpack.c.bf16 %v50_v45, %v50_v45  ;;  %v76_v59 = vpack.c.bf16 %v66_v58, %v66_v58  ;;  %v612_v5 = vld [vmem:[%s4831_s3 + $0x340] sm:$0xff]  ;;  %v613_v8 = vld [vmem:[%s4831_s3 + $0x348] sm:$0xff] }
  0x14   :  { %3375 = vmatpush3.bf16.msra.mxu0 %v3626_v19  ;;  %v3206_v7 = vcombine.high %v604_v4, %v612_v5  ;;  %v3205_v9 = vcombine.low %v604_v4, %v612_v5  ;;  %v3207_v10 = vcombine.low %v605_v6, %v613_v8  ;;  %v3208_v11 = vcombine.high %v605_v6, %v613_v8  ;;  %v588_v12 = vld [vmem:[%s4831_s3 + $0x280] sm:$0xff]  ;;  %v589_v14 = vld [vmem:[%s4831_s3 + $0x288] sm:$0xff] }
  0x15   :  { %3397 = vmatpush3.bf16.msra.mxu1 %v3627_v20  ;;  %3376 = vmatprep.subr.bf16.mxu0 %v3628_v21  ;;  %v59_v48 = vcombine.high %v57_v46, %v57_v46  ;;  %v74_v51 = vpack.c.bf16 %v57_v46, %v57_v46  ;;  %v73_v52 = vpack.c.bf16 %v58_v47, %v58_v47  ;;  %v596_v13 = vld [vmem:[%s4831_s3 + $0x2c0] sm:$0xff]  ;;  %v597_v16 = vld [vmem:[%s4831_s3 + $0x2c8] sm:$0xff] }
  0x16   :  { %3398 = vmatprep.subr.bf16.mxu1 %v3629_v22  ;;  %v3190_v15 = vcombine.high %v588_v12, %v596_v13  ;;  %v572_v17 = vld [vmem:[%s4831_s3 + $0x200] sm:$0xff]  ;;  %v3189_v19 = vcombine.low %v588_v12, %v596_v13  ;;  %v3192_v20 = vcombine.high %v589_v14, %v597_v16  ;;  %v573_v21 = vld [vmem:[%s4831_s3 + $0x208] sm:$0xff] }
  0x17   :  { %v75_v53 = vpack.c.bf16 %v59_v48, %v59_v48  ;;  %402 = vmatprep.mubr.bf16.mxu0 %v73_v52  ;;  %v580_v18 = vld [vmem:[%s4831_s3 + $0x240] sm:$0xff]  ;;  %v581_v22 = vld [vmem:[%s4831_s3 + $0x248] sm:$0xff] }
  0x18   :  { %3377 = vmatpush3.bf16.msra.mxu0 %v3630_v23  ;;  %v3191_v23 = vcombine.low %v589_v14, %v597_v16 }
  0x19   :  { %3399 = vmatpush3.bf16.msra.mxu1 %v3631_v24  ;;  %3378 = vmatprep.subr.bf16.mxu0 %v3632_v25  ;;  %v3174_v24 = vcombine.high %v572_v17, %v580_v18  ;;  %v3176_v25 = vcombine.high %v573_v21, %v581_v22 }
  0x1a   :  { %3400 = vmatprep.subr.bf16.mxu1 %v3633_v26  ;;  %442 = vmatprep.mubr.bf16.mxu1 %v75_v53  ;;  %v3173_v26 = vcombine.low %v572_v17, %v580_v18 }
  0x1c   :  { %3379 = vmatpush3.bf16.msra.mxu0 %v3634_v27  ;;  %v3175_v27 = vcombine.low %v573_v21, %v581_v22 }
  0x1d   :  { %3401 = vmatpush3.bf16.msra.mxu1 %v3635_v28  ;;  %3380 = vmatprep.subr.bf16.mxu0 %v3636_v29  ;;  %v556_v28 = vld [vmem:[%s4831_s3 + $0x180] sm:$0xff] }
  0x1e   :  { %3402 = vmatprep.subr.bf16.mxu1 %v3637_v30  ;;  %v564_v29 = vld [vmem:[%s4831_s3 + $0x1c0] sm:$0xff]  ;;  %v557_v30 = vld [vmem:[%s4831_s3 + $0x188] sm:$0xff] }
  0x1f   :  { %v3158_v31 = vcombine.high %v556_v28, %v564_v29 }
  0x20   :  { %3381 = vmatpush3.bf16.msra.mxu0 %v3638_v32  ;;  %v565_v32 = vld [vmem:[%s4831_s3 + $0x1c8] sm:$0xff] }
  0x21   :  { %3403 = vmatpush3.bf16.msra.mxu1 %v3639_v33  ;;  %3591 = vmatprep.subr.bf16.mxu0 %v3794_v2  ;;  %v3157_v33 = vcombine.low %v556_v28, %v564_v29  ;;  %v3159_v34 = vcombine.low %v557_v30, %v565_v32  ;;  %v3160_v35 = vcombine.high %v557_v30, %v565_v32 }
  0x22   :  { %1360 = vmatprep.subr.bf16.mxu1 %v3222_v63 }
  0x23   :  { %403 = vmatmul.mubr.bf16.vlgmr.msra.gmra.mxu0 %v72_v50 }
  0x24   :  { %443 = vmatmul.mubr.bf16.vlgmr.msra.gmra.mxu1 %v74_v51  ;;  %3592 = vmatpush3.bf16.msra.mxu0 %v3640_v49 }
  0x25   :  { %3599 = vmatprep.mubr.msk.bf16.mxu0 %vm3796_vm2, %v3794_v2  ;;  %3593 = vmatprep.subr.bf16.mxu0 %v3794_v2 }
  0x26   :  { %1361 = vmatpush1.bf16.msra.mxu1 %v3221_v1 }
  0x27   :  { %1362 = vmatprep.subr.bf16.mxu1 %v3206_v7 }
  0x28   :  { %3594 = vmatpush3.bf16.msra.mxu0 %v3641_v54 }
  0x29   :  { %3595 = vmatprep.subr.bf16.mxu0 %v3794_v2 }
  0x2a   :  { %1363 = vmatpush1.bf16.msra.mxu1 %v3205_v9 }
  0x2b   :  { %1364 = vmatprep.subr.bf16.mxu1 %v3190_v15 }
  0x2c   :  { %3596 = vmatpush3.bf16.msra.mxu0 %v3642_v55 }
  0x2d   :  { %3597 = vmatprep.subr.bf16.mxu0 %v3794_v2  ;;  %v3223_v2 = vcombine.low %v621_v62, %v629_v0 }
  0x2e   :  { %1365 = vmatpush1.bf16.msra.mxu1 %v3189_v19 }
  0x2f   :  { %1366 = vmatprep.subr.bf16.mxu1 %v3174_v24 }
  0x30   :  { %3598 = vmatpush3.bf16.msra.mxu0 %v3643_v57 }
  0x31   :  { %1401 = vmatprep.subr.bf16.mxu0 %v3224_v3 }
  0x32   :  { %1367 = vmatpush1.bf16.msra.mxu1 %v3173_v26 }
  0x33   :  { %3600 = vmatmul.mubr.msk.bf16.vlgmr.msra.gmra.mxu0 %vm366_vm3, %v76_v59  ;;  %1368 = vmatprep.subr.bf16.mxu1 %v3158_v31 }
  0x34   :  { %1402 = vmatpush1.bf16.msra.mxu0 %v3223_v2 }
  0x35   :  { %1403 = vmatprep.subr.bf16.mxu0 %v3208_v11 }
  0x38   :  { %1404 = vmatpush1.bf16.msra.mxu0 %v3207_v10 }
  0x39   :  { %1405 = vmatprep.subr.bf16.mxu0 %v3192_v20 }
  0x3c   :  { %1406 = vmatpush1.bf16.msra.mxu0 %v3191_v23 }
  0x3d   :  { %1407 = vmatprep.subr.bf16.mxu0 %v3176_v25 }
  0x40   :  { %1408 = vmatpush1.bf16.msra.mxu0 %v3175_v27 }
  0x41   :  { %12 = vsyncpa [#allocation4], 0  ;;  %1409 = vmatprep.subr.bf16.mxu0 %v3160_v35  ;;  %1369 = vmatpush1.bf16.msra.mxu1 %v3157_v33  ;;  %v540_v36 = vld [vmem:[%s4831_s3 + $0x100] sm:$0xff]  ;;  %v541_v39 = vld [vmem:[%s4831_s3 + $0x108] sm:$0xff]  ;;  %v3797_v52 = vmov 0   ;;  %vm3055_vm5 = vcmask 33792  }
  0x42   :  { %v548_v38 = vld [vmem:[%s4831_s3 + $0x140] sm:$0xff]  ;;  %v549_v41 = vld [vmem:[%s4831_s3 + $0x148] sm:$0xff]  ;;  %1392 = vmatprep.mubr.bf16.mxu1 %v3797_v52  ;;  %v4063_v57 = vld [vmem:[%s4831_s3 + $0x390] sm:$0xff]  ;;  %1433 = vmatprep.mubr.bf16.mxu0 %v3797_v52 }
  0x43   :  { %v3142_v40 = vcombine.high %v540_v36, %v548_v38  ;;  %v3141_v42 = vcombine.low %v540_v36, %v548_v38  ;;  %v3143_v43 = vcombine.low %v541_v39, %v549_v41  ;;  %v3144_v44 = vcombine.high %v541_v39, %v549_v41  ;;  %v524_v45 = vld [vmem:[%s4831_s3 + $0x80] sm:$0xff]  ;;  %v525_v47 = vld [vmem:[%s4831_s3 + $0x88] sm:$0xff]  ;;  %v630_v60 = vld [vmem:[%s4831_s3 + $0x3d0] sm:$0xff] }
  0x44   :  { %1410 = vmatpush1.bf16.msra.mxu0 %v3159_v34  ;;  %v532_v46 = vld [vmem:[%s4831_s3 + $0xc0] sm:$0xff]  ;;  %v533_v49 = vld [vmem:[%s4831_s3 + $0xc8] sm:$0xff]  ;;  %v623_v61 = vld [vmem:[%s4831_s3 + $0x398] sm:$0xff]  ;;  %v3225_v0 = vcombine.low %v4063_v57, %v630_v60  ;;  %v3226_v4 = vcombine.high %v4063_v57, %v630_v60 }
  0x45   :  { %1370 = vmatprep.subr.bf16.mxu1 %v3142_v40  ;;  %v3126_v48 = vcombine.high %v524_v45, %v532_v46  ;;  %v508_v50 = vld [vmem:[%s4831_s3] sm:$0xff]  ;;  %1411 = vmatprep.subr.bf16.mxu0 %v3144_v44  ;;  %v3125_v53 = vcombine.low %v524_v45, %v532_v46  ;;  %v3128_v54 = vcombine.high %v525_v47, %v533_v49  ;;  %v509_v55 = vld [vmem:[%s4831_s3 + $0x8] sm:$0xff]  ;;  %v631_v62 = vld [vmem:[%s4831_s3 + $0x3d8] sm:$0xff] }
  0x46   :  { %v516_v51 = vld [vmem:[%s4831_s3 + $0x40] sm:$0xff]  ;;  %1371 = vmatpush1.bf16.msra.mxu1 %v3141_v42  ;;  %v517_v56 = vld [vmem:[%s4831_s3 + $0x48] sm:$0xff]  ;;  %v3127_v58 = vcombine.low %v525_v47, %v533_v49  ;;  %v3227_v1 = vcombine.low %v623_v61, %v631_v62  ;;  %v3228_v5 = vcombine.high %v623_v61, %v631_v62  ;;  %v606_v27 = vld [vmem:[%s4831_s3 + $0x310] sm:$0xff] }
  0x47   :  { %1372 = vmatprep.subr.bf16.mxu1 %v3126_v48  ;;  %v3110_v59 = vcombine.high %v508_v50, %v516_v51  ;;  %v3112_v63 = vcombine.high %v509_v55, %v517_v56  ;;  %v3109_v2 = vcombine.low %v508_v50, %v516_v51  ;;  %v3111_v3 = vcombine.low %v509_v55, %v517_v56  ;;  %v77_v17 = vld [vmem:[#allocation2] sm:$0x3]  ;;  %v614_v29 = vld [vmem:[%s4831_s3 + $0x350] sm:$0xff]  ;;  %v607_v30 = vld [vmem:[%s4831_s3 + $0x318] sm:$0xff] }
  0x48   :  { %1412 = vmatpush1.bf16.msra.mxu0 %v3143_v43  ;;  %v3108_v24 = vld [vmem:[%s4830_s2] ss:$0 sm:$0xff]  ;;  %v615_v31 = vld [vmem:[%s4831_s3 + $0x358] sm:$0xff]  ;;  %v3210_v34 = vcombine.high %v606_v27, %v614_v29  ;;  %v590_v36 = vld [vmem:[%s4831_s3 + $0x290] sm:$0xff]  ;;  %v3209_v41 = vcombine.low %v606_v27, %v614_v29 }
  0x49   :  { %1413 = vmatprep.subr.bf16.mxu0 %v3128_v54  ;;  %v3212_v35 = vcombine.high %v607_v30, %v615_v31  ;;  %v598_v38 = vld [vmem:[%s4831_s3 + $0x2d0] sm:$0xff]  ;;  %v591_v39 = vld [vmem:[%s4831_s3 + $0x298] sm:$0xff]  ;;  %v3211_v42 = vcombine.low %v607_v30, %v615_v31  ;;  %v608_v30 = vld [vmem:[%s4831_s3 + $0x320] sm:$0xff] }
  0x4a   :  { %1373 = vmatpush1.bf16.msra.mxu1 %v3125_v53  ;;  %v599_v40 = vld [vmem:[%s4831_s3 + $0x2d8] sm:$0xff]  ;;  %v3194_v43 = vcombine.high %v590_v36, %v598_v38  ;;  %v574_v45 = vld [vmem:[%s4831_s3 + $0x210] sm:$0xff]  ;;  %v3193_v49 = vcombine.low %v590_v36, %v598_v38  ;;  %v616_v31 = vld [vmem:[%s4831_s3 + $0x360] sm:$0xff] }
  0x4b   :  { %1374 = vmatprep.subr.bf16.mxu1 %v3110_v59  ;;  %v3196_v44 = vcombine.high %v591_v39, %v599_v40  ;;  %v582_v46 = vld [vmem:[%s4831_s3 + $0x250] sm:$0xff]  ;;  %v575_v47 = vld [vmem:[%s4831_s3 + $0x218] sm:$0xff]  ;;  %v3195_v50 = vcombine.low %v591_v39, %v599_v40  ;;  %v3214_v38 = vcombine.high %v608_v30, %v616_v31  ;;  %v592_v40 = vld [vmem:[%s4831_s3 + $0x2a0] sm:$0xff] }
  0x4c   :  { %1414 = vmatpush1.bf16.msra.mxu0 %v3127_v58  ;;  %v583_v48 = vld [vmem:[%s4831_s3 + $0x258] sm:$0xff]  ;;  %v3178_v51 = vcombine.high %v574_v45, %v582_v46  ;;  %v558_v54 = vld [vmem:[%s4831_s3 + $0x190] sm:$0xff]  ;;  %v3177_v58 = vcombine.low %v574_v45, %v582_v46 }
  0x4d   :  { %1415 = vmatprep.subr.bf16.mxu0 %v3112_v63  ;;  %v3180_v53 = vcombine.high %v575_v47, %v583_v48  ;;  %v566_v55 = vld [vmem:[%s4831_s3 + $0x1d0] sm:$0xff]  ;;  %v559_v56 = vld [vmem:[%s4831_s3 + $0x198] sm:$0xff]  ;;  %v3179_v59 = vcombine.low %v575_v47, %v583_v48  ;;  %v576_v48 = vld [vmem:[%s4831_s3 + $0x220] sm:$0xff] }
  0x4e   :  { %1375 = vmatpush1.bf16.msra.mxu1 %v3109_v2  ;;  %v567_v57 = vld [vmem:[%s4831_s3 + $0x1d8] sm:$0xff]  ;;  %v3162_v60 = vcombine.high %v558_v54, %v566_v55  ;;  %v542_v62 = vld [vmem:[%s4831_s3 + $0x110] sm:$0xff]  ;;  %v3161_v2 = vcombine.low %v558_v54, %v566_v55 }
  0x4f   :  { %1442 = vmatprep.subr.bf16.mxu1 %v3226_v4  ;;  %v3164_v61 = vcombine.high %v559_v56, %v567_v57  ;;  %v550_v63 = vld [vmem:[%s4831_s3 + $0x150] sm:$0xff] }
  0x50   :  { %1416 = vmatpush1.bf16.msra.mxu0 %v3111_v3  ;;  %v3163_v3 = vcombine.low %v559_v56, %v567_v57  ;;  %v3146_v4 = vcombine.high %v542_v62, %v550_v63  ;;  %v560_v57 = vld [vmem:[%s4831_s3 + $0x1a0] sm:$0xff] }
  0x51   :  { %1483 = vmatprep.subr.bf16.mxu0 %v3228_v5 }
  0xe3   :  { %v3382_v6 = vpop.f32.mrf.mxu0 }
  0xe4   :  { %v3404_v7 = vpop.f32.mrf.mxu1 }
  0xe5   :  { %v3383_v8 = vpop.f32.mrf.mxu0 }
  0xe6   :  { %v3405_v9 = vpop.f32.mrf.mxu1  ;;  %v3384_v14 = vadd.f32 %v3383_v8, %v3382_v6  ;;  %v526_v6 = vld [vmem:[%s4831_s3 + $0x90] sm:$0xff]  ;;  %v527_v8 = vld [vmem:[%s4831_s3 + $0x98] sm:$0xff] }
  0xe7   :  { %v3385_v10 = vpop.f32.mrf.mxu0  ;;  %v3406_v15 = vadd.f32 %v3405_v9, %v3404_v7  ;;  %v534_v7 = vld [vmem:[%s4831_s3 + $0xd0] sm:$0xff]  ;;  %v535_v9 = vld [vmem:[%s4831_s3 + $0xd8] sm:$0xff] }
  0xe8   :  { %v3407_v11 = vpop.f32.mrf.mxu1  ;;  %v3145_v10 = vcombine.low %v542_v62, %v550_v63 }
  0xe9   :  { %v3386_v12 = vpop.f32.mrf.mxu0  ;;  %v445_v16 = vadd.f32 %v3406_v15, %v3384_v14  ;;  %v510_v14 = vld [vmem:[%s4831_s3 + $0x10] sm:$0xff] }
  0xea   :  { %v3408_v13 = vpop.f32.mrf.mxu1  ;;  %v3130_v12 = vcombine.high %v526_v6, %v534_v7  ;;  %v518_v15 = vld [vmem:[%s4831_s3 + $0x50] sm:$0xff] }
  0xeb   :  { %v3132_v13 = vcombine.high %v527_v8, %v535_v9 }
  0xf3   :  { %v484_v18 = vpop.f32.mrf.mxu0 }
  0xf4   :  { %v485_v19 = vadd.f32 %v484_v18, %v445_v16  ;;  %v511_v16 = vld [vmem:[%s4831_s3 + $0x18] sm:$0xff]  ;;  %v3129_v18 = vcombine.low %v526_v6, %v534_v7 }
  0xf5   :  { %v3601_v20 = vpop.f32.mrf.mxu0 }
  0xf6   :  { %v490_v21 = vadd.f32 %v485_v19, %v77_v17  ;;  %v519_v17 = vld [vmem:[%s4831_s3 + $0x58] sm:$0xff]  ;;  %v3131_v19 = vcombine.low %v527_v8, %v535_v9  ;;  %v3114_v20 = vcombine.high %v510_v14, %v518_v15  ;;  %v528_v9 = vld [vmem:[%s4831_s3 + $0xa0] sm:$0xff] }
  0xf7   :  { %v487_v22 = vpop.f32.mrf.mxu0  ;;  %v3115_v27 = vcombine.low %v511_v16, %v519_v17 }
  0xf8   :  { %491 = vst [vmem:[#allocation2] sm:$0x3] %v490_v21  ;;  %v3116_v21 = vcombine.high %v511_v16, %v519_v17  ;;  %v624_v22 = vld [vmem:[%s4831_s3 + $0x3a0] sm:$0xff] }
  0xf9   :  { %v3602_v23 = vpop.f32.mrf.mxu0  ;;  %v512_v17 = vld [vmem:[%s4831_s3 + $0x20] sm:$0xff] }
  0xfa   :  { %v632_v23 = vld [vmem:[%s4831_s3 + $0x3e0] sm:$0xff] }
  0xff   :  { %v495_v25 = vld [vmem:[#allocation2] sm:$0x3] }
 0x100   :  { %v503_v26 = vadd.f32 %v3108_v24, %v495_v25  ;;  %v625_v24 = vld [vmem:[%s4831_s3 + $0x3a8] sm:$0xff] }
 0x101   :  { %v633_v25 = vld [vmem:[%s4831_s3 + $0x3e8] sm:$0xff] }
 0x102   :  { %vm504_vm4 = vcmp.ge.f32.partialorder %v503_v26, 0.0  ;;  %v505_v28 = vmul.f32 0.01, %v503_v26  ;;  %v3232_v29 = vcombine.high %v625_v24, %v633_v25  ;;  %v3231_v36 = vcombine.low %v625_v24, %v633_v25  ;;  %v626_v25 = vld [vmem:[%s4831_s3 + $0x3b0] sm:$0xff] }
 0x104   :  { %v506_v32 = vsel %vm504_vm4, %v503_v26, %v505_v28  ;;  %v3113_v26 = vcombine.low %v510_v14, %v518_v15  ;;  %v3230_v28 = vcombine.high %v624_v22, %v632_v23 }
 0x105   :  { %v4092_v33 = vpack.c.bf16 %v506_v32, %v506_v32  ;;  %v609_v32 = vld [vmem:[%s4831_s3 + $0x328] sm:$0xff] }
 0x107   :  { %1393 = vmatmul.mubr.bf16.vlgmr.msra.gmra.mxu1 %v4092_v33  ;;  %1434 = vmatmul.mubr.bf16.vlgmr.msra.gmra.mxu0 %v4092_v33 }
 0x108   :  { %1443 = vmatpush1.bf16.msra.mxu1 %v3225_v0  ;;  %1484 = vmatpush1.bf16.msra.mxu0 %v3227_v1  ;;  %v543_v0 = vld [vmem:[%s4831_s3 + $0x118] sm:$0xff] }
 0x109   :  { %1444 = vmatprep.subr.bf16.mxu1 %v3210_v34  ;;  %1485 = vmatprep.subr.bf16.mxu0 %v3212_v35  ;;  %v551_v1 = vld [vmem:[%s4831_s3 + $0x158] sm:$0xff]  ;;  %v617_v34 = vld [vmem:[%s4831_s3 + $0x368] sm:$0xff]  ;;  %v3229_v35 = vcombine.low %v624_v22, %v632_v23 }
 0x10a   :  { %1474 = vmatprep.mubr.bf16.mxu1 %v3797_v52  ;;  %1515 = vmatprep.mubr.bf16.mxu0 %v3797_v52  ;;  %v3148_v5 = vcombine.high %v543_v0, %v551_v1  ;;  %v3147_v11 = vcombine.low %v543_v0, %v551_v1  ;;  %v3216_v39 = vcombine.high %v609_v32, %v617_v34  ;;  %v544_v1 = vld [vmem:[%s4831_s3 + $0x120] sm:$0xff] }
 0x10b   :  { %v3215_v45 = vcombine.low %v609_v32, %v617_v34  ;;  %v610_v34 = vld [vmem:[%s4831_s3 + $0x330] sm:$0xff] }
 0x10c   :  { %1445 = vmatpush1.bf16.msra.mxu1 %v3209_v41  ;;  %1486 = vmatpush1.bf16.msra.mxu0 %v3211_v42  ;;  %v600_v41 = vld [vmem:[%s4831_s3 + $0x2e0] sm:$0xff]  ;;  %v593_v42 = vld [vmem:[%s4831_s3 + $0x2a8] sm:$0xff] }
 0x10d   :  { %1446 = vmatprep.subr.bf16.mxu1 %v3194_v43  ;;  %1487 = vmatprep.subr.bf16.mxu0 %v3196_v44  ;;  %v601_v43 = vld [vmem:[%s4831_s3 + $0x2e8] sm:$0xff]  ;;  %v3213_v44 = vcombine.low %v608_v30, %v616_v31  ;;  %v3198_v46 = vcombine.high %v592_v40, %v600_v41 }
 0x10e   :  { %v3200_v47 = vcombine.high %v593_v42, %v601_v43  ;;  %v3199_v54 = vcombine.low %v593_v42, %v601_v43  ;;  %v594_v43 = vld [vmem:[%s4831_s3 + $0x2b0] sm:$0xff] }
 0x110   :  { %1447 = vmatpush1.bf16.msra.mxu1 %v3193_v49  ;;  %1488 = vmatpush1.bf16.msra.mxu0 %v3195_v50  ;;  %v584_v49 = vld [vmem:[%s4831_s3 + $0x260] sm:$0xff]  ;;  %v577_v50 = vld [vmem:[%s4831_s3 + $0x228] sm:$0xff] }
 0x111   :  { %1448 = vmatprep.subr.bf16.mxu1 %v3178_v51  ;;  %1489 = vmatprep.subr.bf16.mxu0 %v3180_v53  ;;  %v585_v51 = vld [vmem:[%s4831_s3 + $0x268] sm:$0xff]  ;;  %v3197_v53 = vcombine.low %v592_v40, %v600_v41  ;;  %v3182_v55 = vcombine.high %v576_v48, %v584_v49 }
 0x112   :  { %v3184_v56 = vcombine.high %v577_v50, %v585_v51  ;;  %v3183_v62 = vcombine.low %v577_v50, %v585_v51  ;;  %v578_v51 = vld [vmem:[%s4831_s3 + $0x230] sm:$0xff] }
 0x114   :  { %1449 = vmatpush1.bf16.msra.mxu1 %v3177_v58  ;;  %1490 = vmatpush1.bf16.msra.mxu0 %v3179_v59  ;;  %v568_v58 = vld [vmem:[%s4831_s3 + $0x1e0] sm:$0xff]  ;;  %v561_v59 = vld [vmem:[%s4831_s3 + $0x1a8] sm:$0xff] }
 0x115   :  { %1450 = vmatprep.subr.bf16.mxu1 %v3162_v60  ;;  %1491 = vmatprep.subr.bf16.mxu0 %v3164_v61  ;;  %v569_v60 = vld [vmem:[%s4831_s3 + $0x1e8] sm:$0xff]  ;;  %v3181_v61 = vcombine.low %v576_v48, %v584_v49  ;;  %v3166_v63 = vcombine.high %v560_v57, %v568_v58 }
 0x116   :  { %v3168_v0 = vcombine.high %v561_v59, %v569_v60  ;;  %v3167_v6 = vcombine.low %v561_v59, %v569_v60  ;;  %v562_v60 = vld [vmem:[%s4831_s3 + $0x1b0] sm:$0xff] }
 0x118   :  { %1451 = vmatpush1.bf16.msra.mxu1 %v3161_v2  ;;  %1492 = vmatpush1.bf16.msra.mxu0 %v3163_v3  ;;  %v552_v2 = vld [vmem:[%s4831_s3 + $0x160] sm:$0xff]  ;;  %v545_v3 = vld [vmem:[%s4831_s3 + $0x128] sm:$0xff] }
 0x119   :  { %1452 = vmatprep.subr.bf16.mxu1 %v3146_v4  ;;  %1493 = vmatprep.subr.bf16.mxu0 %v3148_v5  ;;  %v553_v4 = vld [vmem:[%s4831_s3 + $0x168] sm:$0xff]  ;;  %v3165_v5 = vcombine.low %v560_v57, %v568_v58  ;;  %v3150_v7 = vcombine.high %v544_v1, %v552_v2 }
 0x11a   :  { %v3152_v8 = vcombine.high %v545_v3, %v553_v4  ;;  %v3151_v14 = vcombine.low %v545_v3, %v553_v4  ;;  %v546_v3 = vld [vmem:[%s4831_s3 + $0x130] sm:$0xff] }
 0x11b   :  { %v554_v4 = vld [vmem:[%s4831_s3 + $0x170] sm:$0xff] }
 0x11c   :  { %1453 = vmatpush1.bf16.msra.mxu1 %v3145_v10  ;;  %1494 = vmatpush1.bf16.msra.mxu0 %v3147_v11  ;;  %v536_v10 = vld [vmem:[%s4831_s3 + $0xe0] sm:$0xff]  ;;  %v529_v11 = vld [vmem:[%s4831_s3 + $0xa8] sm:$0xff] }
 0x11d   :  { %1454 = vmatprep.subr.bf16.mxu1 %v3130_v12  ;;  %1495 = vmatprep.subr.bf16.mxu0 %v3132_v13  ;;  %v537_v12 = vld [vmem:[%s4831_s3 + $0xe8] sm:$0xff]  ;;  %v3149_v13 = vcombine.low %v544_v1, %v552_v2  ;;  %v3134_v15 = vcombine.high %v528_v9, %v536_v10 }
 0x11e   :  { %v3136_v16 = vcombine.high %v529_v11, %v537_v12  ;;  %v3135_v22 = vcombine.low %v529_v11, %v537_v12  ;;  %v530_v11 = vld [vmem:[%s4831_s3 + $0xb0] sm:$0xff] }
 0x11f   :  { %v538_v12 = vld [vmem:[%s4831_s3 + $0xf0] sm:$0xff] }
 0x120   :  { %1455 = vmatpush1.bf16.msra.mxu1 %v3129_v18  ;;  %1496 = vmatpush1.bf16.msra.mxu0 %v3131_v19  ;;  %v520_v18 = vld [vmem:[%s4831_s3 + $0x60] sm:$0xff]  ;;  %v513_v19 = vld [vmem:[%s4831_s3 + $0x28] sm:$0xff] }
 0x121   :  { %1456 = vmatprep.subr.bf16.mxu1 %v3114_v20  ;;  %1497 = vmatprep.subr.bf16.mxu0 %v3116_v21  ;;  %v521_v20 = vld [vmem:[%s4831_s3 + $0x68] sm:$0xff]  ;;  %v3133_v21 = vcombine.low %v528_v9, %v536_v10  ;;  %v3118_v23 = vcombine.high %v512_v17, %v520_v18  ;;  %v3154_v9 = vcombine.high %v546_v3, %v554_v4 }
 0x122   :  { %v3120_v24 = vcombine.high %v513_v19, %v521_v20  ;;  %v3119_v30 = vcombine.low %v513_v19, %v521_v20  ;;  %v514_v19 = vld [vmem:[%s4831_s3 + $0x30] sm:$0xff] }
 0x123   :  { %v522_v20 = vld [vmem:[%s4831_s3 + $0x70] sm:$0xff] }
 0x124   :  { %1457 = vmatpush1.bf16.msra.mxu1 %v3113_v26  ;;  %1498 = vmatpush1.bf16.msra.mxu0 %v3115_v27  ;;  %v634_v26 = vld [vmem:[%s4831_s3 + $0x3f0] sm:$0xff]  ;;  %v627_v27 = vld [vmem:[%s4831_s3 + $0x3b8] sm:$0xff] }
 0x125   :  { %1524 = vmatprep.subr.bf16.mxu1 %v3230_v28  ;;  %1565 = vmatprep.subr.bf16.mxu0 %v3232_v29  ;;  %v635_v28 = vld [vmem:[%s4831_s3 + $0x3f8] sm:$0xff]  ;;  %v3117_v29 = vcombine.low %v512_v17, %v520_v18  ;;  %v3234_v31 = vcombine.high %v626_v25, %v634_v26  ;;  %v3138_v17 = vcombine.high %v530_v11, %v538_v12 }
 0x126   :  { %v3236_v32 = vcombine.high %v627_v27, %v635_v28  ;;  %v3235_v40 = vcombine.low %v627_v27, %v635_v28  ;;  %v3121_v27 = vcombine.low %v514_v19, %v522_v20 }
 0x127   :  { %1475 = vmatmul.mubr.bf16.vlgmr.msra.gmra.mxu1 %v4092_v33  ;;  %1516 = vmatmul.mubr.bf16.vlgmr.msra.gmra.mxu0 %v4092_v33 }
 0x128   :  { %1525 = vmatpush1.bf16.msra.mxu1 %v3229_v35  ;;  %1566 = vmatpush1.bf16.msra.mxu0 %v3231_v36  ;;  %v618_v35 = vld [vmem:[%s4831_s3 + $0x370] sm:$0xff]  ;;  %v611_v36 = vld [vmem:[%s4831_s3 + $0x338] sm:$0xff] }
 0x129   :  { %1526 = vmatprep.subr.bf16.mxu1 %v3214_v38  ;;  %1567 = vmatprep.subr.bf16.mxu0 %v3216_v39  ;;  %v619_v38 = vld [vmem:[%s4831_s3 + $0x378] sm:$0xff]  ;;  %v3233_v39 = vcombine.low %v626_v25, %v634_v26  ;;  %v3218_v41 = vcombine.high %v610_v34, %v618_v35  ;;  %v3122_v25 = vcombine.high %v514_v19, %v522_v20 }
 0x12a   :  { %1556 = vmatprep.mubr.bf16.mxu1 %v3797_v52  ;;  %1597 = vmatprep.mubr.bf16.mxu0 %v3797_v52  ;;  %v3220_v42 = vcombine.high %v611_v36, %v619_v38  ;;  %v3219_v48 = vcombine.low %v611_v36, %v619_v38  ;;  %v3650_v36 = vld [vmem:[%s4833_s5 + $0x30] sm:$0xff]  }
 0x12b   :  { %v3651_v38 = vld [vmem:[%s4833_s5 + $0xb0] sm:$0xff]  }
 0x12c   :  { %1527 = vmatpush1.bf16.msra.mxu1 %v3213_v44  ;;  %1568 = vmatpush1.bf16.msra.mxu0 %v3215_v45  ;;  %v602_v44 = vld [vmem:[%s4831_s3 + $0x2f0] sm:$0xff]  ;;  %v595_v45 = vld [vmem:[%s4831_s3 + $0x2b8] sm:$0xff] }
 0x12d   :  { %1528 = vmatprep.subr.bf16.mxu1 %v3198_v46  ;;  %1569 = vmatprep.subr.bf16.mxu0 %v3200_v47  ;;  %v603_v46 = vld [vmem:[%s4831_s3 + $0x2f8] sm:$0xff]  ;;  %v3217_v47 = vcombine.low %v610_v34, %v618_v35  ;;  %v3202_v49 = vcombine.high %v594_v43, %v602_v44  ;;  %v3648_v34 = vld [vmem:[%s4833_s5 + $0x70] sm:$0xff]  }
 0x12e   :  { %v3204_v50 = vcombine.high %v595_v45, %v603_v46  ;;  %v3203_v57 = vcombine.low %v595_v45, %v603_v46  ;;  %v3649_v35 = vld [vmem:[%s4833_s5 + $0xf0] sm:$0xff]   ;;  %v3659_v45 = vld [vmem:[%s4833_s5 + $0xa0] sm:$0xff]   ;;  %v3660_v46 = vld [vmem:[%s4833_s5 + $0x58] sm:$0xff]  }
 0x130   :  { %1529 = vmatpush1.bf16.msra.mxu1 %v3197_v53  ;;  %1570 = vmatpush1.bf16.msra.mxu0 %v3199_v54  ;;  %v586_v53 = vld [vmem:[%s4831_s3 + $0x270] sm:$0xff]  ;;  %v579_v54 = vld [vmem:[%s4831_s3 + $0x238] sm:$0xff] }
 0x131   :  { %1530 = vmatprep.subr.bf16.mxu1 %v3182_v55  ;;  %1571 = vmatprep.subr.bf16.mxu0 %v3184_v56  ;;  %v587_v55 = vld [vmem:[%s4831_s3 + $0x278] sm:$0xff]  ;;  %v3201_v56 = vcombine.low %v594_v43, %v602_v44  ;;  %v3186_v58 = vcombine.high %v578_v51, %v586_v53  ;;  %v3657_v43 = vld [vmem:[%s4833_s5 + $0xe0] sm:$0xff]  }
 0x132   :  { %v3188_v59 = vcombine.high %v579_v54, %v587_v55  ;;  %v3658_v44 = vld [vmem:[%s4833_s5 + $0x20] sm:$0xff]  }
 0x134   :  { %1531 = vmatpush1.bf16.msra.mxu1 %v3181_v61  ;;  %1572 = vmatpush1.bf16.msra.mxu0 %v3183_v62  ;;  %v570_v61 = vld [vmem:[%s4831_s3 + $0x1f0] sm:$0xff]  ;;  %v571_v62 = vld [vmem:[%s4831_s3 + $0x1f8] sm:$0xff] }
 0x135   :  { %1532 = vmatprep.subr.bf16.mxu1 %v3166_v63  ;;  %1573 = vmatprep.subr.bf16.mxu0 %v3168_v0  ;;  %v3185_v63 = vcombine.low %v578_v51, %v586_v53  ;;  %v3187_v0 = vcombine.low %v579_v54, %v587_v55  ;;  %v3170_v1 = vcombine.high %v562_v60, %v570_v61  ;;  %v3665_v51 = vld [vmem:[%s4833_s5 + $0xd0] sm:$0xff]   ;;  %v3668_v55 = vld [vmem:[%s4833_s5 + $0x48] sm:$0xff]  }
 0x136   :  { %v3666_v53 = vld [vmem:[%s4833_s5 + $0x10] sm:$0xff]  }
 0x137   :  { %v3667_v54 = vld [vmem:[%s4833_s5 + $0x90] sm:$0xff]  }
 0x138   :  { %1533 = vmatpush1.bf16.msra.mxu1 %v3165_v5  ;;  %1574 = vmatpush1.bf16.msra.mxu0 %v3167_v6  ;;  %v547_v5 = vld [vmem:[%s4831_s3 + $0x138] sm:$0xff] }
 0x139   :  { %1534 = vmatprep.subr.bf16.mxu1 %v3150_v7  ;;  %1575 = vmatprep.subr.bf16.mxu0 %v3152_v8  ;;  %v555_v6 = vld [vmem:[%s4831_s3 + $0x178] sm:$0xff]  ;;  %v3169_v7 = vcombine.low %v562_v60, %v570_v61  ;;  %v3673_v60 = vld [vmem:[%s4833_s5 + $0xc0] sm:$0xff]  }
 0x13a   :  { %v3156_v10 = vcombine.high %v547_v5, %v555_v6  ;;  %v3674_v61 = vld [vmem:[%s4833_s5] sm:$0xff]  }
 0x13c   :  { %1535 = vmatpush1.bf16.msra.mxu1 %v3149_v13  ;;  %1576 = vmatpush1.bf16.msra.mxu0 %v3151_v14  ;;  %v531_v13 = vld [vmem:[%s4831_s3 + $0xb8] sm:$0xff] }
 0x13d   :  { %1536 = vmatprep.subr.bf16.mxu1 %v3134_v15  ;;  %1577 = vmatprep.subr.bf16.mxu0 %v3136_v16  ;;  %v539_v14 = vld [vmem:[%s4831_s3 + $0xf8] sm:$0xff]  ;;  %v3153_v15 = vcombine.low %v546_v3, %v554_v4  ;;  %v3155_v16 = vcombine.low %v547_v5, %v555_v6  ;;  %v646_v3 = vsub.s32 1, %v3942_v37  ;;  %v654_v4 = vsub.s32 3, %v3942_v37 }
 0x13e   :  { %v3140_v18 = vcombine.high %v531_v13, %v539_v14 }
 0x140   :  { %1537 = vmatpush1.bf16.msra.mxu1 %v3133_v21  ;;  %1578 = vmatpush1.bf16.msra.mxu0 %v3135_v22  ;;  %v515_v21 = vld [vmem:[%s4831_s3 + $0x38] sm:$0xff] }
 0x141   :  { %1538 = vmatprep.subr.bf16.mxu1 %v3118_v23  ;;  %1579 = vmatprep.subr.bf16.mxu0 %v3120_v24  ;;  %v523_v22 = vld [vmem:[%s4831_s3 + $0x78] sm:$0xff]  ;;  %v3137_v23 = vcombine.low %v530_v11, %v538_v12  ;;  %v3139_v24 = vcombine.low %v531_v13, %v539_v14 }
 0x142   :  { %v3124_v26 = vcombine.high %v515_v21, %v523_v22  ;;  %v3123_v28 = vcombine.low %v515_v21, %v523_v22  ;;  %v3678_v21 = vld [vmem:[%s4833_s5 + $0x138] sm:$0xff]  }
 0x143   :  { %v3679_v22 = vld [vmem:[%s4833_s5 + $0x1b8] sm:$0xff]  }
 0x144   :  { %1539 = vmatpush1.bf16.msra.mxu1 %v3117_v29  ;;  %1580 = vmatpush1.bf16.msra.mxu0 %v3119_v30  ;;  %v3644_v29 = vld [vmem:[%s4833_s5 + $0x78] sm:$0xff]  }
 0x145   :  { %1606 = vmatprep.subr.bf16.mxu1 %v3234_v31  ;;  %1647 = vmatprep.subr.bf16.mxu0 %v3236_v32  ;;  %v3645_v30 = vld [vmem:[%s4833_s5 + $0xf8] sm:$0xff]  }
 0x146   :  { %v3646_v31 = vld [vmem:[%s4833_s5 + $0x38] sm:$0xff]  }
 0x147   :  { %1557 = vmatmul.mubr.bf16.vlgmr.msra.gmra.mxu1 %v4092_v33  ;;  %1598 = vmatmul.mubr.bf16.vlgmr.msra.gmra.mxu0 %v4092_v33  ;;  %v3647_v32 = vld [vmem:[%s4833_s5 + $0xb8] sm:$0xff]  }
 0x148   :  { %1607 = vmatpush1.bf16.msra.mxu1 %v3233_v39  ;;  %1648 = vmatpush1.bf16.msra.mxu0 %v3235_v40  ;;  %v3652_v39 = vld [vmem:[%s4833_s5 + $0x68] sm:$0xff]  }
 0x149   :  { %1608 = vmatprep.subr.bf16.mxu1 %v3218_v41  ;;  %1649 = vmatprep.subr.bf16.mxu0 %v3220_v42  ;;  %v3654_v40 = vld [vmem:[%s4833_s5 + $0x28] sm:$0xff]   ;;  %v3656_v42 = vld [vmem:[%s4833_s5 + $0x60] sm:$0xff]  }
 0x14a   :  { %1638 = vmatprep.mubr.bf16.mxu1 %v3797_v52  ;;  %1679 = vmatprep.mubr.bf16.mxu0 %v3797_v52  ;;  %v563_v52 = vld [vmem:[%s4831_s3 + $0x1b8] sm:$0xff]  ;;  %v3655_v41 = vld [vmem:[%s4833_s5 + $0xa8] sm:$0xff]  }
 0x14b   :  { %v3172_v2 = vcombine.high %v563_v52, %v571_v62  ;;  %v3171_v8 = vcombine.low %v563_v52, %v571_v62  ;;  %v3675_v52 = vld [vmem:[%s4833_s5 + $0x80] sm:$0xff]   ;;  %v3676_v62 = vld [vmem:[%s4833_s5 + $0x178] sm:$0xff]  }
 0x14c   :  { %1609 = vmatpush1.bf16.msra.mxu1 %v3217_v47  ;;  %1650 = vmatpush1.bf16.msra.mxu0 %v3219_v48  ;;  %v3661_v47 = vld [vmem:[%s4833_s5 + $0xd8] sm:$0xff]  }
 0x14d   :  { %1610 = vmatprep.subr.bf16.mxu1 %v3202_v49  ;;  %1651 = vmatprep.subr.bf16.mxu0 %v3204_v50  ;;  %v3662_v48 = vld [vmem:[%s4833_s5 + $0x18] sm:$0xff]   ;;  %v3664_v50 = vld [vmem:[%s4833_s5 + $0x50] sm:$0xff]  }
 0x14e   :  { %v3663_v49 = vld [vmem:[%s4833_s5 + $0x98] sm:$0xff]  }
 0x150   :  { %1611 = vmatpush1.bf16.msra.mxu1 %v3201_v56  ;;  %1652 = vmatpush1.bf16.msra.mxu0 %v3203_v57  ;;  %v3669_v56 = vld [vmem:[%s4833_s5 + $0xc8] sm:$0xff]  }
 0x151   :  { %1612 = vmatprep.subr.bf16.mxu1 %v3186_v58  ;;  %1653 = vmatprep.subr.bf16.mxu0 %v3188_v59  ;;  %v3670_v57 = vld [vmem:[%s4833_s5 + $0x8] sm:$0xff]   ;;  %v3672_v59 = vld [vmem:[%s4833_s5 + $0x40] sm:$0xff]  }
 0x152   :  { %v3671_v58 = vld [vmem:[%s4833_s5 + $0x88] sm:$0xff]  }
 0x154   :  { %1613 = vmatpush1.bf16.msra.mxu1 %v3185_v63  ;;  %1654 = vmatpush1.bf16.msra.mxu0 %v3187_v0  ;;  %v3677_v63 = vld [vmem:[%s4833_s5 + $0x1f8] sm:$0xff]   ;;  %v642_v0 = vsub.s32 0, %v3942_v37 }
 0x155   :  { %1614 = vmatprep.subr.bf16.mxu1 %v3170_v1  ;;  %1655 = vmatprep.subr.bf16.mxu0 %v3172_v2  ;;  %v650_v1 = vsub.s32 2, %v3942_v37  ;;  %v4479_v2 = vld [vmem:[%s4832_s4] sm:$0xff] }
 0x156   :  { %v643_v5 = vrot.slane %v4479_v2, %v642_v0 }
 0x157   :  { %v651_v6 = vrot.slane %v4479_v2, %v650_v1 }
 0x158   :  { %1615 = vmatpush1.bf16.msra.mxu1 %v3169_v7  ;;  %1656 = vmatpush1.bf16.msra.mxu0 %v3171_v8  ;;  %v647_v7 = vrot.slane %v4479_v2, %v646_v3  ;;  %v655_v8 = vrot.slane %v4479_v2, %v654_v4 }
 0x159   :  { %1616 = vmatprep.subr.bf16.mxu1 %v3154_v9  ;;  %1657 = vmatprep.subr.bf16.mxu0 %v3156_v10 }
 0x15c   :  { %1617 = vmatpush1.bf16.msra.mxu1 %v3153_v15  ;;  %1658 = vmatpush1.bf16.msra.mxu0 %v3155_v16 }
 0x15d   :  { %1618 = vmatprep.subr.bf16.mxu1 %v3138_v17  ;;  %1659 = vmatprep.subr.bf16.mxu0 %v3140_v18 }
 0x160   :  { %1619 = vmatpush1.bf16.msra.mxu1 %v3137_v23  ;;  %1660 = vmatpush1.bf16.msra.mxu0 %v3139_v24 }
 0x161   :  { %1620 = vmatprep.subr.bf16.mxu1 %v3122_v25  ;;  %1661 = vmatprep.subr.bf16.mxu0 %v3124_v26 }
 0x164   :  { %1621 = vmatpush1.bf16.msra.mxu1 %v3121_v27  ;;  %1662 = vmatpush1.bf16.msra.mxu0 %v3123_v28  ;;  %v3680_v27 = vld [vmem:[%s4833_s5 + $0x170] sm:$0xff]  }
 0x165   :  { %3415 = vmatprep.subr.bf16.mxu1 %v3644_v29  ;;  %3437 = vmatprep.subr.bf16.mxu0 %v3645_v30  ;;  %v3681_v28 = vld [vmem:[%s4833_s5 + $0x1f0] sm:$0xff]  }
 0x166   :  { %v3682_v29 = vld [vmem:[%s4833_s5 + $0x130] sm:$0xff]  }
 0x167   :  { %1639 = vmatmul.mubr.bf16.vlgmr.msra.gmra.mxu1 %v4092_v33  ;;  %1680 = vmatmul.mubr.bf16.vlgmr.msra.gmra.mxu0 %v4092_v33  ;;  %v3653_v33 = vld [vmem:[%s4833_s5 + $0xe8] sm:$0xff]   ;;  %v3683_v30 = vld [vmem:[%s4833_s5 + $0x1b0] sm:$0xff]  }
 0x168   :  { %3416 = vmatpush3.bf16.msra.mxu1 %v3646_v31  ;;  %3438 = vmatpush3.bf16.msra.mxu0 %v3647_v32  ;;  %v3684_v31 = vld [vmem:[%s4833_s5 + $0x168] sm:$0xff]  }
 0x169   :  { %3417 = vmatprep.subr.bf16.mxu1 %v3648_v34  ;;  %3439 = vmatprep.subr.bf16.mxu0 %v3649_v35  ;;  %v3685_v32 = vld [vmem:[%s4833_s5 + $0x1e8] sm:$0xff]  }
 0x16a   :  { %v3686_v34 = vld [vmem:[%s4833_s5 + $0x128] sm:$0xff]  }
 0x16b   :  { %v3687_v35 = vld [vmem:[%s4833_s5 + $0x1a8] sm:$0xff]  }
 0x16c   :  { %3418 = vmatpush3.bf16.msra.mxu1 %v3650_v36  ;;  %3440 = vmatpush3.bf16.msra.mxu0 %v3651_v38  ;;  %v3688_v36 = vld [vmem:[%s4833_s5 + $0x160] sm:$0xff]  }
 0x16d   :  { %3419 = vmatprep.subr.bf16.mxu1 %v3652_v39  ;;  %3441 = vmatprep.subr.bf16.mxu0 %v3653_v33  ;;  %v3689_v38 = vld [vmem:[%s4833_s5 + $0x1e0] sm:$0xff]  }
 0x16e   :  { %v3690_v39 = vld [vmem:[%s4833_s5 + $0x120] sm:$0xff]  }
 0x16f   :  { %v3691_v33 = vld [vmem:[%s4833_s5 + $0x1a0] sm:$0xff]  }
 0x170   :  { %3420 = vmatpush3.bf16.msra.mxu1 %v3654_v40  ;;  %3442 = vmatpush3.bf16.msra.mxu0 %v3655_v41  ;;  %v3692_v40 = vld [vmem:[%s4833_s5 + $0x158] sm:$0xff]  }
 0x171   :  { %3421 = vmatprep.subr.bf16.mxu1 %v3656_v42  ;;  %3443 = vmatprep.subr.bf16.mxu0 %v3657_v43  ;;  %v3693_v41 = vld [vmem:[%s4833_s5 + $0x1d8] sm:$0xff]  }
 0x172   :  { %v3694_v42 = vld [vmem:[%s4833_s5 + $0x118] sm:$0xff]  }
 0x173   :  { %v3695_v43 = vld [vmem:[%s4833_s5 + $0x198] sm:$0xff]  }
 0x174   :  { %3422 = vmatpush3.bf16.msra.mxu1 %v3658_v44  ;;  %3444 = vmatpush3.bf16.msra.mxu0 %v3659_v45  ;;  %v3696_v44 = vld [vmem:[%s4833_s5 + $0x150] sm:$0xff]  }
 0x175   :  { %3423 = vmatprep.subr.bf16.mxu1 %v3660_v46  ;;  %3445 = vmatprep.subr.bf16.mxu0 %v3661_v47  ;;  %v3697_v45 = vld [vmem:[%s4833_s5 + $0x1d0] sm:$0xff]  }
 0x176   :  { %v3698_v46 = vld [vmem:[%s4833_s5 + $0x110] sm:$0xff]  }
 0x177   :  { %v3699_v47 = vld [vmem:[%s4833_s5 + $0x190] sm:$0xff]  }
 0x178   :  { %3424 = vmatpush3.bf16.msra.mxu1 %v3662_v48  ;;  %3446 = vmatpush3.bf16.msra.mxu0 %v3663_v49  ;;  %v658_v48 = vsub.s32 4, %v3942_v37  ;;  %v666_v49 = vsub.s32 6, %v3942_v37 }
 0x179   :  { %3425 = vmatprep.subr.bf16.mxu1 %v3664_v50  ;;  %3447 = vmatprep.subr.bf16.mxu0 %v3665_v51  ;;  %v3700_v50 = vld [vmem:[%s4833_s5 + $0x148] sm:$0xff]  }
 0x17a   :  { %v3701_v51 = vld [vmem:[%s4833_s5 + $0x1c8] sm:$0xff]  }
 0x17c   :  { %3426 = vmatpush3.bf16.msra.mxu1 %v3666_v53  ;;  %3448 = vmatpush3.bf16.msra.mxu0 %v3667_v54  ;;  %v662_v53 = vsub.s32 5, %v3942_v37  ;;  %v670_v54 = vsub.s32 7, %v3942_v37 }
 0x17d   :  { %3427 = vmatprep.subr.bf16.mxu1 %v3668_v55  ;;  %3449 = vmatprep.subr.bf16.mxu0 %v3669_v56  ;;  %v3702_v55 = vld [vmem:[%s4833_s5 + $0x108] sm:$0xff]  }
 0x17e   :  { %v3703_v56 = vld [vmem:[%s4833_s5 + $0x188] sm:$0xff]  }
 0x180   :  { %3428 = vmatpush3.bf16.msra.mxu1 %v3670_v57  ;;  %3450 = vmatpush3.bf16.msra.mxu0 %v3671_v58  ;;  %v659_v57 = vrot.slane %v4479_v2, %v658_v48  ;;  %v667_v58 = vrot.slane %v4479_v2, %v666_v49 }
 0x181   :  { %3429 = vmatprep.subr.bf16.mxu1 %v3672_v59  ;;  %3451 = vmatprep.subr.bf16.mxu0 %v3673_v60  ;;  %v3704_v59 = vld [vmem:[%s4833_s5 + $0x140] sm:$0xff]  }
 0x182   :  { %v3705_v60 = vld [vmem:[%s4833_s5 + $0x1c0] sm:$0xff]  }
 0x184   :  { %3430 = vmatpush3.bf16.msra.mxu1 %v3674_v61  ;;  %3452 = vmatpush3.bf16.msra.mxu0 %v3675_v52  ;;  %v663_v61 = vrot.slane %v4479_v2, %v662_v53  ;;  %v671_v52 = vrot.slane %v4479_v2, %v670_v54  ;;  %v3708_v2 = vld [vmem:[%s4833_s5 + $0x278] sm:$0xff]  }
 0x185   :  { %3459 = vmatprep.subr.bf16.mxu1 %v3676_v62  ;;  %3481 = vmatprep.subr.bf16.mxu0 %v3677_v63 }
 0x1c7   :  { %v1394_v9 = vpop.f32.mrf.mxu1  ;;  %v1435_v10 = vpop.f32.mrf.mxu0 }
 0x1c8   :  { %v1395_v11 = vadd.f32 %v1394_v9, %v643_v5  ;;  %v1436_v12 = vadd.f32 %v1435_v10, %v651_v6  ;;  %v3706_v5 = vld [vmem:[%s4833_s5 + $0x100] sm:$0xff]  }
 0x1c9   :  { %v1396_v13 = vpop.f32.mrf.mxu1  ;;  %v1437_v14 = vpop.f32.mrf.mxu0  ;;  %v3707_v6 = vld [vmem:[%s4833_s5 + $0x180] sm:$0xff]  }
 0x1ca   :  { %v1397_v15 = vadd.f32 %v1396_v13, %v647_v7  ;;  %v1438_v16 = vadd.f32 %v1437_v14, %v655_v8  ;;  %v1688_v23 = vpack.c.bf16 %v1395_v11, %v1395_v11  ;;  %v1690_v24 = vpack.c.bf16 %v1436_v12, %v1436_v12  ;;  %v3709_v11 = vld [vmem:[%s4833_s5 + $0x2f8] sm:$0xff]  }
 0x1cb   :  { %v1398_v17 = vpop.f32.mrf.mxu1  ;;  %v1439_v18 = vpop.f32.mrf.mxu0 }
 0x1cc   :  { %v1689_v19 = vpack.c.bf16 %v1397_v15, %v1397_v15  ;;  %v1691_v20 = vpack.c.bf16 %v1438_v16, %v1438_v16  ;;  %v3710_v18 = vld [vmem:[%s4833_s5 + $0x238] sm:$0xff]  }
 0x1cd   :  { %v1399_v25 = vpop.f32.mrf.mxu1  ;;  %v1440_v26 = vpop.f32.mrf.mxu0 }
 0x1ce   :  { %2767 = vmatprep.mubr.bf16.mxu1 %v1689_v19  ;;  %2807 = vmatprep.mubr.bf16.mxu0 %v1691_v20  ;;  %v3711_v19 = vld [vmem:[%s4833_s5 + $0x2b8] sm:$0xff]   ;;  %v3713_v25 = vld [vmem:[%s4833_s5 + $0x2f0] sm:$0xff]  }
 0x1cf   :  { %2768 = vmatmul.mubr.bf16.vlgmr.msra.gmra.mxu1 %v1688_v23  ;;  %2808 = vmatmul.mubr.bf16.vlgmr.msra.gmra.mxu0 %v1690_v24  ;;  %v3712_v24 = vld [vmem:[%s4833_s5 + $0x270] sm:$0xff]  }
 0x1d0   :  { %3460 = vmatpush3.bf16.msra.mxu1 %v3678_v21  ;;  %3482 = vmatpush3.bf16.msra.mxu0 %v3679_v22  ;;  %v3714_v26 = vld [vmem:[%s4833_s5 + $0x230] sm:$0xff]  }
 0x1d1   :  { %3461 = vmatprep.subr.bf16.mxu1 %v3680_v27  ;;  %3483 = vmatprep.subr.bf16.mxu0 %v3681_v28  ;;  %v3715_v27 = vld [vmem:[%s4833_s5 + $0x2b0] sm:$0xff]   ;;  %v3716_v28 = vld [vmem:[%s4833_s5 + $0x268] sm:$0xff]  }
 0x1d4   :  { %3462 = vmatpush3.bf16.msra.mxu1 %v3682_v29  ;;  %3484 = vmatpush3.bf16.msra.mxu0 %v3683_v30  ;;  %v3717_v29 = vld [vmem:[%s4833_s5 + $0x2e8] sm:$0xff]  }
 0x1d5   :  { %3463 = vmatprep.subr.bf16.mxu1 %v3684_v31  ;;  %3485 = vmatprep.subr.bf16.mxu0 %v3685_v32  ;;  %v3718_v30 = vld [vmem:[%s4833_s5 + $0x228] sm:$0xff]   ;;  %v3720_v32 = vld [vmem:[%s4833_s5 + $0x260] sm:$0xff]  }
 0x1d6   :  { %v3719_v31 = vld [vmem:[%s4833_s5 + $0x2a8] sm:$0xff]  }
 0x1d8   :  { %3464 = vmatpush3.bf16.msra.mxu1 %v3686_v34  ;;  %3486 = vmatpush3.bf16.msra.mxu0 %v3687_v35  ;;  %v3721_v34 = vld [vmem:[%s4833_s5 + $0x2e0] sm:$0xff]  }
 0x1d9   :  { %3465 = vmatprep.subr.bf16.mxu1 %v3688_v36  ;;  %3487 = vmatprep.subr.bf16.mxu0 %v3689_v38  ;;  %v3722_v35 = vld [vmem:[%s4833_s5 + $0x220] sm:$0xff]   ;;  %v3724_v38 = vld [vmem:[%s4833_s5 + $0x258] sm:$0xff]  }
 0x1da   :  { %v3723_v36 = vld [vmem:[%s4833_s5 + $0x2a0] sm:$0xff]  }
 0x1dc   :  { %3466 = vmatpush3.bf16.msra.mxu1 %v3690_v39  ;;  %3488 = vmatpush3.bf16.msra.mxu0 %v3691_v33  ;;  %v3725_v39 = vld [vmem:[%s4833_s5 + $0x2d8] sm:$0xff]  }
 0x1dd   :  { %3467 = vmatprep.subr.bf16.mxu1 %v3692_v40  ;;  %3489 = vmatprep.subr.bf16.mxu0 %v3693_v41  ;;  %v3726_v33 = vld [vmem:[%s4833_s5 + $0x218] sm:$0xff]   ;;  %v3728_v41 = vld [vmem:[%s4833_s5 + $0x250] sm:$0xff]  }
 0x1de   :  { %v3727_v40 = vld [vmem:[%s4833_s5 + $0x298] sm:$0xff]  }
 0x1e0   :  { %3468 = vmatpush3.bf16.msra.mxu1 %v3694_v42  ;;  %3490 = vmatpush3.bf16.msra.mxu0 %v3695_v43  ;;  %v3729_v42 = vld [vmem:[%s4833_s5 + $0x2d0] sm:$0xff]  }
 0x1e1   :  { %3469 = vmatprep.subr.bf16.mxu1 %v3696_v44  ;;  %3491 = vmatprep.subr.bf16.mxu0 %v3697_v45  ;;  %v3730_v43 = vld [vmem:[%s4833_s5 + $0x210] sm:$0xff]   ;;  %v3732_v45 = vld [vmem:[%s4833_s5 + $0x248] sm:$0xff]  }
 0x1e2   :  { %v3731_v44 = vld [vmem:[%s4833_s5 + $0x290] sm:$0xff]  }
 0x1e4   :  { %3470 = vmatpush3.bf16.msra.mxu1 %v3698_v46  ;;  %3492 = vmatpush3.bf16.msra.mxu0 %v3699_v47  ;;  %v3733_v46 = vld [vmem:[%s4833_s5 + $0x2c8] sm:$0xff]  }
 0x1e5   :  { %3471 = vmatprep.subr.bf16.mxu1 %v3700_v50  ;;  %3493 = vmatprep.subr.bf16.mxu0 %v3701_v51  ;;  %v4682_v47 = vld [vmem:[%s4832_s4 + $0x8] sm:$0xff] }
 0x1e6   :  { %v3734_v50 = vld [vmem:[%s4833_s5 + $0x208] sm:$0xff]  }
 0x1e7   :  { %v1476_v62 = vpop.f32.mrf.mxu1  ;;  %v1517_v63 = vpop.f32.mrf.mxu0  ;;  %v3735_v51 = vld [vmem:[%s4833_s5 + $0x288] sm:$0xff]  }
 0x1e8   :  { %3472 = vmatpush3.bf16.msra.mxu1 %v3702_v55  ;;  %3494 = vmatpush3.bf16.msra.mxu0 %v3703_v56  ;;  %v1477_v7 = vadd.f32 %v1476_v62, %v659_v57  ;;  %v1518_v8 = vadd.f32 %v1517_v63, %v667_v58  ;;  %v675_v55 = vrot.slane %v4682_v47, %v642_v0  ;;  %v3736_v57 = vld [vmem:[%s4833_s5 + $0x240] sm:$0xff]  }
 0x1e9   :  { %v1478_v9 = vpop.f32.mrf.mxu1  ;;  %v1519_v10 = vpop.f32.mrf.mxu0  ;;  %3473 = vmatprep.subr.bf16.mxu1 %v3704_v59  ;;  %3495 = vmatprep.subr.bf16.mxu0 %v3705_v60  ;;  %v683_v56 = vrot.slane %v4682_v47, %v650_v1  ;;  %v3737_v58 = vld [vmem:[%s4833_s5 + $0x2c0] sm:$0xff]   ;;  %v679_v59 = vrot.slane %v4682_v47, %v646_v3  ;;  %v687_v0 = vrot.slane %v4682_v47, %v654_v4  ;;  %v3740_v4 = vld [vmem:[%s4833_s5 + $0x378] sm:$0xff]  }
 0x1ea   :  { %v1479_v12 = vadd.f32 %v1478_v9, %v663_v61  ;;  %v1520_v13 = vadd.f32 %v1519_v10, %v671_v52  ;;  %v1692_v20 = vpack.c.bf16 %v1477_v7, %v1477_v7  ;;  %v1694_v21 = vpack.c.bf16 %v1518_v8, %v1518_v8  ;;  %v3738_v61 = vld [vmem:[%s4833_s5 + $0x200] sm:$0xff]  }
 0x1eb   :  { %v1480_v14 = vpop.f32.mrf.mxu1  ;;  %v1521_v15 = vpop.f32.mrf.mxu0  ;;  %v3739_v52 = vld [vmem:[%s4833_s5 + $0x280] sm:$0xff]  }
 0x1ec   :  { %v1693_v16 = vpack.c.bf16 %v1479_v12, %v1479_v12  ;;  %v1695_v17 = vpack.c.bf16 %v1520_v13, %v1520_v13  ;;  %3474 = vmatpush3.bf16.msra.mxu1 %v3706_v5  ;;  %3496 = vmatpush3.bf16.msra.mxu0 %v3707_v6  ;;  %v3741_v6 = vld [vmem:[%s4833_s5 + $0x3f8] sm:$0xff]  }
 0x1ed   :  { %v1481_v22 = vpop.f32.mrf.mxu1  ;;  %v1522_v23 = vpop.f32.mrf.mxu0  ;;  %3503 = vmatprep.subr.bf16.mxu1 %v3708_v2  ;;  %3525 = vmatprep.subr.bf16.mxu0 %v3709_v11  ;;  %v3742_v12 = vld [vmem:[%s4833_s5 + $0x338] sm:$0xff]  }
 0x1ee   :  { %2847 = vmatprep.mubr.bf16.mxu1 %v1693_v16  ;;  %2887 = vmatprep.mubr.bf16.mxu0 %v1695_v17  ;;  %v3743_v13 = vld [vmem:[%s4833_s5 + $0x3b8] sm:$0xff]   ;;  %v3748_v22 = vld [vmem:[%s4833_s5 + $0x368] sm:$0xff]  }
 0x1ef   :  { %2848 = vmatmul.mubr.bf16.vlgmr.msra.gmra.mxu1 %v1692_v20  ;;  %2888 = vmatmul.mubr.bf16.vlgmr.msra.gmra.mxu0 %v1694_v21  ;;  %v3746_v20 = vld [vmem:[%s4833_s5 + $0x330] sm:$0xff]   ;;  %v3749_v23 = vld [vmem:[%s4833_s5 + $0x3e8] sm:$0xff]  }
 0x1f0   :  { %3504 = vmatpush3.bf16.msra.mxu1 %v3710_v18  ;;  %3526 = vmatpush3.bf16.msra.mxu0 %v3711_v19  ;;  %v3744_v18 = vld [vmem:[%s4833_s5 + $0x370] sm:$0xff]  }
 0x1f1   :  { %3505 = vmatprep.subr.bf16.mxu1 %v3712_v24  ;;  %3527 = vmatprep.subr.bf16.mxu0 %v3713_v25  ;;  %v3745_v19 = vld [vmem:[%s4833_s5 + $0x3f0] sm:$0xff]   ;;  %v3750_v24 = vld [vmem:[%s4833_s5 + $0x328] sm:$0xff]  }
 0x1f2   :  { %v3747_v21 = vld [vmem:[%s4833_s5 + $0x3b0] sm:$0xff]   ;;  %v3751_v25 = vld [vmem:[%s4833_s5 + $0x3a8] sm:$0xff]  }
 0x1f4   :  { %3506 = vmatpush3.bf16.msra.mxu1 %v3714_v26  ;;  %3528 = vmatpush3.bf16.msra.mxu0 %v3715_v27  ;;  %v3752_v26 = vld [vmem:[%s4833_s5 + $0x360] sm:$0xff]  }
 0x1f5   :  { %3507 = vmatprep.subr.bf16.mxu1 %v3716_v28  ;;  %3529 = vmatprep.subr.bf16.mxu0 %v3717_v29  ;;  %v3753_v27 = vld [vmem:[%s4833_s5 + $0x3e0] sm:$0xff]  }
 0x1f6   :  { %v3754_v28 = vld [vmem:[%s4833_s5 + $0x320] sm:$0xff]  }
 0x1f7   :  { %v3755_v29 = vld [vmem:[%s4833_s5 + $0x3a0] sm:$0xff]  }
 0x1f8   :  { %3508 = vmatpush3.bf16.msra.mxu1 %v3718_v30  ;;  %3530 = vmatpush3.bf16.msra.mxu0 %v3719_v31  ;;  %v3756_v30 = vld [vmem:[%s4833_s5 + $0x358] sm:$0xff]  }
 0x1f9   :  { %3509 = vmatprep.subr.bf16.mxu1 %v3720_v32  ;;  %3531 = vmatprep.subr.bf16.mxu0 %v3721_v34  ;;  %v3757_v31 = vld [vmem:[%s4833_s5 + $0x3d8] sm:$0xff]  }
 0x1fa   :  { %v3758_v32 = vld [vmem:[%s4833_s5 + $0x318] sm:$0xff]  }
 0x1fb   :  { %v3759_v34 = vld [vmem:[%s4833_s5 + $0x398] sm:$0xff]  }
 0x1fc   :  { %3510 = vmatpush3.bf16.msra.mxu1 %v3722_v35  ;;  %3532 = vmatpush3.bf16.msra.mxu0 %v3723_v36  ;;  %v3760_v35 = vld [vmem:[%s4833_s5 + $0x350] sm:$0xff]  }
 0x1fd   :  { %3511 = vmatprep.subr.bf16.mxu1 %v3724_v38  ;;  %3533 = vmatprep.subr.bf16.mxu0 %v3725_v39  ;;  %v3761_v36 = vld [vmem:[%s4833_s5 + $0x3d0] sm:$0xff]  }
 0x1fe   :  { %v3762_v38 = vld [vmem:[%s4833_s5 + $0x310] sm:$0xff]  }
 0x1ff   :  { %v3763_v39 = vld [vmem:[%s4833_s5 + $0x390] sm:$0xff]  }
 0x200   :  { %3512 = vmatpush3.bf16.msra.mxu1 %v3726_v33  ;;  %3534 = vmatpush3.bf16.msra.mxu0 %v3727_v40  ;;  %v3764_v33 = vld [vmem:[%s4833_s5 + $0x348] sm:$0xff]  }
 0x201   :  { %3513 = vmatprep.subr.bf16.mxu1 %v3728_v41  ;;  %3535 = vmatprep.subr.bf16.mxu0 %v3729_v42  ;;  %v3765_v40 = vld [vmem:[%s4833_s5 + $0x3c8] sm:$0xff]  }
 0x202   :  { %v3766_v41 = vld [vmem:[%s4833_s5 + $0x308] sm:$0xff]  }
 0x203   :  { %v3767_v42 = vld [vmem:[%s4833_s5 + $0x388] sm:$0xff]  }
 0x204   :  { %3514 = vmatpush3.bf16.msra.mxu1 %v3730_v43  ;;  %3536 = vmatpush3.bf16.msra.mxu0 %v3731_v44  ;;  %v691_v43 = vrot.slane %v4682_v47, %v658_v48  ;;  %v699_v44 = vrot.slane %v4682_v47, %v666_v49  ;;  %v703_v48 = vrot.slane %v4682_v47, %v670_v54 }
 0x205   :  { %3515 = vmatprep.subr.bf16.mxu1 %v3732_v45  ;;  %3537 = vmatprep.subr.bf16.mxu0 %v3733_v46  ;;  %v3768_v45 = vld [vmem:[%s4833_s5 + $0x340] sm:$0xff]  }
 0x206   :  { %v3769_v46 = vld [vmem:[%s4833_s5 + $0x3c0] sm:$0xff]  }
 0x207   :  { %v1558_v60 = vpop.f32.mrf.mxu1  ;;  %v1599_v1 = vpop.f32.mrf.mxu0 }
 0x208   :  { %3516 = vmatpush3.bf16.msra.mxu1 %v3734_v50  ;;  %3538 = vmatpush3.bf16.msra.mxu0 %v3735_v51  ;;  %v1559_v62 = vadd.f32 %v1558_v60, %v675_v55  ;;  %v1600_v63 = vadd.f32 %v1599_v1, %v683_v56  ;;  %v695_v50 = vrot.slane %v4682_v47, %v662_v53  ;;  %v3770_v55 = vld [vmem:[%s4833_s5 + $0x300] sm:$0xff]  }
 0x209   :  { %v1560_v5 = vpop.f32.mrf.mxu1  ;;  %v1601_v3 = vpop.f32.mrf.mxu0  ;;  %3517 = vmatprep.subr.bf16.mxu1 %v3736_v57  ;;  %3539 = vmatprep.subr.bf16.mxu0 %v3737_v58  ;;  %v3771_v56 = vld [vmem:[%s4833_s5 + $0x380] sm:$0xff]  }
 0x20a   :  { %v1561_v7 = vadd.f32 %v1560_v5, %v679_v59  ;;  %v1602_v8 = vadd.f32 %v1601_v3, %v687_v0  ;;  %v1696_v14 = vpack.c.bf16 %v1559_v62, %v1559_v62  ;;  %v1698_v15 = vpack.c.bf16 %v1600_v63, %v1600_v63 }
 0x20b   :  { %v1562_v9 = vpop.f32.mrf.mxu1  ;;  %v1603_v10 = vpop.f32.mrf.mxu0 }
 0x20c   :  { %v1697_v2 = vpack.c.bf16 %v1561_v7, %v1561_v7  ;;  %v1699_v11 = vpack.c.bf16 %v1602_v8, %v1602_v8  ;;  %3518 = vmatpush3.bf16.msra.mxu1 %v3738_v61  ;;  %3540 = vmatpush3.bf16.msra.mxu0 %v3739_v52 }
 0x20d   :  { %v1563_v16 = vpop.f32.mrf.mxu1  ;;  %v1604_v17 = vpop.f32.mrf.mxu0  ;;  %3547 = vmatprep.subr.bf16.mxu1 %v3740_v4  ;;  %3569 = vmatprep.subr.bf16.mxu0 %v3741_v6  ;;  %v3237_v4 = vld [vmem:[%s4834_s6] ss:$0 sm:$0xff]  ;;  %s3798_s6 = smov [#allocation3]  }
 0x20e   :  { %2927 = vmatprep.mubr.bf16.mxu1 %v1697_v2  ;;  %2967 = vmatprep.mubr.bf16.mxu0 %v1699_v11  ;;  %s3063_s20 = sshll.u32 %s3798_s6, 4  ;;  %s3064_s20 = int_to_ptr.vmem [resolvable:$true] %s3063_s20 }
 0x20f   :  { %2928 = vmatmul.mubr.bf16.vlgmr.msra.gmra.mxu1 %v1696_v14  ;;  %2968 = vmatmul.mubr.bf16.vlgmr.msra.gmra.mxu0 %v1698_v15  ;;  %s3772_s21 = scalar_lea.vmem %s3064_s20, 32  ;;  %p3777_p1 = scmp.lt.s32.totalorder %s3064_s20, %s3064_s20 }
 0x210   :  { %3548 = vmatpush3.bf16.msra.mxu1 %v3742_v12  ;;  %3570 = vmatpush3.bf16.msra.mxu0 %v3743_v13  ;;  %p3773_p0 = scmp.ne.s32.totalorder %s3064_s20, %s3772_s21  ;;  %p3778_p2 = scmp.lt.s32.totalorder %s3772_s21, %s3772_s21 }
 0x211   :  { %3549 = vmatprep.subr.bf16.mxu1 %v3744_v18  ;;  %3571 = vmatprep.subr.bf16.mxu0 %v3745_v19 }
 0x212   :  { %p3779_p3 = por %p3778_p2, %p3777_p1 }
 0x214   :  { %3550 = vmatpush3.bf16.msra.mxu1 %v3746_v20  ;;  %3572 = vmatpush3.bf16.msra.mxu0 %v3747_v21  ;;  %p3780_p4 = pnand %p3779_p3, %p3773_p0 }
 0x215   :  { %3551 = vmatprep.subr.bf16.mxu1 %v3748_v22  ;;  %3573 = vmatprep.subr.bf16.mxu0 %v3749_v23 }
 0x218   :  { %3552 = vmatpush3.bf16.msra.mxu1 %v3750_v24  ;;  %3574 = vmatpush3.bf16.msra.mxu0 %v3751_v25 }
 0x219   :  { %3553 = vmatprep.subr.bf16.mxu1 %v3752_v26  ;;  %3575 = vmatprep.subr.bf16.mxu0 %v3753_v27 }
 0x21c   :  { %3554 = vmatpush3.bf16.msra.mxu1 %v3754_v28  ;;  %3576 = vmatpush3.bf16.msra.mxu0 %v3755_v29 }
 0x21d   :  { %3555 = vmatprep.subr.bf16.mxu1 %v3756_v30  ;;  %3577 = vmatprep.subr.bf16.mxu0 %v3757_v31 }
 0x220   :  { %3556 = vmatpush3.bf16.msra.mxu1 %v3758_v32  ;;  %3578 = vmatpush3.bf16.msra.mxu0 %v3759_v34 }
 0x221   :  { %3557 = vmatprep.subr.bf16.mxu1 %v3760_v35  ;;  %3579 = vmatprep.subr.bf16.mxu0 %v3761_v36 }
 0x224   :  { %3558 = vmatpush3.bf16.msra.mxu1 %v3762_v38  ;;  %3580 = vmatpush3.bf16.msra.mxu0 %v3763_v39 }
 0x225   :  { %3559 = vmatprep.subr.bf16.mxu1 %v3764_v33  ;;  %3581 = vmatprep.subr.bf16.mxu0 %v3765_v40 }
 0x227   :  { %v1640_v51 = vpop.f32.mrf.mxu1  ;;  %v1681_v49 = vpop.f32.mrf.mxu0 }
 0x228   :  { %3560 = vmatpush3.bf16.msra.mxu1 %v3766_v41  ;;  %3582 = vmatpush3.bf16.msra.mxu0 %v3767_v42  ;;  %v1641_v57 = vadd.f32 %v1640_v51, %v691_v43  ;;  %v1682_v58 = vadd.f32 %v1681_v49, %v699_v44 }
 0x229   :  { %v1642_v59 = vpop.f32.mrf.mxu1  ;;  %v1683_v53 = vpop.f32.mrf.mxu0  ;;  %3561 = vmatprep.subr.bf16.mxu1 %v3768_v45  ;;  %3583 = vmatprep.subr.bf16.mxu0 %v3769_v46 }
 0x22a   :  { %v1643_v37 = vadd.f32 %v1642_v59, %v695_v50  ;;  %v1684_v54 = vadd.f32 %v1683_v53, %v703_v48  ;;  %v1700_v61 = vpack.c.bf16 %v1641_v57, %v1641_v57  ;;  %v1702_v52 = vpack.c.bf16 %v1682_v58, %v1682_v58 }
 0x22b   :  { %v1644_v47 = vpop.f32.mrf.mxu1  ;;  %v1685_v0 = vpop.f32.mrf.mxu0 }
 0x22c   :  { %v1701_v60 = vpack.c.bf16 %v1643_v37, %v1643_v37  ;;  %v1703_v1 = vpack.c.bf16 %v1684_v54, %v1684_v54  ;;  %3562 = vmatpush3.bf16.msra.mxu1 %v3770_v55  ;;  %3584 = vmatpush3.bf16.msra.mxu0 %v3771_v56 }
 0x22d   :  { %v1645_v62 = vpop.f32.mrf.mxu1  ;;  %v1686_v63 = vpop.f32.mrf.mxu0 }
 0x22e   :  { %3007 = vmatprep.mubr.bf16.mxu1 %v1701_v60  ;;  %3047 = vmatprep.mubr.bf16.mxu0 %v1703_v1 }
 0x22f   :  { %3008 = vmatmul.mubr.bf16.vlgmr.msra.gmra.mxu1 %v1700_v61  ;;  %3048 = vmatmul.mubr.bf16.vlgmr.msra.gmra.mxu0 %v1702_v52 }
 0x28f   :  { %v3431_v5 = vpop.f32.mrf.mxu1  ;;  %v3453_v3 = vpop.f32.mrf.mxu0 }
 0x291   :  { %v3432_v6 = vpop.f32.mrf.mxu1  ;;  %v3454_v7 = vpop.f32.mrf.mxu0 }
 0x292   :  { %v3433_v8 = vadd.f32 %v3432_v6, %v3431_v5  ;;  %v3455_v9 = vadd.f32 %v3454_v7, %v3453_v3 }
 0x293   :  { %v3434_v10 = vpop.f32.mrf.mxu1  ;;  %v3456_v2 = vpop.f32.mrf.mxu0 }
 0x294   :  { %v2770_v11 = vadd.f32 %v3433_v8, %v3237_v4 }
 0x295   :  { %v3435_v12 = vpop.f32.mrf.mxu1  ;;  %v3457_v13 = vpop.f32.mrf.mxu0 }
 0x296   :  { %v2810_v14 = vadd.f32 %v3455_v9, %v2770_v11 }
 0x2af   :  { %v3475_v15 = vpop.f32.mrf.mxu1  ;;  %v3497_v16 = vpop.f32.mrf.mxu0 }
 0x2b1   :  { %v3476_v17 = vpop.f32.mrf.mxu1  ;;  %v3498_v18 = vpop.f32.mrf.mxu0 }
 0x2b2   :  { %v3477_v31 = vadd.f32 %v3476_v17, %v3475_v15  ;;  %v3499_v34 = vadd.f32 %v3498_v18, %v3497_v16 }
 0x2b3   :  { %v3478_v19 = vpop.f32.mrf.mxu1  ;;  %v3500_v20 = vpop.f32.mrf.mxu0 }
 0x2b4   :  { %v2850_v32 = vadd.f32 %v3477_v31, %v2810_v14 }
 0x2b5   :  { %v3479_v21 = vpop.f32.mrf.mxu1  ;;  %v3501_v22 = vpop.f32.mrf.mxu0 }
 0x2b6   :  { %v2890_v36 = vadd.f32 %v3499_v34, %v2850_v32 }
 0x2cf   :  { %v3519_v23 = vpop.f32.mrf.mxu1  ;;  %v3541_v24 = vpop.f32.mrf.mxu0 }
 0x2d1   :  { %v3520_v25 = vpop.f32.mrf.mxu1  ;;  %v3542_v26 = vpop.f32.mrf.mxu0 }
 0x2d2   :  { %v3521_v35 = vadd.f32 %v3520_v25, %v3519_v23  ;;  %v3543_v40 = vadd.f32 %v3542_v26, %v3541_v24 }
 0x2d3   :  { %v3522_v27 = vpop.f32.mrf.mxu1  ;;  %v3544_v28 = vpop.f32.mrf.mxu0 }
 0x2d4   :  { %v2930_v38 = vadd.f32 %v3521_v35, %v2890_v36 }
 0x2d5   :  { %v3523_v29 = vpop.f32.mrf.mxu1  ;;  %v3545_v30 = vpop.f32.mrf.mxu0 }
 0x2d6   :  { %v2970_v43 = vadd.f32 %v3543_v40, %v2930_v38 }
 0x2ef   :  { %v3563_v39 = vpop.f32.mrf.mxu1  ;;  %v3585_v33 = vpop.f32.mrf.mxu0 }
 0x2f1   :  { %v3564_v41 = vpop.f32.mrf.mxu1  ;;  %v3586_v42 = vpop.f32.mrf.mxu0 }
 0x2f2   :  { %v3565_v44 = vadd.f32 %v3564_v41, %v3563_v39  ;;  %v3587_v48 = vadd.f32 %v3586_v42, %v3585_v33 }
 0x2f3   :  { %v3566_v45 = vpop.f32.mrf.mxu1  ;;  %v3588_v46 = vpop.f32.mrf.mxu0 }
 0x2f4   :  { %v3010_v50 = vadd.f32 %v3565_v44, %v2970_v43 }
 0x2f5   :  { %v3567_v51 = vpop.f32.mrf.mxu1  ;;  %v3589_v49 = vpop.f32.mrf.mxu0 }
 0x2f6   :  { %v3050_v55 = vadd.f32 %v3587_v48, %v3010_v50 }
 0x2f8   :  { %3056 = vst.msk [vmem:[#allocation3] sm:$0x3] %vm3055_vm5, %v3050_v55 }
 0x2f9   :  { %3783 = shalt.err (!%p3780_p4)
}
 0x2fa   :  { %3066 = dma.vmem_to_hbm [thread:$0]  %s3064_s20, 32, %s4835_s7, [#allocation4]  }
 0x2fb   :  { %3792 = dma.done.wait [#allocation4], 32  }
 0x2fc   :  { %3793 = vsyncadd [#allocation4], 4294967264 }
 0x2fd   :  { %3070 = vsyncpa [#allocation4], 1 }

</bundles_post_ra>
